<compile_context>
chip_gen: v5e
topology: v5e:2x2
jax: 0.10.0
libtpu: 0.0.40
codegen_flags: <defaults>
</compile_context>

<pallas_src>
import math
import functools

import jax
import jax.numpy as jnp
from jax.experimental import pallas as pl
from jax.experimental.pallas import tpu as pltpu  # noqa: F401  (TPU backend)

_SQRT2 = math.sqrt(2.0)
_EPS = 1e-6


# ----------------------------------------------------------------------------
# In-kernel helpers (operate on traced jnp values inside the Pallas kernel)
# ----------------------------------------------------------------------------
def _layernorm(x, w, b, eps):
    mu = jnp.mean(x, axis=-1, keepdims=True)
    xc = x - mu
    var = jnp.mean(xc * xc, axis=-1, keepdims=True)
    return xc * jax.lax.rsqrt(var + eps) * w + b


def _erf(x):
    # Abramowitz & Stegun 7.1.26 rational approximation, |error| < 1.5e-7.
    a1, a2, a3, a4, a5 = 0.254829592, -0.284496736, 1.421413741, -1.453152027, 1.061405429
    pc = 0.3275911
    ax = jnp.abs(x)
    t = 1.0 / (1.0 + pc * ax)
    poly = ((((a5 * t + a4) * t + a3) * t + a2) * t + a1) * t
    y = 1.0 - poly * jnp.exp(-ax * ax)
    return jnp.where(x >= 0, y, -y)


def _gelu_exact(x):
    # PyTorch nn.GELU() default: 0.5*x*(1+erf(x/sqrt(2)))
    return 0.5 * x * (1.0 + _erf(x * (1.0 / _SQRT2)))


def _roll_lanes(x, shift, n):
    """Rotate the last (lane) axis left by `shift` (static); result[..., i] = x[..., (i+shift) % n]."""
    shift = shift % n
    if shift == 0:
        return x
    return jnp.concatenate([x[:, shift:], x[:, :shift]], axis=-1)


# ----------------------------------------------------------------------------
# Fused forward kernel: patch embed -> encoder layers -> LN/pool/head
# ----------------------------------------------------------------------------
def _vit_fused_kernel(
    patches_ref, pw_ref, add_ref,
    ln1w_ref, ln1b_ref, wqkv_ref, bqkv_ref, wf_ref, bf_ref,
    ln2w_ref, ln2b_ref, w1_ref, b1_ref, w2_ref, b2_ref,
    lnfw_ref, lnfb_ref, hw_ref, hb_ref,
    o_ref, *, N, L, C, K, num_layers, eps,
):
    H = C * K

    # --- patch embed + class token + positional embedding -------------------
    # patches rows at class-token positions are all-zero; conv bias, class
    # token and pos_emb are pre-folded into add_ref (N*L, H).
    x = (
        jnp.dot(patches_ref[...], pw_ref[...], preferred_element_type=jnp.float32)
        + add_ref[...]
    )                                                          # (T, H), T = N*L

    scale = 1.0 / math.sqrt(K)

    # --- encoder layers (static unroll; weights stacked on leading axis) ----
    for ly in range(num_layers):
        h = _layernorm(x, ln1w_ref[ly], ln1b_ref[ly], eps)

        # fused per-channel QKV: one (H, 3H) block-diagonal matmul
        qkv = (
            jnp.dot(h, wqkv_ref[ly], preferred_element_type=jnp.float32)
            + bqkv_ref[ly]
        )
        q = qkv[:, :H]
        k = qkv[:, H:2 * H]
        v = qkv[:, 2 * H:]
        qs = q * scale

        # criss-cross channel attention with full-width rolled tensors.
        # s[d] at channel slot cq holds score(cq, ck=(cq+d)%C); softmax across d
        # is the per-cq softmax over ck; attn*v rolled back by d accumulates
        # context[ck] = sum_cq attn[cq,ck]*v_cq  (channel-major in ck).
        s = [qs * _roll_lanes(k, d * K, H) for d in range(C)]
        m = s[0]
        for d in range(1, C):
            m = jnp.maximum(m, s[d])
        e = [jnp.exp(sd - m) for sd in s]
        denom = e[0]
        for d in range(1, C):
            denom = denom + e[d]
        inv = pl.reciprocal(denom, approx=True)

        ctx = (e[0] * inv) * v
        for d in range(1, C):
            ctx = ctx + _roll_lanes((e[d] * inv) * v, H - d * K, H)

        attn_out = (
            jnp.dot(ctx, wf_ref[ly], preferred_element_type=jnp.float32)
            + bf_ref[ly]
        )
        x = attn_out + x                                       # residual 1

        y = _layernorm(x, ln2w_ref[ly], ln2b_ref[ly], eps)
        y = jnp.dot(y, w1_ref[ly], preferred_element_type=jnp.float32) + b1_ref[ly]
        y = _gelu_exact(y)
        y = jnp.dot(y, w2_ref[ly], preferred_element_type=jnp.float32) + b2_ref[ly]
        x = x + y                                              # residual 2
        # TODO(synk): nn.Dropout layers (p=0.0) are identity here; no RNG dropout.

    # --- final LN, per-image token-sum pooling, classifier head -------------
    y = _layernorm(x, lnfw_ref[...], lnfb_ref[...], eps)
    pooled = jnp.concatenate(
        [jnp.sum(y[n * L:(n + 1) * L, :], axis=0, keepdims=True) for n in range(N)],
        axis=0,
    )                                                          # (N, H)
    o_ref[...] = (
        jnp.dot(pooled, hw_ref[...], preferred_element_type=jnp.float32)
        + hb_ref[...]
    )


# ----------------------------------------------------------------------------
# Host-side glue + the single pallas_call
# ----------------------------------------------------------------------------
def _zero_idx(nd, *_):
    return (0,) * nd


def extract_patches_with_cls_rows(x_nchw, p, L):
    """(N,C,H,W) -> (N*L, C*p*p); row n*L is all-zero (class-token slot)."""
    N, C, Hh, Ww = x_nchw.shape
    nh, nw = Hh // p, Ww // p
    xr = x_nchw.reshape(N, C, nh, p, nw, p).transpose(0, 2, 4, 1, 3, 5)
    pat = xr.reshape(N, nh * nw, C * p * p)       # feature idx = c*p*p + u*p + v
    zero = jnp.zeros((N, 1, C * p * p), pat.dtype)
    return jnp.concatenate([zero, pat], axis=1).reshape(N * L, C * p * p)


def vit_forward_pallas(x_nchw, kp, *, C, K, p, L, num_classes, num_layers):
    N = x_nchw.shape[0]
    patches = extract_patches_with_cls_rows(x_nchw, p, L)      # (N*L, C*p*p)

    args = (
        patches, kp["patch_w"], kp["addterm"],
        kp["ln1w"], kp["ln1b"], kp["wqkv"], kp["bqkv"], kp["wf"], kp["bf"],
        kp["ln2w"], kp["ln2b"], kp["w1"], kp["b1"], kp["w2"], kp["b2"],
        kp["lnf_w"], kp["lnf_b"], kp["head_w"], kp["head_b"],
    )
    kern = functools.partial(
        _vit_fused_kernel, N=N, L=L, C=C, K=K, num_layers=num_layers, eps=_EPS
    )
    out_sds = jax.ShapeDtypeStruct((N, num_classes), jnp.float32)
    in_specs = [
        pl.BlockSpec(a.shape, functools.partial(_zero_idx, a.ndim)) for a in args
    ]
    out_specs = pl.BlockSpec(out_sds.shape, functools.partial(_zero_idx, 2))
    return pl.pallas_call(
        kern, out_shape=out_sds, in_specs=in_specs, out_specs=out_specs
    )(*args)


# ----------------------------------------------------------------------------
# Deterministic parameter init (torch-shaped) + kernel-friendly assembly
# ----------------------------------------------------------------------------
def init_params(key, *, C, K, M, p, L, num_layers, num_classes):
    H = C * K
    pp = p * p
    # 3 draws outside the layer loop + 8 per layer (+1 spare).
    keys = iter(jax.random.split(key, 4 + 8 * num_layers))

    def nrm(shape, std):
        return (std * jax.random.normal(next(keys), shape)).astype(jnp.float32)

    raw = {
        "conv_w": nrm((C * K, pp), math.sqrt(1.0 / (C * pp))),   # (C*K,1,p,p) flat
        "conv_b": jnp.zeros((C * K,), jnp.float32),
        "class_token": jnp.zeros((1, 1, H), jnp.float32),
        "pos_emb": nrm((1, L, H), 0.02),
        "layers": [],
        "lnf_w": jnp.ones((H,), jnp.float32),
        "lnf_b": jnp.zeros((H,), jnp.float32),
    }
    for _ in range(num_layers):
        raw["layers"].append(dict(
            ln1_w=jnp.ones((H,), jnp.float32), ln1_b=jnp.zeros((H,), jnp.float32),
            qkv_w=nrm((C, 3 * K, K), 1.0 / math.sqrt(K)),
            qkv_b=nrm((C, 3 * K), 0.02),
            fc_w=nrm((K, K), 1.0 / math.sqrt(K)),
            fc_b=nrm((K,), 0.02),
            ln2_w=jnp.ones((H,), jnp.float32), ln2_b=jnp.zeros((H,), jnp.float32),
            mlp_w1=nrm((M, H), math.sqrt(2.0 / (H + M))),
            mlp_b1=nrm((M,), 1e-6),
            mlp_w2=nrm((H, M), math.sqrt(2.0 / (H + M))),
            mlp_b2=nrm((H,), 1e-6),
        ))
    raw["head_w"] = nrm((num_classes, H), 0.02)
    raw["head_b"] = jnp.zeros((num_classes,), jnp.float32)
    return raw


def _block_diag(blocks):
    r = sum(b.shape[0] for b in blocks)
    c = sum(b.shape[1] for b in blocks)
    out = jnp.zeros((r, c), jnp.float32)
    ro = co = 0
    for b in blocks:
        out = out.at[ro:ro + b.shape[0], co:co + b.shape[1]].set(b)
        ro += b.shape[0]
        co += b.shape[1]
    return out


def assemble_kernel_params(raw, *, N, C, K, p, L):
    H = C * K
    pp = p * p
    convw = raw["conv_w"].reshape(C, K, pp)
    patch_w = _block_diag([convw[c].T for c in range(C)])        # (C*pp, H)

    # Fold class token, positional embedding and conv bias into one add term.
    add = jnp.broadcast_to(raw["pos_emb"], (N, L, H))
    add = add.at[:, 0, :].add(raw["class_token"][0, 0])
    add = add.at[:, 1:, :].add(raw["conv_b"][None, None, :])
    addterm = add.reshape(N * L, H).astype(jnp.float32)

    def stack(fn):
        return jnp.stack([fn(lyr) for lyr in raw["layers"]], axis=0)

    kp = {
        "patch_w": patch_w,
        "addterm": addterm,
        "ln1w": stack(lambda l: l["ln1_w"][None, :]),
        "ln1b": stack(lambda l: l["ln1_b"][None, :]),
        # fused Q|K|V block-diagonal weight: (H, 3H)
        "wqkv": stack(lambda l: jnp.concatenate([
            _block_diag([l["qkv_w"][c, :K, :].T for c in range(C)]),
            _block_diag([l["qkv_w"][c, K:2 * K, :].T for c in range(C)]),
            _block_diag([l["qkv_w"][c, 2 * K:, :].T for c in range(C)]),
        ], axis=-1)),
        "bqkv": stack(lambda l: jnp.concatenate([
            l["qkv_b"][:, :K].reshape(1, H),
            l["qkv_b"][:, K:2 * K].reshape(1, H),
            l["qkv_b"][:, 2 * K:].reshape(1, H),
        ], axis=-1)),
        "wf": stack(lambda l: _block_diag([l["fc_w"].T for _ in range(C)])),
        "bf": stack(lambda l: jnp.tile(l["fc_b"], C)[None, :]),
        "ln2w": stack(lambda l: l["ln2_w"][None, :]),
        "ln2b": stack(lambda l: l["ln2_b"][None, :]),
        "w1": stack(lambda l: l["mlp_w1"].T),
        "b1": stack(lambda l: l["mlp_b1"][None, :]),
        "w2": stack(lambda l: l["mlp_w2"].T),
        "b2": stack(lambda l: l["mlp_b2"][None, :]),
        "lnf_w": raw["lnf_w"][None, :],
        "lnf_b": raw["lnf_b"][None, :],
        "head_w": raw["head_w"].T,
        "head_b": raw["head_b"][None, :],
    }
    return kp


# ----------------------------------------------------------------------------
# Pure-JAX reference (faithful to the PyTorch ops) for a correctness check
# ----------------------------------------------------------------------------
def _ln_ref(x, w, b, eps=_EPS):
    mu = jnp.mean(x, -1, keepdims=True)
    var = jnp.mean((x - mu) ** 2, -1, keepdims=True)
    return (x - mu) / jnp.sqrt(var + eps) * w + b


def vit_forward_ref(x_nchw, raw, *, C, K, p, L, num_classes):
    N = x_nchw.shape[0]
    H = C * K
    nh, nw = x_nchw.shape[2] // p, x_nchw.shape[3] // p
    patches = x_nchw.reshape(N, C, nh, p, nw, p).transpose(0, 1, 2, 4, 3, 5)
    patches = patches.reshape(N, C, nh * nw, p * p)
    Wc = raw["conv_w"].reshape(C, K, p * p)
    conv = jnp.einsum("ncle,cke->nclk", patches, Wc) + raw["conv_b"].reshape(1, C, 1, K)
    tok = conv.transpose(0, 2, 1, 3).reshape(N, nh * nw, H)
    cls = jnp.broadcast_to(raw["class_token"], (N, 1, H))
    x = jnp.concatenate([cls, tok], axis=1) + raw["pos_emb"]

    for lyr in raw["layers"]:
        h = _ln_ref(x, lyr["ln1_w"], lyr["ln1_b"])
        qs, ks, vs = [], [], []
        for c in range(C):
            xc = h[..., c * K:(c + 1) * K]
            y = xc @ lyr["qkv_w"][c].T + lyr["qkv_b"][c]
            qs.append(y[..., :K]); ks.append(y[..., K:2 * K]); vs.append(y[..., 2 * K:])
        q = jnp.stack(qs, -1)[..., None]          # (N,L,K,C,1)
        kk = jnp.stack(ks, -1)[..., None, :]      # (N,L,K,1,C)
        v = jnp.stack(vs, -1)                     # (N,L,K,C)
        scores = jnp.matmul(q, kk) / math.sqrt(K)
        attn = jax.nn.softmax(scores, axis=-1)
        ctx = jnp.einsum("ijklm,ijkl->ijkm", attn, v)
        ctx = jnp.swapaxes(ctx, -2, -1)           # (N,L,C,K)
        out = ctx @ lyr["fc_w"].T + lyr["fc_b"]
        x = out.reshape(N, L, H) + x
        y2 = _ln_ref(x, lyr["ln2_w"], lyr["ln2_b"])
        y2 = y2 @ lyr["mlp_w1"].T + lyr["mlp_b1"]
        y2 = 0.5 * y2 * (1.0 + jax.lax.erf(y2 / _SQRT2))
        y2 = y2 @ lyr["mlp_w2"].T + lyr["mlp_b2"]
        x = x + y2

    x = _ln_ref(x, raw["lnf_w"], raw["lnf_b"])
    pooled = jnp.sum(x, axis=1)
    return pooled @ raw["head_w"].T + raw["head_b"]


# ----------------------------------------------------------------------------
if __name__ == "__main__":
    IMAGE_SIZE, PATCH = 16, 4
    IN_CHANNELS, K_FACTOR = 4, 8
    HIDDEN = IN_CHANNELS * K_FACTOR            # hidden_dim must equal C * k_factor
    MLP_DIM, NUM_LAYERS, NUM_CLASSES = 64, 2, 1
    SEQ_LEN = (IMAGE_SIZE // PATCH) ** 2 + 1   # + class token

    key = jax.random.PRNGKey(0)
    kx, kparams = jax.random.split(key)
    x = jax.random.normal(kx, (2, IN_CHANNELS, IMAGE_SIZE, IMAGE_SIZE), jnp.float32)

    raw = init_params(kparams, C=IN_CHANNELS, K=K_FACTOR, M=MLP_DIM, p=PATCH,
                      L=SEQ_LEN, num_layers=NUM_LAYERS, num_classes=NUM_CLASSES)
    kp = assemble_kernel_params(raw, N=x.shape[0], C=IN_CHANNELS, K=K_FACTOR,
                                p=PATCH, L=SEQ_LEN)

    out = vit_forward_pallas(x, kp, C=IN_CHANNELS, K=K_FACTOR, p=PATCH,
                             L=SEQ_LEN, num_classes=NUM_CLASSES,
                             num_layers=NUM_LAYERS)
    out = jax.block_until_ready(out)
    assert out.shape == (2, NUM_CLASSES)

    with jax.default_matmul_precision("float32"):
        ref = vit_forward_ref(x, raw, C=IN_CHANNELS, K=K_FACTOR, p=PATCH,
                              L=SEQ_LEN, num_classes=NUM_CLASSES)
    ref = jax.block_until_ready(ref)
    max_err = float(jnp.max(jnp.abs(out - ref)))
    assert max_err < 1e-2, f"mismatch vs reference: {max_err}"

    print("KERNEL_OK")
</pallas_src>

<mosaic_0001>
module attributes {stable_mosaic.version = 11 : i64} {
  func.func @_vit_fused_kernel(%arg0: memref<34x64xf32, #tpu.memory_space<vmem>>, %arg1: memref<64x32xf32, #tpu.memory_space<vmem>>, %arg2: memref<34x32xf32, #tpu.memory_space<vmem>>, %arg3: memref<2x1x32xf32, #tpu.memory_space<vmem>>, %arg4: memref<2x1x32xf32, #tpu.memory_space<vmem>>, %arg5: memref<2x32x96xf32, #tpu.memory_space<vmem>>, %arg6: memref<2x1x96xf32, #tpu.memory_space<vmem>>, %arg7: memref<2x32x32xf32, #tpu.memory_space<vmem>>, %arg8: memref<2x1x32xf32, #tpu.memory_space<vmem>>, %arg9: memref<2x1x32xf32, #tpu.memory_space<vmem>>, %arg10: memref<2x1x32xf32, #tpu.memory_space<vmem>>, %arg11: memref<2x32x64xf32, #tpu.memory_space<vmem>>, %arg12: memref<2x1x64xf32, #tpu.memory_space<vmem>>, %arg13: memref<2x64x32xf32, #tpu.memory_space<vmem>>, %arg14: memref<2x1x32xf32, #tpu.memory_space<vmem>>, %arg15: memref<1x32xf32, #tpu.memory_space<vmem>>, %arg16: memref<1x32xf32, #tpu.memory_space<vmem>>, %arg17: memref<32x1xf32, #tpu.memory_space<vmem>>, %arg18: memref<1x1xf32, #tpu.memory_space<vmem>>, %arg19: memref<2x1xf32, #tpu.memory_space<vmem>>) attributes {dimension_semantics = [], scalar_prefetch = 0 : i64, scratch_operands = 0 : i64, tpu.core_type = #tpu.core_type<tc>} {
    %c0 = arith.constant 0 : index
    %c0_0 = arith.constant 0 : index
    %0 = vector.load %arg0[%c0, %c0_0] : memref<34x64xf32, #tpu.memory_space<vmem>>, vector<34x64xf32>
    %c0_1 = arith.constant 0 : index
    %c0_2 = arith.constant 0 : index
    %1 = vector.load %arg1[%c0_1, %c0_2] : memref<64x32xf32, #tpu.memory_space<vmem>>, vector<64x32xf32>
    %cst = arith.constant dense<0.000000e+00> : vector<34x32xf32>
    %2 = tpu.matmul %0, %1, %cst {dimension_numbers = #tpu.dot_dimension_numbers<[1], [0], [0], [1], [0, 0, 1, 1], [], []>} : vector<34x64xf32>, vector<64x32xf32>, vector<34x32xf32> -> vector<34x32xf32>
    %c0_3 = arith.constant 0 : index
    %c0_4 = arith.constant 0 : index
    %3 = vector.load %arg2[%c0_3, %c0_4] : memref<34x32xf32, #tpu.memory_space<vmem>>, vector<34x32xf32>
    %4 = arith.addf %2, %3 : vector<34x32xf32>
    %c0_5 = arith.constant 0 : index
    %c0_6 = arith.constant 0 : index
    %c0_7 = arith.constant 0 : index
    %5 = vector.load %arg3[%c0_5, %c0_6, %c0_7] : memref<2x1x32xf32, #tpu.memory_space<vmem>>, vector<1x1x32xf32>
    %6 = vector.shape_cast %5 : vector<1x1x32xf32> to vector<1x32xf32>
    %c0_8 = arith.constant 0 : index
    %c0_9 = arith.constant 0 : index
    %c0_10 = arith.constant 0 : index
    %7 = vector.load %arg4[%c0_8, %c0_9, %c0_10] : memref<2x1x32xf32, #tpu.memory_space<vmem>>, vector<1x1x32xf32>
    %8 = vector.shape_cast %7 : vector<1x1x32xf32> to vector<1x32xf32>
    %cst_11 = arith.constant dense<0.000000e+00> : vector<34xf32>
    %9 = vector.multi_reduction <add>, %4, %cst_11 [1] : vector<34x32xf32> to vector<34xf32>
    %10 = vector.shape_cast %9 : vector<34xf32> to vector<34x1xf32>
    %cst_12 = arith.constant 3.200000e+01 : f32
    %11 = vector.broadcast %cst_12 : f32 to vector<34x1xf32>
    %12 = arith.divf %10, %11 : vector<34x1xf32>
    %13 = vector.broadcast %12 : vector<34x1xf32> to vector<34x32xf32>
    %14 = arith.subf %4, %13 : vector<34x32xf32>
    %15 = arith.mulf %14, %14 : vector<34x32xf32>
    %cst_13 = arith.constant dense<0.000000e+00> : vector<34xf32>
    %16 = vector.multi_reduction <add>, %15, %cst_13 [1] : vector<34x32xf32> to vector<34xf32>
    %17 = vector.shape_cast %16 : vector<34xf32> to vector<34x1xf32>
    %cst_14 = arith.constant 3.200000e+01 : f32
    %18 = vector.broadcast %cst_14 : f32 to vector<34x1xf32>
    %19 = arith.divf %17, %18 : vector<34x1xf32>
    %cst_15 = arith.constant 9.99999997E-7 : f32
    %20 = vector.broadcast %cst_15 : f32 to vector<34x1xf32>
    %21 = arith.addf %19, %20 : vector<34x1xf32>
    %22 = math.rsqrt %21 : vector<34x1xf32>
    %23 = vector.broadcast %22 : vector<34x1xf32> to vector<34x32xf32>
    %24 = arith.mulf %14, %23 : vector<34x32xf32>
    %25 = vector.broadcast %6 : vector<1x32xf32> to vector<34x32xf32>
    %26 = arith.mulf %24, %25 : vector<34x32xf32>
    %27 = vector.broadcast %8 : vector<1x32xf32> to vector<34x32xf32>
    %28 = arith.addf %26, %27 : vector<34x32xf32>
    %c0_16 = arith.constant 0 : index
    %c0_17 = arith.constant 0 : index
    %c0_18 = arith.constant 0 : index
    %29 = vector.load %arg5[%c0_16, %c0_17, %c0_18] : memref<2x32x96xf32, #tpu.memory_space<vmem>>, vector<1x32x96xf32>
    %30 = vector.shape_cast %29 : vector<1x32x96xf32> to vector<32x96xf32>
    %cst_19 = arith.constant dense<0.000000e+00> : vector<34x96xf32>
    %31 = tpu.matmul %28, %30, %cst_19 {dimension_numbers = #tpu.dot_dimension_numbers<[1], [0], [0], [1], [0, 0, 1, 1], [], []>} : vector<34x32xf32>, vector<32x96xf32>, vector<34x96xf32> -> vector<34x96xf32>
    %c0_20 = arith.constant 0 : index
    %c0_21 = arith.constant 0 : index
    %c0_22 = arith.constant 0 : index
    %32 = vector.load %arg6[%c0_20, %c0_21, %c0_22] : memref<2x1x96xf32, #tpu.memory_space<vmem>>, vector<1x1x96xf32>
    %33 = vector.shape_cast %32 : vector<1x1x96xf32> to vector<1x96xf32>
    %34 = vector.broadcast %33 : vector<1x96xf32> to vector<34x96xf32>
    %35 = arith.addf %31, %34 : vector<34x96xf32>
    %36 = vector.extract_strided_slice %35 {offsets = [0, 0], sizes = [34, 32], strides = [1, 1]} : vector<34x96xf32> to vector<34x32xf32>
    %37 = vector.extract_strided_slice %35 {offsets = [0, 32], sizes = [34, 32], strides = [1, 1]} : vector<34x96xf32> to vector<34x32xf32>
    %38 = vector.extract_strided_slice %35 {offsets = [0, 64], sizes = [34, 32], strides = [1, 1]} : vector<34x96xf32> to vector<34x32xf32>
    %cst_23 = arith.constant 0.353553385 : f32
    %39 = vector.broadcast %cst_23 : f32 to vector<34x32xf32>
    %40 = arith.mulf %36, %39 : vector<34x32xf32>
    %41 = arith.mulf %40, %37 : vector<34x32xf32>
    %42 = vector.extract_strided_slice %37 {offsets = [0, 8], sizes = [34, 24], strides = [1, 1]} : vector<34x32xf32> to vector<34x24xf32>
    %43 = vector.extract_strided_slice %37 {offsets = [0, 0], sizes = [34, 8], strides = [1, 1]} : vector<34x32xf32> to vector<34x8xf32>
    %44 = tpu.concatenate %42, %43 in 1 : vector<34x24xf32>, vector<34x8xf32> -> vector<34x32xf32>
    %45 = arith.mulf %40, %44 : vector<34x32xf32>
    %46 = vector.extract_strided_slice %37 {offsets = [0, 16], sizes = [34, 16], strides = [1, 1]} : vector<34x32xf32> to vector<34x16xf32>
    %47 = vector.extract_strided_slice %37 {offsets = [0, 0], sizes = [34, 16], strides = [1, 1]} : vector<34x32xf32> to vector<34x16xf32>
    %48 = tpu.concatenate %46, %47 in 1 : vector<34x16xf32>, vector<34x16xf32> -> vector<34x32xf32>
    %49 = arith.mulf %40, %48 : vector<34x32xf32>
    %50 = vector.extract_strided_slice %37 {offsets = [0, 24], sizes = [34, 8], strides = [1, 1]} : vector<34x32xf32> to vector<34x8xf32>
    %51 = vector.extract_strided_slice %37 {offsets = [0, 0], sizes = [34, 24], strides = [1, 1]} : vector<34x32xf32> to vector<34x24xf32>
    %52 = tpu.concatenate %50, %51 in 1 : vector<34x8xf32>, vector<34x24xf32> -> vector<34x32xf32>
    %53 = arith.mulf %40, %52 : vector<34x32xf32>
    %54 = arith.maximumf %41, %45 : vector<34x32xf32>
    %55 = arith.maximumf %54, %49 : vector<34x32xf32>
    %56 = arith.maximumf %55, %53 : vector<34x32xf32>
    %57 = arith.subf %41, %56 : vector<34x32xf32>
    %58 = math.exp %57 : vector<34x32xf32>
    %59 = arith.subf %45, %56 : vector<34x32xf32>
    %60 = math.exp %59 : vector<34x32xf32>
    %61 = arith.subf %49, %56 : vector<34x32xf32>
    %62 = math.exp %61 : vector<34x32xf32>
    %63 = arith.subf %53, %56 : vector<34x32xf32>
    %64 = math.exp %63 : vector<34x32xf32>
    %65 = arith.addf %58, %60 : vector<34x32xf32>
    %66 = arith.addf %65, %62 : vector<34x32xf32>
    %67 = arith.addf %66, %64 : vector<34x32xf32>
    %68 = tpu.reciprocal %67 {approx = true} : vector<34x32xf32> -> vector<34x32xf32>
    %69 = arith.mulf %58, %68 : vector<34x32xf32>
    %70 = arith.mulf %69, %38 : vector<34x32xf32>
    %71 = arith.mulf %60, %68 : vector<34x32xf32>
    %72 = arith.mulf %71, %38 : vector<34x32xf32>
    %73 = vector.extract_strided_slice %72 {offsets = [0, 24], sizes = [34, 8], strides = [1, 1]} : vector<34x32xf32> to vector<34x8xf32>
    %74 = vector.extract_strided_slice %72 {offsets = [0, 0], sizes = [34, 24], strides = [1, 1]} : vector<34x32xf32> to vector<34x24xf32>
    %75 = tpu.concatenate %73, %74 in 1 : vector<34x8xf32>, vector<34x24xf32> -> vector<34x32xf32>
    %76 = arith.addf %70, %75 : vector<34x32xf32>
    %77 = arith.mulf %62, %68 : vector<34x32xf32>
    %78 = arith.mulf %77, %38 : vector<34x32xf32>
    %79 = vector.extract_strided_slice %78 {offsets = [0, 16], sizes = [34, 16], strides = [1, 1]} : vector<34x32xf32> to vector<34x16xf32>
    %80 = vector.extract_strided_slice %78 {offsets = [0, 0], sizes = [34, 16], strides = [1, 1]} : vector<34x32xf32> to vector<34x16xf32>
    %81 = tpu.concatenate %79, %80 in 1 : vector<34x16xf32>, vector<34x16xf32> -> vector<34x32xf32>
    %82 = arith.addf %76, %81 : vector<34x32xf32>
    %83 = arith.mulf %64, %68 : vector<34x32xf32>
    %84 = arith.mulf %83, %38 : vector<34x32xf32>
    %85 = vector.extract_strided_slice %84 {offsets = [0, 8], sizes = [34, 24], strides = [1, 1]} : vector<34x32xf32> to vector<34x24xf32>
    %86 = vector.extract_strided_slice %84 {offsets = [0, 0], sizes = [34, 8], strides = [1, 1]} : vector<34x32xf32> to vector<34x8xf32>
    %87 = tpu.concatenate %85, %86 in 1 : vector<34x24xf32>, vector<34x8xf32> -> vector<34x32xf32>
    %88 = arith.addf %82, %87 : vector<34x32xf32>
    %c0_24 = arith.constant 0 : index
    %c0_25 = arith.constant 0 : index
    %c0_26 = arith.constant 0 : index
    %89 = vector.load %arg7[%c0_24, %c0_25, %c0_26] : memref<2x32x32xf32, #tpu.memory_space<vmem>>, vector<1x32x32xf32>
    %90 = vector.shape_cast %89 : vector<1x32x32xf32> to vector<32x32xf32>
    %cst_27 = arith.constant dense<0.000000e+00> : vector<34x32xf32>
    %91 = tpu.matmul %88, %90, %cst_27 {dimension_numbers = #tpu.dot_dimension_numbers<[1], [0], [0], [1], [0, 0, 1, 1], [], []>} : vector<34x32xf32>, vector<32x32xf32>, vector<34x32xf32> -> vector<34x32xf32>
    %c0_28 = arith.constant 0 : index
    %c0_29 = arith.constant 0 : index
    %c0_30 = arith.constant 0 : index
    %92 = vector.load %arg8[%c0_28, %c0_29, %c0_30] : memref<2x1x32xf32, #tpu.memory_space<vmem>>, vector<1x1x32xf32>
    %93 = vector.shape_cast %92 : vector<1x1x32xf32> to vector<1x32xf32>
    %94 = vector.broadcast %93 : vector<1x32xf32> to vector<34x32xf32>
    %95 = arith.addf %91, %94 : vector<34x32xf32>
    %96 = arith.addf %95, %4 : vector<34x32xf32>
    %c0_31 = arith.constant 0 : index
    %c0_32 = arith.constant 0 : index
    %c0_33 = arith.constant 0 : index
    %97 = vector.load %arg9[%c0_31, %c0_32, %c0_33] : memref<2x1x32xf32, #tpu.memory_space<vmem>>, vector<1x1x32xf32>
    %98 = vector.shape_cast %97 : vector<1x1x32xf32> to vector<1x32xf32>
    %c0_34 = arith.constant 0 : index
    %c0_35 = arith.constant 0 : index
    %c0_36 = arith.constant 0 : index
    %99 = vector.load %arg10[%c0_34, %c0_35, %c0_36] : memref<2x1x32xf32, #tpu.memory_space<vmem>>, vector<1x1x32xf32>
    %100 = vector.shape_cast %99 : vector<1x1x32xf32> to vector<1x32xf32>
    %cst_37 = arith.constant dense<0.000000e+00> : vector<34xf32>
    %101 = vector.multi_reduction <add>, %96, %cst_37 [1] : vector<34x32xf32> to vector<34xf32>
    %102 = vector.shape_cast %101 : vector<34xf32> to vector<34x1xf32>
    %cst_38 = arith.constant 3.200000e+01 : f32
    %103 = vector.broadcast %cst_38 : f32 to vector<34x1xf32>
    %104 = arith.divf %102, %103 : vector<34x1xf32>
    %105 = vector.broadcast %104 : vector<34x1xf32> to vector<34x32xf32>
    %106 = arith.subf %96, %105 : vector<34x32xf32>
    %107 = arith.mulf %106, %106 : vector<34x32xf32>
    %cst_39 = arith.constant dense<0.000000e+00> : vector<34xf32>
    %108 = vector.multi_reduction <add>, %107, %cst_39 [1] : vector<34x32xf32> to vector<34xf32>
    %109 = vector.shape_cast %108 : vector<34xf32> to vector<34x1xf32>
    %cst_40 = arith.constant 3.200000e+01 : f32
    %110 = vector.broadcast %cst_40 : f32 to vector<34x1xf32>
    %111 = arith.divf %109, %110 : vector<34x1xf32>
    %cst_41 = arith.constant 9.99999997E-7 : f32
    %112 = vector.broadcast %cst_41 : f32 to vector<34x1xf32>
    %113 = arith.addf %111, %112 : vector<34x1xf32>
    %114 = math.rsqrt %113 : vector<34x1xf32>
    %115 = vector.broadcast %114 : vector<34x1xf32> to vector<34x32xf32>
    %116 = arith.mulf %106, %115 : vector<34x32xf32>
    %117 = vector.broadcast %98 : vector<1x32xf32> to vector<34x32xf32>
    %118 = arith.mulf %116, %117 : vector<34x32xf32>
    %119 = vector.broadcast %100 : vector<1x32xf32> to vector<34x32xf32>
    %120 = arith.addf %118, %119 : vector<34x32xf32>
    %c0_42 = arith.constant 0 : index
    %c0_43 = arith.constant 0 : index
    %c0_44 = arith.constant 0 : index
    %121 = vector.load %arg11[%c0_42, %c0_43, %c0_44] : memref<2x32x64xf32, #tpu.memory_space<vmem>>, vector<1x32x64xf32>
    %122 = vector.shape_cast %121 : vector<1x32x64xf32> to vector<32x64xf32>
    %cst_45 = arith.constant dense<0.000000e+00> : vector<34x64xf32>
    %123 = tpu.matmul %120, %122, %cst_45 {dimension_numbers = #tpu.dot_dimension_numbers<[1], [0], [0], [1], [0, 0, 1, 1], [], []>} : vector<34x32xf32>, vector<32x64xf32>, vector<34x64xf32> -> vector<34x64xf32>
    %c0_46 = arith.constant 0 : index
    %c0_47 = arith.constant 0 : index
    %c0_48 = arith.constant 0 : index
    %124 = vector.load %arg12[%c0_46, %c0_47, %c0_48] : memref<2x1x64xf32, #tpu.memory_space<vmem>>, vector<1x1x64xf32>
    %125 = vector.shape_cast %124 : vector<1x1x64xf32> to vector<1x64xf32>
    %126 = vector.broadcast %125 : vector<1x64xf32> to vector<34x64xf32>
    %127 = arith.addf %123, %126 : vector<34x64xf32>
    %cst_49 = arith.constant 5.000000e-01 : f32
    %128 = vector.broadcast %cst_49 : f32 to vector<34x64xf32>
    %129 = arith.mulf %128, %127 : vector<34x64xf32>
    %cst_50 = arith.constant 0.707106769 : f32
    %130 = vector.broadcast %cst_50 : f32 to vector<34x64xf32>
    %131 = arith.mulf %127, %130 : vector<34x64xf32>
    %132 = math.absf %131 : vector<34x64xf32>
    %cst_51 = arith.constant 0.327591091 : f32
    %133 = vector.broadcast %cst_51 : f32 to vector<34x64xf32>
    %134 = arith.mulf %133, %132 : vector<34x64xf32>
    %cst_52 = arith.constant 1.000000e+00 : f32
    %135 = vector.broadcast %cst_52 : f32 to vector<34x64xf32>
    %136 = arith.addf %135, %134 : vector<34x64xf32>
    %cst_53 = arith.constant 1.000000e+00 : f32
    %137 = vector.broadcast %cst_53 : f32 to vector<34x64xf32>
    %138 = arith.divf %137, %136 : vector<34x64xf32>
    %cst_54 = arith.constant 1.06140542 : f32
    %139 = vector.broadcast %cst_54 : f32 to vector<34x64xf32>
    %140 = arith.mulf %139, %138 : vector<34x64xf32>
    %cst_55 = arith.constant -1.45315206 : f32
    %141 = vector.broadcast %cst_55 : f32 to vector<34x64xf32>
    %142 = arith.addf %140, %141 : vector<34x64xf32>
    %143 = arith.mulf %142, %138 : vector<34x64xf32>
    %cst_56 = arith.constant 1.42141378 : f32
    %144 = vector.broadcast %cst_56 : f32 to vector<34x64xf32>
    %145 = arith.addf %143, %144 : vector<34x64xf32>
    %146 = arith.mulf %145, %138 : vector<34x64xf32>
    %cst_57 = arith.constant -0.284496725 : f32
    %147 = vector.broadcast %cst_57 : f32 to vector<34x64xf32>
    %148 = arith.addf %146, %147 : vector<34x64xf32>
    %149 = arith.mulf %148, %138 : vector<34x64xf32>
    %cst_58 = arith.constant 0.254829586 : f32
    %150 = vector.broadcast %cst_58 : f32 to vector<34x64xf32>
    %151 = arith.addf %149, %150 : vector<34x64xf32>
    %152 = arith.mulf %151, %138 : vector<34x64xf32>
    %cst_59 = arith.constant 0.000000e+00 : f32
    %153 = vector.broadcast %cst_59 : f32 to vector<34x64xf32>
    %154 = arith.subf %153, %132 : vector<34x64xf32>
    %155 = arith.mulf %154, %132 : vector<34x64xf32>
    %156 = math.exp %155 : vector<34x64xf32>
    %157 = arith.mulf %152, %156 : vector<34x64xf32>
    %cst_60 = arith.constant 1.000000e+00 : f32
    %158 = vector.broadcast %cst_60 : f32 to vector<34x64xf32>
    %159 = arith.subf %158, %157 : vector<34x64xf32>
    %cst_61 = arith.constant 0.000000e+00 : f32
    %160 = vector.broadcast %cst_61 : f32 to vector<34x64xf32>
    %161 = arith.cmpf oge, %131, %160 : vector<34x64xf32>
    %cst_62 = arith.constant 0.000000e+00 : f32
    %162 = vector.broadcast %cst_62 : f32 to vector<34x64xf32>
    %163 = arith.subf %162, %159 : vector<34x64xf32>
    %164 = arith.select %161, %159, %163 : vector<34x64xi1>, vector<34x64xf32>
    %cst_63 = arith.constant 1.000000e+00 : f32
    %165 = vector.broadcast %cst_63 : f32 to vector<34x64xf32>
    %166 = arith.addf %165, %164 : vector<34x64xf32>
    %167 = arith.mulf %129, %166 : vector<34x64xf32>
    %c0_64 = arith.constant 0 : index
    %c0_65 = arith.constant 0 : index
    %c0_66 = arith.constant 0 : index
    %168 = vector.load %arg13[%c0_64, %c0_65, %c0_66] : memref<2x64x32xf32, #tpu.memory_space<vmem>>, vector<1x64x32xf32>
    %169 = vector.shape_cast %168 : vector<1x64x32xf32> to vector<64x32xf32>
    %cst_67 = arith.constant dense<0.000000e+00> : vector<34x32xf32>
    %170 = tpu.matmul %167, %169, %cst_67 {dimension_numbers = #tpu.dot_dimension_numbers<[1], [0], [0], [1], [0, 0, 1, 1], [], []>} : vector<34x64xf32>, vector<64x32xf32>, vector<34x32xf32> -> vector<34x32xf32>
    %c0_68 = arith.constant 0 : index
    %c0_69 = arith.constant 0 : index
    %c0_70 = arith.constant 0 : index
    %171 = vector.load %arg14[%c0_68, %c0_69, %c0_70] : memref<2x1x32xf32, #tpu.memory_space<vmem>>, vector<1x1x32xf32>
    %172 = vector.shape_cast %171 : vector<1x1x32xf32> to vector<1x32xf32>
    %173 = vector.broadcast %172 : vector<1x32xf32> to vector<34x32xf32>
    %174 = arith.addf %170, %173 : vector<34x32xf32>
    %175 = arith.addf %96, %174 : vector<34x32xf32>
    %c1 = arith.constant 1 : index
    %c0_71 = arith.constant 0 : index
    %c0_72 = arith.constant 0 : index
    %176 = vector.load %arg3[%c1, %c0_71, %c0_72] : memref<2x1x32xf32, #tpu.memory_space<vmem>>, vector<1x1x32xf32>
    %177 = vector.shape_cast %176 : vector<1x1x32xf32> to vector<1x32xf32>
    %c1_73 = arith.constant 1 : index
    %c0_74 = arith.constant 0 : index
    %c0_75 = arith.constant 0 : index
    %178 = vector.load %arg4[%c1_73, %c0_74, %c0_75] : memref<2x1x32xf32, #tpu.memory_space<vmem>>, vector<1x1x32xf32>
    %179 = vector.shape_cast %178 : vector<1x1x32xf32> to vector<1x32xf32>
    %cst_76 = arith.constant dense<0.000000e+00> : vector<34xf32>
    %180 = vector.multi_reduction <add>, %175, %cst_76 [1] : vector<34x32xf32> to vector<34xf32>
    %181 = vector.shape_cast %180 : vector<34xf32> to vector<34x1xf32>
    %cst_77 = arith.constant 3.200000e+01 : f32
    %182 = vector.broadcast %cst_77 : f32 to vector<34x1xf32>
    %183 = arith.divf %181, %182 : vector<34x1xf32>
    %184 = vector.broadcast %183 : vector<34x1xf32> to vector<34x32xf32>
    %185 = arith.subf %175, %184 : vector<34x32xf32>
    %186 = arith.mulf %185, %185 : vector<34x32xf32>
    %cst_78 = arith.constant dense<0.000000e+00> : vector<34xf32>
    %187 = vector.multi_reduction <add>, %186, %cst_78 [1] : vector<34x32xf32> to vector<34xf32>
    %188 = vector.shape_cast %187 : vector<34xf32> to vector<34x1xf32>
    %cst_79 = arith.constant 3.200000e+01 : f32
    %189 = vector.broadcast %cst_79 : f32 to vector<34x1xf32>
    %190 = arith.divf %188, %189 : vector<34x1xf32>
    %cst_80 = arith.constant 9.99999997E-7 : f32
    %191 = vector.broadcast %cst_80 : f32 to vector<34x1xf32>
    %192 = arith.addf %190, %191 : vector<34x1xf32>
    %193 = math.rsqrt %192 : vector<34x1xf32>
    %194 = vector.broadcast %193 : vector<34x1xf32> to vector<34x32xf32>
    %195 = arith.mulf %185, %194 : vector<34x32xf32>
    %196 = vector.broadcast %177 : vector<1x32xf32> to vector<34x32xf32>
    %197 = arith.mulf %195, %196 : vector<34x32xf32>
    %198 = vector.broadcast %179 : vector<1x32xf32> to vector<34x32xf32>
    %199 = arith.addf %197, %198 : vector<34x32xf32>
    %c1_81 = arith.constant 1 : index
    %c0_82 = arith.constant 0 : index
    %c0_83 = arith.constant 0 : index
    %200 = vector.load %arg5[%c1_81, %c0_82, %c0_83] : memref<2x32x96xf32, #tpu.memory_space<vmem>>, vector<1x32x96xf32>
    %201 = vector.shape_cast %200 : vector<1x32x96xf32> to vector<32x96xf32>
    %cst_84 = arith.constant dense<0.000000e+00> : vector<34x96xf32>
    %202 = tpu.matmul %199, %201, %cst_84 {dimension_numbers = #tpu.dot_dimension_numbers<[1], [0], [0], [1], [0, 0, 1, 1], [], []>} : vector<34x32xf32>, vector<32x96xf32>, vector<34x96xf32> -> vector<34x96xf32>
    %c1_85 = arith.constant 1 : index
    %c0_86 = arith.constant 0 : index
    %c0_87 = arith.constant 0 : index
    %203 = vector.load %arg6[%c1_85, %c0_86, %c0_87] : memref<2x1x96xf32, #tpu.memory_space<vmem>>, vector<1x1x96xf32>
    %204 = vector.shape_cast %203 : vector<1x1x96xf32> to vector<1x96xf32>
    %205 = vector.broadcast %204 : vector<1x96xf32> to vector<34x96xf32>
    %206 = arith.addf %202, %205 : vector<34x96xf32>
    %207 = vector.extract_strided_slice %206 {offsets = [0, 0], sizes = [34, 32], strides = [1, 1]} : vector<34x96xf32> to vector<34x32xf32>
    %208 = vector.extract_strided_slice %206 {offsets = [0, 32], sizes = [34, 32], strides = [1, 1]} : vector<34x96xf32> to vector<34x32xf32>
    %209 = vector.extract_strided_slice %206 {offsets = [0, 64], sizes = [34, 32], strides = [1, 1]} : vector<34x96xf32> to vector<34x32xf32>
    %cst_88 = arith.constant 0.353553385 : f32
    %210 = vector.broadcast %cst_88 : f32 to vector<34x32xf32>
    %211 = arith.mulf %207, %210 : vector<34x32xf32>
    %212 = arith.mulf %211, %208 : vector<34x32xf32>
    %213 = vector.extract_strided_slice %208 {offsets = [0, 8], sizes = [34, 24], strides = [1, 1]} : vector<34x32xf32> to vector<34x24xf32>
    %214 = vector.extract_strided_slice %208 {offsets = [0, 0], sizes = [34, 8], strides = [1, 1]} : vector<34x32xf32> to vector<34x8xf32>
    %215 = tpu.concatenate %213, %214 in 1 : vector<34x24xf32>, vector<34x8xf32> -> vector<34x32xf32>
    %216 = arith.mulf %211, %215 : vector<34x32xf32>
    %217 = vector.extract_strided_slice %208 {offsets = [0, 16], sizes = [34, 16], strides = [1, 1]} : vector<34x32xf32> to vector<34x16xf32>
    %218 = vector.extract_strided_slice %208 {offsets = [0, 0], sizes = [34, 16], strides = [1, 1]} : vector<34x32xf32> to vector<34x16xf32>
    %219 = tpu.concatenate %217, %218 in 1 : vector<34x16xf32>, vector<34x16xf32> -> vector<34x32xf32>
    %220 = arith.mulf %211, %219 : vector<34x32xf32>
    %221 = vector.extract_strided_slice %208 {offsets = [0, 24], sizes = [34, 8], strides = [1, 1]} : vector<34x32xf32> to vector<34x8xf32>
    %222 = vector.extract_strided_slice %208 {offsets = [0, 0], sizes = [34, 24], strides = [1, 1]} : vector<34x32xf32> to vector<34x24xf32>
    %223 = tpu.concatenate %221, %222 in 1 : vector<34x8xf32>, vector<34x24xf32> -> vector<34x32xf32>
    %224 = arith.mulf %211, %223 : vector<34x32xf32>
    %225 = arith.maximumf %212, %216 : vector<34x32xf32>
    %226 = arith.maximumf %225, %220 : vector<34x32xf32>
    %227 = arith.maximumf %226, %224 : vector<34x32xf32>
    %228 = arith.subf %212, %227 : vector<34x32xf32>
    %229 = math.exp %228 : vector<34x32xf32>
    %230 = arith.subf %216, %227 : vector<34x32xf32>
    %231 = math.exp %230 : vector<34x32xf32>
    %232 = arith.subf %220, %227 : vector<34x32xf32>
    %233 = math.exp %232 : vector<34x32xf32>
    %234 = arith.subf %224, %227 : vector<34x32xf32>
    %235 = math.exp %234 : vector<34x32xf32>
    %236 = arith.addf %229, %231 : vector<34x32xf32>
    %237 = arith.addf %236, %233 : vector<34x32xf32>
    %238 = arith.addf %237, %235 : vector<34x32xf32>
    %239 = tpu.reciprocal %238 {approx = true} : vector<34x32xf32> -> vector<34x32xf32>
    %240 = arith.mulf %229, %239 : vector<34x32xf32>
    %241 = arith.mulf %240, %209 : vector<34x32xf32>
    %242 = arith.mulf %231, %239 : vector<34x32xf32>
    %243 = arith.mulf %242, %209 : vector<34x32xf32>
    %244 = vector.extract_strided_slice %243 {offsets = [0, 24], sizes = [34, 8], strides = [1, 1]} : vector<34x32xf32> to vector<34x8xf32>
    %245 = vector.extract_strided_slice %243 {offsets = [0, 0], sizes = [34, 24], strides = [1, 1]} : vector<34x32xf32> to vector<34x24xf32>
    %246 = tpu.concatenate %244, %245 in 1 : vector<34x8xf32>, vector<34x24xf32> -> vector<34x32xf32>
    %247 = arith.addf %241, %246 : vector<34x32xf32>
    %248 = arith.mulf %233, %239 : vector<34x32xf32>
    %249 = arith.mulf %248, %209 : vector<34x32xf32>
    %250 = vector.extract_strided_slice %249 {offsets = [0, 16], sizes = [34, 16], strides = [1, 1]} : vector<34x32xf32> to vector<34x16xf32>
    %251 = vector.extract_strided_slice %249 {offsets = [0, 0], sizes = [34, 16], strides = [1, 1]} : vector<34x32xf32> to vector<34x16xf32>
    %252 = tpu.concatenate %250, %251 in 1 : vector<34x16xf32>, vector<34x16xf32> -> vector<34x32xf32>
    %253 = arith.addf %247, %252 : vector<34x32xf32>
    %254 = arith.mulf %235, %239 : vector<34x32xf32>
    %255 = arith.mulf %254, %209 : vector<34x32xf32>
    %256 = vector.extract_strided_slice %255 {offsets = [0, 8], sizes = [34, 24], strides = [1, 1]} : vector<34x32xf32> to vector<34x24xf32>
    %257 = vector.extract_strided_slice %255 {offsets = [0, 0], sizes = [34, 8], strides = [1, 1]} : vector<34x32xf32> to vector<34x8xf32>
    %258 = tpu.concatenate %256, %257 in 1 : vector<34x24xf32>, vector<34x8xf32> -> vector<34x32xf32>
    %259 = arith.addf %253, %258 : vector<34x32xf32>
    %c1_89 = arith.constant 1 : index
    %c0_90 = arith.constant 0 : index
    %c0_91 = arith.constant 0 : index
    %260 = vector.load %arg7[%c1_89, %c0_90, %c0_91] : memref<2x32x32xf32, #tpu.memory_space<vmem>>, vector<1x32x32xf32>
    %261 = vector.shape_cast %260 : vector<1x32x32xf32> to vector<32x32xf32>
    %cst_92 = arith.constant dense<0.000000e+00> : vector<34x32xf32>
    %262 = tpu.matmul %259, %261, %cst_92 {dimension_numbers = #tpu.dot_dimension_numbers<[1], [0], [0], [1], [0, 0, 1, 1], [], []>} : vector<34x32xf32>, vector<32x32xf32>, vector<34x32xf32> -> vector<34x32xf32>
    %c1_93 = arith.constant 1 : index
    %c0_94 = arith.constant 0 : index
    %c0_95 = arith.constant 0 : index
    %263 = vector.load %arg8[%c1_93, %c0_94, %c0_95] : memref<2x1x32xf32, #tpu.memory_space<vmem>>, vector<1x1x32xf32>
    %264 = vector.shape_cast %263 : vector<1x1x32xf32> to vector<1x32xf32>
    %265 = vector.broadcast %264 : vector<1x32xf32> to vector<34x32xf32>
    %266 = arith.addf %262, %265 : vector<34x32xf32>
    %267 = arith.addf %266, %175 : vector<34x32xf32>
    %c1_96 = arith.constant 1 : index
    %c0_97 = arith.constant 0 : index
    %c0_98 = arith.constant 0 : index
    %268 = vector.load %arg9[%c1_96, %c0_97, %c0_98] : memref<2x1x32xf32, #tpu.memory_space<vmem>>, vector<1x1x32xf32>
    %269 = vector.shape_cast %268 : vector<1x1x32xf32> to vector<1x32xf32>
    %c1_99 = arith.constant 1 : index
    %c0_100 = arith.constant 0 : index
    %c0_101 = arith.constant 0 : index
    %270 = vector.load %arg10[%c1_99, %c0_100, %c0_101] : memref<2x1x32xf32, #tpu.memory_space<vmem>>, vector<1x1x32xf32>
    %271 = vector.shape_cast %270 : vector<1x1x32xf32> to vector<1x32xf32>
    %cst_102 = arith.constant dense<0.000000e+00> : vector<34xf32>
    %272 = vector.multi_reduction <add>, %267, %cst_102 [1] : vector<34x32xf32> to vector<34xf32>
    %273 = vector.shape_cast %272 : vector<34xf32> to vector<34x1xf32>
    %cst_103 = arith.constant 3.200000e+01 : f32
    %274 = vector.broadcast %cst_103 : f32 to vector<34x1xf32>
    %275 = arith.divf %273, %274 : vector<34x1xf32>
    %276 = vector.broadcast %275 : vector<34x1xf32> to vector<34x32xf32>
    %277 = arith.subf %267, %276 : vector<34x32xf32>
    %278 = arith.mulf %277, %277 : vector<34x32xf32>
    %cst_104 = arith.constant dense<0.000000e+00> : vector<34xf32>
    %279 = vector.multi_reduction <add>, %278, %cst_104 [1] : vector<34x32xf32> to vector<34xf32>
    %280 = vector.shape_cast %279 : vector<34xf32> to vector<34x1xf32>
    %cst_105 = arith.constant 3.200000e+01 : f32
    %281 = vector.broadcast %cst_105 : f32 to vector<34x1xf32>
    %282 = arith.divf %280, %281 : vector<34x1xf32>
    %cst_106 = arith.constant 9.99999997E-7 : f32
    %283 = vector.broadcast %cst_106 : f32 to vector<34x1xf32>
    %284 = arith.addf %282, %283 : vector<34x1xf32>
    %285 = math.rsqrt %284 : vector<34x1xf32>
    %286 = vector.broadcast %285 : vector<34x1xf32> to vector<34x32xf32>
    %287 = arith.mulf %277, %286 : vector<34x32xf32>
    %288 = vector.broadcast %269 : vector<1x32xf32> to vector<34x32xf32>
    %289 = arith.mulf %287, %288 : vector<34x32xf32>
    %290 = vector.broadcast %271 : vector<1x32xf32> to vector<34x32xf32>
    %291 = arith.addf %289, %290 : vector<34x32xf32>
    %c1_107 = arith.constant 1 : index
    %c0_108 = arith.constant 0 : index
    %c0_109 = arith.constant 0 : index
    %292 = vector.load %arg11[%c1_107, %c0_108, %c0_109] : memref<2x32x64xf32, #tpu.memory_space<vmem>>, vector<1x32x64xf32>
    %293 = vector.shape_cast %292 : vector<1x32x64xf32> to vector<32x64xf32>
    %cst_110 = arith.constant dense<0.000000e+00> : vector<34x64xf32>
    %294 = tpu.matmul %291, %293, %cst_110 {dimension_numbers = #tpu.dot_dimension_numbers<[1], [0], [0], [1], [0, 0, 1, 1], [], []>} : vector<34x32xf32>, vector<32x64xf32>, vector<34x64xf32> -> vector<34x64xf32>
    %c1_111 = arith.constant 1 : index
    %c0_112 = arith.constant 0 : index
    %c0_113 = arith.constant 0 : index
    %295 = vector.load %arg12[%c1_111, %c0_112, %c0_113] : memref<2x1x64xf32, #tpu.memory_space<vmem>>, vector<1x1x64xf32>
    %296 = vector.shape_cast %295 : vector<1x1x64xf32> to vector<1x64xf32>
    %297 = vector.broadcast %296 : vector<1x64xf32> to vector<34x64xf32>
    %298 = arith.addf %294, %297 : vector<34x64xf32>
    %cst_114 = arith.constant 5.000000e-01 : f32
    %299 = vector.broadcast %cst_114 : f32 to vector<34x64xf32>
    %300 = arith.mulf %299, %298 : vector<34x64xf32>
    %cst_115 = arith.constant 0.707106769 : f32
    %301 = vector.broadcast %cst_115 : f32 to vector<34x64xf32>
    %302 = arith.mulf %298, %301 : vector<34x64xf32>
    %303 = math.absf %302 : vector<34x64xf32>
    %cst_116 = arith.constant 0.327591091 : f32
    %304 = vector.broadcast %cst_116 : f32 to vector<34x64xf32>
    %305 = arith.mulf %304, %303 : vector<34x64xf32>
    %cst_117 = arith.constant 1.000000e+00 : f32
    %306 = vector.broadcast %cst_117 : f32 to vector<34x64xf32>
    %307 = arith.addf %306, %305 : vector<34x64xf32>
    %cst_118 = arith.constant 1.000000e+00 : f32
    %308 = vector.broadcast %cst_118 : f32 to vector<34x64xf32>
    %309 = arith.divf %308, %307 : vector<34x64xf32>
    %cst_119 = arith.constant 1.06140542 : f32
    %310 = vector.broadcast %cst_119 : f32 to vector<34x64xf32>
    %311 = arith.mulf %310, %309 : vector<34x64xf32>
    %cst_120 = arith.constant -1.45315206 : f32
    %312 = vector.broadcast %cst_120 : f32 to vector<34x64xf32>
    %313 = arith.addf %311, %312 : vector<34x64xf32>
    %314 = arith.mulf %313, %309 : vector<34x64xf32>
    %cst_121 = arith.constant 1.42141378 : f32
    %315 = vector.broadcast %cst_121 : f32 to vector<34x64xf32>
    %316 = arith.addf %314, %315 : vector<34x64xf32>
    %317 = arith.mulf %316, %309 : vector<34x64xf32>
    %cst_122 = arith.constant -0.284496725 : f32
    %318 = vector.broadcast %cst_122 : f32 to vector<34x64xf32>
    %319 = arith.addf %317, %318 : vector<34x64xf32>
    %320 = arith.mulf %319, %309 : vector<34x64xf32>
    %cst_123 = arith.constant 0.254829586 : f32
    %321 = vector.broadcast %cst_123 : f32 to vector<34x64xf32>
    %322 = arith.addf %320, %321 : vector<34x64xf32>
    %323 = arith.mulf %322, %309 : vector<34x64xf32>
    %cst_124 = arith.constant 0.000000e+00 : f32
    %324 = vector.broadcast %cst_124 : f32 to vector<34x64xf32>
    %325 = arith.subf %324, %303 : vector<34x64xf32>
    %326 = arith.mulf %325, %303 : vector<34x64xf32>
    %327 = math.exp %326 : vector<34x64xf32>
    %328 = arith.mulf %323, %327 : vector<34x64xf32>
    %cst_125 = arith.constant 1.000000e+00 : f32
    %329 = vector.broadcast %cst_125 : f32 to vector<34x64xf32>
    %330 = arith.subf %329, %328 : vector<34x64xf32>
    %cst_126 = arith.constant 0.000000e+00 : f32
    %331 = vector.broadcast %cst_126 : f32 to vector<34x64xf32>
    %332 = arith.cmpf oge, %302, %331 : vector<34x64xf32>
    %cst_127 = arith.constant 0.000000e+00 : f32
    %333 = vector.broadcast %cst_127 : f32 to vector<34x64xf32>
    %334 = arith.subf %333, %330 : vector<34x64xf32>
    %335 = arith.select %332, %330, %334 : vector<34x64xi1>, vector<34x64xf32>
    %cst_128 = arith.constant 1.000000e+00 : f32
    %336 = vector.broadcast %cst_128 : f32 to vector<34x64xf32>
    %337 = arith.addf %336, %335 : vector<34x64xf32>
    %338 = arith.mulf %300, %337 : vector<34x64xf32>
    %c1_129 = arith.constant 1 : index
    %c0_130 = arith.constant 0 : index
    %c0_131 = arith.constant 0 : index
    %339 = vector.load %arg13[%c1_129, %c0_130, %c0_131] : memref<2x64x32xf32, #tpu.memory_space<vmem>>, vector<1x64x32xf32>
    %340 = vector.shape_cast %339 : vector<1x64x32xf32> to vector<64x32xf32>
    %cst_132 = arith.constant dense<0.000000e+00> : vector<34x32xf32>
    %341 = tpu.matmul %338, %340, %cst_132 {dimension_numbers = #tpu.dot_dimension_numbers<[1], [0], [0], [1], [0, 0, 1, 1], [], []>} : vector<34x64xf32>, vector<64x32xf32>, vector<34x32xf32> -> vector<34x32xf32>
    %c1_133 = arith.constant 1 : index
    %c0_134 = arith.constant 0 : index
    %c0_135 = arith.constant 0 : index
    %342 = vector.load %arg14[%c1_133, %c0_134, %c0_135] : memref<2x1x32xf32, #tpu.memory_space<vmem>>, vector<1x1x32xf32>
    %343 = vector.shape_cast %342 : vector<1x1x32xf32> to vector<1x32xf32>
    %344 = vector.broadcast %343 : vector<1x32xf32> to vector<34x32xf32>
    %345 = arith.addf %341, %344 : vector<34x32xf32>
    %346 = arith.addf %267, %345 : vector<34x32xf32>
    %c0_136 = arith.constant 0 : index
    %c0_137 = arith.constant 0 : index
    %347 = vector.load %arg15[%c0_136, %c0_137] : memref<1x32xf32, #tpu.memory_space<vmem>>, vector<1x32xf32>
    %c0_138 = arith.constant 0 : index
    %c0_139 = arith.constant 0 : index
    %348 = vector.load %arg16[%c0_138, %c0_139] : memref<1x32xf32, #tpu.memory_space<vmem>>, vector<1x32xf32>
    %cst_140 = arith.constant dense<0.000000e+00> : vector<34xf32>
    %349 = vector.multi_reduction <add>, %346, %cst_140 [1] : vector<34x32xf32> to vector<34xf32>
    %350 = vector.shape_cast %349 : vector<34xf32> to vector<34x1xf32>
    %cst_141 = arith.constant 3.200000e+01 : f32
    %351 = vector.broadcast %cst_141 : f32 to vector<34x1xf32>
    %352 = arith.divf %350, %351 : vector<34x1xf32>
    %353 = vector.broadcast %352 : vector<34x1xf32> to vector<34x32xf32>
    %354 = arith.subf %346, %353 : vector<34x32xf32>
    %355 = arith.mulf %354, %354 : vector<34x32xf32>
    %cst_142 = arith.constant dense<0.000000e+00> : vector<34xf32>
    %356 = vector.multi_reduction <add>, %355, %cst_142 [1] : vector<34x32xf32> to vector<34xf32>
    %357 = vector.shape_cast %356 : vector<34xf32> to vector<34x1xf32>
    %cst_143 = arith.constant 3.200000e+01 : f32
    %358 = vector.broadcast %cst_143 : f32 to vector<34x1xf32>
    %359 = arith.divf %357, %358 : vector<34x1xf32>
    %cst_144 = arith.constant 9.99999997E-7 : f32
    %360 = vector.broadcast %cst_144 : f32 to vector<34x1xf32>
    %361 = arith.addf %359, %360 : vector<34x1xf32>
    %362 = math.rsqrt %361 : vector<34x1xf32>
    %363 = vector.broadcast %362 : vector<34x1xf32> to vector<34x32xf32>
    %364 = arith.mulf %354, %363 : vector<34x32xf32>
    %365 = vector.broadcast %347 : vector<1x32xf32> to vector<34x32xf32>
    %366 = arith.mulf %364, %365 : vector<34x32xf32>
    %367 = vector.broadcast %348 : vector<1x32xf32> to vector<34x32xf32>
    %368 = arith.addf %366, %367 : vector<34x32xf32>
    %369 = vector.extract_strided_slice %368 {offsets = [0, 0], sizes = [17, 32], strides = [1, 1]} : vector<34x32xf32> to vector<17x32xf32>
    %cst_145 = arith.constant dense<0.000000e+00> : vector<32xf32>
    %370 = vector.multi_reduction <add>, %369, %cst_145 [0] : vector<17x32xf32> to vector<32xf32>
    %371 = vector.shape_cast %370 : vector<32xf32> to vector<1x32xf32>
    %372 = vector.extract_strided_slice %368 {offsets = [17, 0], sizes = [17, 32], strides = [1, 1]} : vector<34x32xf32> to vector<17x32xf32>
    %cst_146 = arith.constant dense<0.000000e+00> : vector<32xf32>
    %373 = vector.multi_reduction <add>, %372, %cst_146 [0] : vector<17x32xf32> to vector<32xf32>
    %374 = vector.shape_cast %373 : vector<32xf32> to vector<1x32xf32>
    %375 = tpu.concatenate %371, %374 in 0 : vector<1x32xf32>, vector<1x32xf32> -> vector<2x32xf32>
    %c0_147 = arith.constant 0 : index
    %c0_148 = arith.constant 0 : index
    %376 = vector.load %arg17[%c0_147, %c0_148] : memref<32x1xf32, #tpu.memory_space<vmem>>, vector<32x1xf32>
    %cst_149 = arith.constant dense<0.000000e+00> : vector<2x1xf32>
    %377 = tpu.matmul %375, %376, %cst_149 {dimension_numbers = #tpu.dot_dimension_numbers<[1], [0], [0], [1], [0, 0, 1, 1], [], []>} : vector<2x32xf32>, vector<32x1xf32>, vector<2x1xf32> -> vector<2x1xf32>
    %c0_150 = arith.constant 0 : index
    %c0_151 = arith.constant 0 : index
    %378 = vector.load %arg18[%c0_150, %c0_151] : memref<1x1xf32, #tpu.memory_space<vmem>>, vector<1x1xf32>
    %379 = vector.broadcast %378 : vector<1x1xf32> to vector<2x1xf32>
    %380 = arith.addf %377, %379 : vector<2x1xf32>
    %c0_152 = arith.constant 0 : index
    %c0_153 = arith.constant 0 : index
    %381 = vector.load %arg19[%c0_152, %c0_153] : memref<2x1xf32, #tpu.memory_space<vmem>>, vector<2x1xf32>
    tpu.vector_store %arg19[%c0_152, %c0_153], %380 {strides = array<i32>} : memref<2x1xf32, #tpu.memory_space<vmem>>, vector<2x1xf32>,
    return
  }
}

</mosaic_0001>

<bundles_post_ra>
// kernel: tpu_custom_call.1
= control target key start
LH: loop header
LB: loop body
LE: loop exit
PB: predicated region body
PF: predicated region fallthrough
CT: control target
= control target key end

     0   :  { %vm82_vm0 = vcmask 523264   ;;  %vm132_vm1 = vcmask 261120   ;;  %vm145_vm2 = vcmask 254976   ;;  %v2911_v33 = vmov 32.0   ;;  %s2914_s27 = smov 96   ;;  %s4205_s28 = smov 80   ;;  %s4173_s1 = inlined_call_operand.vmem [shape: f32[64,32], index: 1, kind: input, shape index: {}]   ;;  %s4174_s0 = inlined_call_operand.vmem [shape: f32[34,64], index: 0, kind: input, shape index: {}]   ;;  %s4175_s2 = inlined_call_operand.vmem [shape: f32[34,32], index: 2, kind: input, shape index: {}]   ;;  %s4176_s5 = inlined_call_operand.vmem [shape: f32[2,32,96], index: 5, kind: input, shape index: {}]   ;;  %s4177_s3 = inlined_call_operand.vmem [shape: f32[2,1,32], index: 3, kind: input, shape index: {}]   ;;  %s4178_s4 = inlined_call_operand.vmem [shape: f32[2,1,32], index: 4, kind: input, shape index: {}]   ;;  %s4179_s6 = inlined_call_operand.vmem [shape: f32[2,1,96], index: 6, kind: input, shape index: {}]   ;;  %s4180_s7 = inlined_call_operand.vmem [shape: f32[2,32,32], index: 7, kind: input, shape index: {}]   ;;  %s4181_s8 = inlined_call_operand.vmem [shape: f32[2,1,32], index: 8, kind: input, shape index: {}]   ;;  %s4182_s9 = inlined_call_operand.vmem [shape: f32[2,1,32], index: 9, kind: input, shape index: {}]   ;;  %s4183_s10 = inlined_call_operand.vmem [shape: f32[2,1,32], index: 10, kind: input, shape index: {}]   ;;  %s4184_s11 = inlined_call_operand.vmem [shape: f32[2,32,64], index: 11, kind: input, shape index: {}]   ;;  %s4185_s12 = inlined_call_operand.vmem [shape: f32[2,1,64], index: 12, kind: input, shape index: {}]   ;;  %s4186_s13 = inlined_call_operand.vmem [shape: f32[2,64,32], index: 13, kind: input, shape index: {}]   ;;  %s4187_s14 = inlined_call_operand.vmem [shape: f32[2,1,32], index: 14, kind: input, shape index: {}]   ;;  %s4188_s15 = inlined_call_operand.vmem [shape: f32[1,32], index: 15, kind: input, shape index: {}]   ;;  %s4189_s16 = inlined_call_operand.vmem [shape: f32[1,32], index: 16, kind: input, shape index: {}]   ;;  %s4190_s17 = inlined_call_operand.vmem [shape: f32[32,1], index: 17, kind: input, shape index: {}]   ;;  %s4191_s18 = inlined_call_operand.<no memory space> [shape: f32[1,1], index: 18, kind: input, shape index: {}]   ;;  %s4192_s19 = inlined_call_operand.vmem [shape: f32[2,1], index: 19, kind: output, shape index: {}]  }
   0x1   :  { %4207 = sst [smem:[#allocation3_spill]] %s4173_s1  ;;  %2719 = vrcp.f32 %v2911_v33  ;;  %s2916_s29 = smov 112  }
   0x2   :  { %4208 = sst [smem:[#allocation4_spill]] %s4174_s0  ;;  %s4203_s30 = smov 104  }
   0x3   :  { %4209 = sst [smem:[#allocation5_spill]] %s4175_s2  ;;  %s4197_s21 = smov 64  }
   0x4   :  { %4210 = sst [smem:[#allocation6_spill]] %s4176_s5  ;;  %s2913_s5 = smov 88  }
   0x5   :  { %s4211_s20 = sld [smem:[#allocation3_spill]]  ;;  %s4201_s0 = smov 8  }
   0x6   :  { %s4212_s22 = sld [smem:[#allocation4_spill]]  ;;  %s2922_s2 = smov 16  }
   0x7   :  { %s4213_s1 = sld [smem:[#allocation5_spill]]  ;;  %v2720_v34 = vpop.eup %2719  ;;  %s4215_s23 = smov 80  }
   0x8   :  { %v150_v35 = vmul.f32 32.0, %v2720_v34  ;;  %vm154_vm3 = vweird.f32 %v2720_v34  ;;  %s4214_s26 = sld [smem:[#allocation6_spill]]  ;;  %s4216_s24 = smov 72  }
   0x9   :  { %s4217_s25 = smov 104  }
   0xa   :  { %v151_v36 = vsub.f32 1.0, %v150_v35 }
   0xb   :  { %v76_v0 = vld [vmem:[%s4211_s20 + $0x38] sm:$0xff]  ;;  %v75_v1 = vld [vmem:[%s4211_s20 + $0x30] sm:$0xff]  ;;  %v74_v2 = vld [vmem:[%s4211_s20 + $0x28] sm:$0xff] }
   0xc   :  { %106 = vmatpush.msra.mxu0 %v76_v0  ;;  %v73_v3 = vld [vmem:[%s4211_s20 + $0x20] sm:$0xff]  ;;  %v72_v4 = vld [vmem:[%s4211_s20 + $0x18] sm:$0xff]  ;;  %v71_v5 = vld [vmem:[%s4211_s20 + $0x10] sm:$0xff]  ;;  %v152_v37 = vmul.f32 %v2720_v34, %v151_v36 }
   0xd   :  { %v70_v6 = vld [vmem:[%s4211_s20 + $0x8] sm:$0xff]  ;;  %v69_v7 = vld [vmem:[%s4211_s20] sm:$0xff]  ;;  %v66_v10 = vld [vmem:[%s4212_s22 + $0x10] sm:$0xff]  ;;  %s2912_s20 = smov 120  }
   0xe   :  { %107 = vmatpush.msra.mxu0 %v75_v1  ;;  %v64_v8 = vld [vmem:[%s4212_s22] sm:$0xff]  ;;  %v65_v9 = vld [vmem:[%s4212_s22 + $0x8] sm:$0xff]  ;;  %v67_v11 = vld [vmem:[%s4212_s22 + $0x18] sm:$0xff]  ;;  %v153_v38 = vadd.f32 %v2720_v34, %v152_v37 }
   0xf   :  { %v68_v12 = vld [vmem:[%s4212_s22 + $0x20] sm:$0x3]  ;;  %v78_v17 = vld [vmem:[%s4213_s1 + $0x8] sm:$0xff]  ;;  %v79_v21 = vld [vmem:[%s4213_s1 + $0x10] sm:$0xff]  ;;  %s2921_s22 = smov 24  }
  0x10   :  { %108 = vmatpush.msra.mxu0 %v74_v2  ;;  %v77_v13 = vld [vmem:[%s4213_s1] sm:$0xff]  ;;  %v80_v25 = vld [vmem:[%s4213_s1 + $0x18] sm:$0xff]  ;;  %v3102_v39 = vsel %vm154_vm3, %v2720_v34, %v153_v38  ;;  %v269_v47 = vld [vmem:[%s4214_s26 + $0x10] sm:$0xff] }
  0x11   :  { %v81_v29 = vld [vmem:[%s4213_s1 + $0x20] sm:$0x3]  ;;  %v270_v46 = vld [vmem:[%s4214_s26 + $0x18] sm:$0xff]  ;;  %s4199_s1 = smov 72  }
  0x12   :  { %109 = vmatpush.msra.mxu0 %v73_v3  ;;  %2680 = vmatpush.msra.mxu1 %v270_v46  ;;  %v268_v3 = vld [vmem:[%s4214_s26 + $0x8] sm:$0xff] }
  0x13   :  { %2681 = vmatpush.msra.mxu3 %v270_v46 }
  0x14   :  { %110 = vmatpush.msra.mxu0 %v72_v4  ;;  %2682 = vmatpush.msra.mxu1 %v269_v47  ;;  %v267_v4 = vld [vmem:[%s4214_s26] sm:$0xff] }
  0x15   :  { %2683 = vmatpush.msra.mxu3 %v269_v47 }
  0x16   :  { %111 = vmatpush.msra.mxu0 %v71_v5  ;;  %2684 = vmatpush.msra.mxu1 %v268_v3 }
  0x17   :  { %2685 = vmatpush.msra.mxu3 %v268_v3 }
  0x18   :  { %112 = vmatpush.msra.mxu0 %v70_v6  ;;  %2686 = vmatpush.msra.mxu1 %v267_v4 }
  0x19   :  { %2687 = vmatpush.msra.mxu3 %v267_v4 }
  0x1a   :  { %113 = vmatpush.msra.mxu0 %v69_v7 }
  0x1b   :  { %2606 = vmatmul.msk.f32.vlgmr.msra.gmra.mxu0 %vm82_vm0, %v64_v8 }
  0x1c   :  { %302 = vmatpush.msrb.mxu0 %v270_v46 }
  0x1e   :  { %303 = vmatpush.msrb.mxu0 %v269_v47 }
  0x20   :  { %304 = vmatpush.msrb.mxu0 %v268_v3 }
  0x22   :  { %305 = vmatpush.msrb.mxu0 %v267_v4 }
  0x23   :  { %2607 = vmatmul.msk.f32.gmra.mxu0 %vm82_vm0, %v65_v9 }
  0x2b   :  { %2608 = vmatmul.msk.f32.gmra.mxu0 %vm82_vm0, %v66_v10 }
  0x33   :  { %2609 = vmatmul.msk.f32.gmra.mxu0 %vm82_vm0, %v67_v11 }
  0x3b   :  { %2610 = vmatmul.msk.f32.gmra.mxu0 %vm82_vm0, %v68_v12 }
  0x98   :  { %v115_v14 = vpop.f32.mrf.mxu0 }
  0x99   :  { %v3070_v15 = vadd.f32 %v115_v14, %v77_v13 }
  0x9b   :  { %v133_v16 = vsel %vm132_vm1, %v3070_v15, 0.0 }
  0x9c   :  { %134 = vadd.xlane.f32.xlu0 %v133_v16 }
  0xa0   :  { %v118_v18 = vpop.f32.mrf.mxu0 }
  0xa1   :  { %v3077_v19 = vadd.f32 %v118_v18, %v78_v17 }
  0xa3   :  { %v136_v20 = vsel %vm132_vm1, %v3077_v19, 0.0 }
  0xa4   :  { %137 = vadd.xlane.f32.xlu0 %v136_v20 }
  0xa8   :  { %v121_v22 = vpop.f32.mrf.mxu0 }
  0xa9   :  { %v3084_v23 = vadd.f32 %v121_v22, %v79_v21 }
  0xab   :  { %v139_v24 = vsel %vm132_vm1, %v3084_v23, 0.0 }
  0xac   :  { %140 = vadd.xlane.f32.xlu1 %v139_v24 }
  0xb0   :  { %v124_v26 = vpop.f32.mrf.mxu0 }
  0xb1   :  { %v3091_v27 = vadd.f32 %v124_v26, %v80_v25  ;;  %v3157_v25 = vld [vmem:[%s4177_s3] ss:$0 sm:$0xff] }
  0xb3   :  { %v142_v28 = vsel %vm132_vm1, %v3091_v27, 0.0 }
  0xb4   :  { %143 = vadd.xlane.f32.xlu1 %v142_v28 }
  0xb8   :  { %v127_v30 = vpop.f32.mrf.mxu0 }
  0xb9   :  { %v3098_v31 = vadd.f32 %v127_v30, %v81_v29  ;;  %v3163_v30 = vld [vmem:[%s4178_s4] ss:$0 sm:$0xff] }
  0xbb   :  { %v146_v32 = vsel %vm145_vm2, %v3098_v31, 0.0 }
  0xbc   :  { %147 = vadd.xlane.f32.xlu2 %v146_v32 }
 0x10f   :  { %v135_v40 = vpop.xlane.xlu0 %134 }
 0x110   :  { %v156_v41 = vmul.f32 %v3102_v39, %v135_v40 }
 0x112   :  { %v3106_v42 = vsub.f32 %v3070_v15, %v156_v41 }
 0x114   :  { %v166_v43 = vmul.f32 %v3106_v42, %v3106_v42 }
 0x116   :  { %v171_v44 = vsel %vm132_vm1, %v166_v43, 0.0 }
 0x117   :  { %172 = vadd.xlane.f32.xlu2 %v171_v44  ;;  %v138_v45 = vpop.xlane.xlu0 %137 }
 0x118   :  { %v157_v48 = vmul.f32 %v3102_v39, %v138_v45 }
 0x11a   :  { %v3119_v49 = vsub.f32 %v3077_v19, %v157_v48 }
 0x11c   :  { %v167_v50 = vmul.f32 %v3119_v49, %v3119_v49 }
 0x11e   :  { %v174_v51 = vsel %vm132_vm1, %v167_v50, 0.0 }
 0x11f   :  { %v141_v52 = vpop.xlane.xlu1 %140  ;;  %175 = vadd.xlane.f32.xlu0 %v174_v51 }
 0x120   :  { %v158_v53 = vmul.f32 %v3102_v39, %v141_v52 }
 0x122   :  { %v3126_v54 = vsub.f32 %v3084_v23, %v158_v53 }
 0x124   :  { %v168_v55 = vmul.f32 %v3126_v54, %v3126_v54 }
 0x126   :  { %v177_v56 = vsel %vm132_vm1, %v168_v55, 0.0 }
 0x127   :  { %178 = vadd.xlane.f32.xlu1 %v177_v56  ;;  %v144_v57 = vpop.xlane.xlu1 %143 }
 0x128   :  { %v159_v58 = vmul.f32 %v3102_v39, %v144_v57 }
 0x12a   :  { %v3133_v59 = vsub.f32 %v3091_v27, %v159_v58 }
 0x12c   :  { %v169_v60 = vmul.f32 %v3133_v59, %v3133_v59 }
 0x12e   :  { %v180_v61 = vsel %vm132_vm1, %v169_v60, 0.0 }
 0x12f   :  { %v148_v62 = vpop.xlane.xlu2 %147  ;;  %181 = vadd.xlane.f32.xlu2 %v180_v61 }
 0x130   :  { %v160_v63 = vmul.f32 %v3102_v39, %v148_v62 }
 0x132   :  { %v3140_v0 = vsub.f32 %v3098_v31, %v160_v63 }
 0x134   :  { %v170_v1 = vmul.f32 %v3140_v0, %v3140_v0 }
 0x136   :  { %v183_v2 = vsel %vm145_vm2, %v170_v1, 0.0 }
 0x137   :  { %184 = vadd.xlane.f32.xlu0 %v183_v2 }
 0x18a   :  { %v173_v5 = vpop.xlane.xlu2 %172 }
 0x18b   :  { %v186_v6 = vmul.f32 %v173_v5, %v3102_v39 }
 0x18d   :  { %v191_v7 = vadd.f32 1e-06, %v186_v6 }
 0x18f   :  { %2721 = vrsqrt.f32 %v191_v7  ;;  %vm202_vm5 = vweird.f32 %v191_v7 }
 0x192   :  { %v176_v8 = vpop.xlane.xlu0 %175 }
 0x193   :  { %v187_v9 = vmul.f32 %v176_v8, %v3102_v39 }
 0x195   :  { %v2722_v10 = vpop.eup %2721  ;;  %v192_v11 = vadd.f32 1e-06, %v187_v9 }
 0x196   :  { %v197_v12 = vmul.f32 %v2722_v10, %v191_v7  ;;  %vm203_vm4 = vweird.f32 %v2722_v10 }
 0x197   :  { %2723 = vrsqrt.f32 %v192_v11  ;;  %vm204_vm6 = vmor %vm202_vm5, %vm203_vm4  ;;  %vm212_vm8 = vweird.f32 %v192_v11 }
 0x198   :  { %v198_v13 = vmul.f32 %v2722_v10, %v197_v12 }
 0x19a   :  { %v199_v14 = vmul.f32 0.5, %v198_v13  ;;  %v179_v16 = vpop.xlane.xlu1 %178 }
 0x19b   :  { %v188_v17 = vmul.f32 %v179_v16, %v3102_v39 }
 0x19c   :  { %v200_v18 = vsub.f32 1.5, %v199_v14 }
 0x19d   :  { %v2724_v20 = vpop.eup %2723  ;;  %v193_v21 = vadd.f32 1e-06, %v188_v17 }
 0x19e   :  { %v201_v22 = vmul.f32 %v2722_v10, %v200_v18  ;;  %v207_v24 = vmul.f32 %v2724_v20, %v192_v11  ;;  %vm213_vm7 = vweird.f32 %v2724_v20 }
 0x19f   :  { %2725 = vrsqrt.f32 %v193_v21  ;;  %vm214_vm9 = vmor %vm212_vm8, %vm213_vm7  ;;  %vm222_vm11 = vweird.f32 %v193_v21  ;;  %vm423_vm7 = vcmask 130048   ;;  %vm464_vm8 = vcmask 64512  }
 0x1a0   :  { %v205_v26 = vsel %vm204_vm6, %v2722_v10, %v201_v22  ;;  %v208_v28 = vmul.f32 %v2724_v20, %v207_v24  ;;  %vm382_vm6 = vcmask 195584  }
 0x1a1   :  { %v246_v29 = vmul.f32 %v205_v26, %v3106_v42 }
 0x1a2   :  { %v209_v32 = vmul.f32 0.5, %v208_v28  ;;  %v182_v33 = vpop.xlane.xlu2 %181 }
 0x1a3   :  { %v189_v34 = vmul.f32 %v182_v33, %v3102_v39  ;;  %v254_v35 = vmul.f32 %v3157_v25, %v246_v29 }
 0x1a4   :  { %v210_v36 = vsub.f32 1.5, %v209_v32 }
 0x1a5   :  { %v2726_v37 = vpop.eup %2725  ;;  %v194_v38 = vadd.f32 1e-06, %v189_v34  ;;  %v262_v40 = vadd.f32 %v3163_v30, %v254_v35 }
 0x1a6   :  { %v211_v41 = vmul.f32 %v2724_v20, %v210_v36  ;;  %v217_v42 = vmul.f32 %v2726_v37, %v193_v21  ;;  %vm223_vm10 = vweird.f32 %v2726_v37 }
 0x1a7   :  { %2727 = vrsqrt.f32 %v194_v38  ;;  %2611 = vmatmul.msk.f32.vlgmr.msrb.gmra.mxu0 %vm132_vm1, %v262_v40  ;;  %vm224_vm12 = vmor %vm222_vm11, %vm223_vm10  ;;  %vm232_vm14 = vweird.f32 %v194_v38 }
 0x1a8   :  { %v218_v43 = vmul.f32 %v2726_v37, %v217_v42  ;;  %v215_v44 = vsel %vm214_vm9, %v2724_v20, %v211_v41 }
 0x1a9   :  { %v247_v45 = vmul.f32 %v215_v44, %v3119_v49 }
 0x1aa   :  { %v219_v46 = vmul.f32 0.5, %v218_v43  ;;  %v185_v47 = vpop.xlane.xlu0 %184 }
 0x1ab   :  { %v190_v48 = vmul.f32 %v185_v47, %v3102_v39  ;;  %v255_v50 = vmul.f32 %v3157_v25, %v247_v45 }
 0x1ac   :  { %v220_v51 = vsub.f32 1.5, %v219_v46 }
 0x1ad   :  { %v2728_v52 = vpop.eup %2727  ;;  %v195_v53 = vadd.f32 1e-06, %v190_v48  ;;  %v263_v55 = vadd.f32 %v3163_v30, %v255_v50 }
 0x1ae   :  { %v221_v56 = vmul.f32 %v2726_v37, %v220_v51  ;;  %v227_v57 = vmul.f32 %v2728_v52, %v194_v38  ;;  %vm233_vm13 = vweird.f32 %v2728_v52 }
 0x1af   :  { %2729 = vrsqrt.f32 %v195_v53  ;;  %2612 = vmatmul.msk.f32.vlgmr.msra.gmra.mxu1 %vm132_vm1, %v263_v55  ;;  %vm234_vm15 = vmor %vm232_vm14, %vm233_vm13  ;;  %vm242_vm4 = vweird.f32 %v195_v53 }
 0x1b0   :  { %v228_v49 = vmul.f32 %v2728_v52, %v227_v57  ;;  %v225_v58 = vsel %vm224_vm12, %v2726_v37, %v221_v56 }
 0x1b1   :  { %v248_v60 = vmul.f32 %v225_v58, %v3126_v54 }
 0x1b2   :  { %v229_v61 = vmul.f32 0.5, %v228_v49 }
 0x1b3   :  { %v256_v62 = vmul.f32 %v3157_v25, %v248_v60 }
 0x1b4   :  { %v230_v63 = vsub.f32 1.5, %v229_v61 }
 0x1b5   :  { %v2730_v1 = vpop.eup %2729  ;;  %v264_v2 = vadd.f32 %v3163_v30, %v256_v62 }
 0x1b6   :  { %v231_v3 = vmul.f32 %v2728_v52, %v230_v63  ;;  %v237_v4 = vmul.f32 %v2730_v1, %v195_v53  ;;  %vm243_vm3 = vweird.f32 %v2730_v1 }
 0x1b7   :  { %2613 = vmatmul.msk.f32.gmra.mxu1 %vm132_vm1, %v264_v2  ;;  %vm244_vm5 = vmor %vm242_vm4, %vm243_vm3 }
 0x1b8   :  { %v238_v5 = vmul.f32 %v2730_v1, %v237_v4  ;;  %v235_v6 = vsel %vm234_vm15, %v2728_v52, %v231_v3 }
 0x1b9   :  { %v249_v7 = vmul.f32 %v235_v6, %v3133_v59  ;;  %v2702_v59 = vld [vmem:[%s4179_s6] ss:$0 sm:$0xff] }
 0x1ba   :  { %v239_v8 = vmul.f32 0.5, %v238_v5 }
 0x1bb   :  { %v257_v54 = vmul.f32 %v3157_v25, %v249_v7 }
 0x1bc   :  { %v240_v9 = vsub.f32 1.5, %v239_v8 }
 0x1bd   :  { %v265_v10 = vadd.f32 %v3163_v30, %v257_v54 }
 0x1be   :  { %v241_v11 = vmul.f32 %v2730_v1, %v240_v9 }
 0x1bf   :  { %2614 = vmatmul.msk.f32.vlgmr.msra.gmra.mxu3 %vm132_vm1, %v265_v10 }
 0x1c0   :  { %v245_v12 = vsel %vm244_vm5, %v2730_v1, %v241_v11 }
 0x1c1   :  { %v250_v13 = vmul.f32 %v245_v12, %v3140_v0 }
 0x1c3   :  { %v258_v14 = vmul.f32 %v3157_v25, %v250_v13 }
 0x1c5   :  { %v266_v16 = vadd.f32 %v3163_v30, %v258_v14 }
 0x1c7   :  { %2615 = vmatmul.msk.f32.gmra.mxu3 %vm132_vm1, %v266_v16 }
 0x224   :  { %v307_v17 = vpop.f32.mrf.mxu0 }
 0x225   :  { %v3189_v18 = vadd.f32 %v2702_v59, %v307_v17 }
 0x227   :  { %367 = vrot.lane.b32.xlu2 %v3189_v18, %s2912_s20  ;;  %352 = vrot.lane.b32.xlu1 %v3189_v18, %s2913_s5  ;;  %v322_v37 = vmul.f32 0.35355338, %v3189_v18 }
 0x228   :  { %332 = vrot.lane.b32.xlu0 %v3189_v18, %s2914_s27 }
 0x22c   :  { %v310_v0 = vpop.f32.mrf.mxu1 }
 0x22d   :  { %v3203_v20 = vadd.f32 %v2702_v59, %v310_v0 }
 0x22f   :  { %393 = vrot.lane.b32.xlu2 %v3189_v18, %s4205_s28  ;;  %408 = vrot.lane.b32.xlu1 %v3189_v18, %s2916_s29  ;;  %v323_v6 = vmul.f32 0.35355338, %v3203_v20 }
 0x230   :  { %434 = vrot.lane.b32.xlu0 %v3189_v18, %s4199_s1 }
 0x234   :  { %v313_v21 = vpop.f32.mrf.mxu1 }
 0x235   :  { %v3217_v22 = vadd.f32 %v2702_v59, %v313_v21 }
 0x237   :  { %449 = vrot.lane.b32.xlu2 %v3189_v18, %s4203_s30  ;;  %354 = vrot.lane.b32.xlu1 %v3203_v20, %s2913_s5 }
 0x238   :  { %369 = vrot.lane.b32.xlu0 %v3203_v20, %s2912_s20 }
 0x23f   :  { %575 = vrot.lane.b32.xlu2 %v3189_v18, %s4197_s21  ;;  %395 = vrot.lane.b32.xlu1 %v3203_v20, %s4205_s28 }
 0x240   :  { %410 = vrot.lane.b32.xlu0 %v3203_v20, %s2916_s29 }
 0x242   :  { %v316_v24 = vpop.f32.mrf.mxu3 }
 0x243   :  { %v3237_v25 = vadd.f32 %v2702_v59, %v316_v24 }
 0x247   :  { %334 = vrot.lane.b32.xlu2 %v3203_v20, %s2914_s27  ;;  %451 = vrot.lane.b32.xlu1 %v3203_v20, %s4203_s30 }
 0x248   :  { %356 = vrot.lane.b32.xlu0 %v3217_v22, %s2913_s5 }
 0x24a   :  { %v319_v26 = vpop.f32.mrf.mxu3 }
 0x24b   :  { %v3257_v28 = vadd.f32 %v2702_v59, %v319_v26 }
 0x24f   :  { %436 = vrot.lane.b32.xlu2 %v3203_v20, %s4199_s1  ;;  %336 = vrot.lane.b32.xlu1 %v3217_v22, %s2914_s27 }
 0x250   :  { %397 = vrot.lane.b32.xlu0 %v3217_v22, %s4205_s28 }
 0x257   :  { %577 = vrot.lane.b32.xlu2 %v3203_v20, %s4197_s21  ;;  %438 = vrot.lane.b32.xlu1 %v3217_v22, %s4199_s1 }
 0x258   :  { %453 = vrot.lane.b32.xlu0 %v3217_v22, %s4203_s30 }
 0x25f   :  { %371 = vrot.lane.b32.xlu2 %v3217_v22, %s2912_s20  ;;  %579 = vrot.lane.b32.xlu1 %v3217_v22, %s4197_s21 }
 0x260   :  { %338 = vrot.lane.b32.xlu0 %v3237_v25, %s2914_s27 }
 0x267   :  { %412 = vrot.lane.b32.xlu2 %v3217_v22, %s2916_s29  ;;  %373 = vrot.lane.b32.xlu1 %v3237_v25, %s2912_s20 }
 0x268   :  { %440 = vrot.lane.b32.xlu0 %v3237_v25, %s4199_s1 }
 0x26f   :  { %358 = vrot.lane.b32.xlu2 %v3237_v25, %s2913_s5  ;;  %414 = vrot.lane.b32.xlu1 %v3237_v25, %s2916_s29 }
 0x270   :  { %581 = vrot.lane.b32.xlu0 %v3237_v25, %s4197_s21 }
 0x277   :  { %399 = vrot.lane.b32.xlu2 %v3237_v25, %s4205_s28  ;;  %360 = vrot.lane.b32.xlu1 %v3257_v28, %s2913_s5 }
 0x278   :  { %375 = vrot.lane.b32.xlu0 %v3257_v28, %s2912_s20 }
 0x27f   :  { %455 = vrot.lane.b32.xlu2 %v3237_v25, %s4203_s30  ;;  %401 = vrot.lane.b32.xlu1 %v3257_v28, %s4205_s28 }
 0x280   :  { %416 = vrot.lane.b32.xlu0 %v3257_v28, %s2916_s29 }
 0x281   :  { %v368_v29 = vpop.permute.xlu2 %367 }
 0x287   :  { %340 = vrot.lane.b32.xlu2 %v3257_v28, %s2914_s27  ;;  %442 = vrot.lane.b32.xlu1 %v3257_v28, %s4199_s1 }
 0x288   :  { %457 = vrot.lane.b32.xlu0 %v3257_v28, %s4203_s30 }
 0x289   :  { %v394_v30 = vpop.permute.xlu2 %393 }
 0x28f   :  { %583 = vrot.lane.b32.xlu2 %v3257_v28, %s4197_s21 }
 0x291   :  { %v450_v32 = vpop.permute.xlu2 %449 }
 0x299   :  { %v353_v33 = vpop.permute.xlu1 %352  ;;  %v3279_v34 = vpop.permute.xlu2 %575 }
 0x29a   :  { %v333_v35 = vpop.permute.xlu0 %332  ;;  %v383_v36 = vsel %vm382_vm6, %v353_v33, %v368_v29 }
 0x29b   :  { %v388_v38 = vmul.f32 %v383_v36, %v322_v37  ;;  %v347_v40 = vmul.f32 %v333_v35, %v322_v37 }
 0x29d   :  { %v475_v45 = vmax.f32 %v347_v40, %v388_v38 }
 0x2a1   :  { %v409_v41 = vpop.permute.xlu1 %408  ;;  %v335_v42 = vpop.permute.xlu2 %334 }
 0x2a2   :  { %v424_v43 = vsel %vm423_vm7, %v394_v30, %v409_v41  ;;  %v435_v44 = vpop.permute.xlu0 %434  ;;  %v348_v11 = vmul.f32 %v335_v42, %v323_v6  ;;  %v324_v42 = vmul.f32 0.35355338, %v3217_v22 }
 0x2a3   :  { %v429_v46 = vmul.f32 %v424_v43, %v322_v37  ;;  %v465_v47 = vsel %vm464_vm8, %v435_v44, %v450_v32 }
 0x2a4   :  { %v470_v50 = vmul.f32 %v465_v47, %v322_v37 }
 0x2a5   :  { %v480_v48 = vmax.f32 %v475_v45, %v429_v46 }
 0x2a7   :  { %v485_v51 = vmax.f32 %v480_v48, %v470_v50 }
 0x2a9   :  { %v490_v52 = vsub.f32 %v347_v40, %v485_v51  ;;  %v505_v53 = vsub.f32 %v388_v38, %v485_v51  ;;  %v520_v55 = vsub.f32 %v429_v46, %v485_v51  ;;  %v437_v56 = vpop.permute.xlu2 %436  ;;  %v355_v57 = vpop.permute.xlu1 %354  ;;  %v535_v49 = vsub.f32 %v470_v50, %v485_v51 }
 0x2aa   :  { %v370_v58 = vpop.permute.xlu0 %369 }
 0x2ab   :  { %v495_v60 = vmul.f32 1.442695, %v490_v52  ;;  %v510_v61 = vmul.f32 1.442695, %v505_v53  ;;  %v525_v62 = vmul.f32 1.442695, %v520_v55  ;;  %v384_v3 = vsel %vm382_vm6, %v355_v57, %v370_v58 }
 0x2ac   :  { %v540_v63 = vmul.f32 1.442695, %v535_v49  ;;  %v389_v9 = vmul.f32 %v384_v3, %v323_v6 }
 0x2ad   :  { %2731 = vpow2.f32 %v495_v60 }
 0x2ae   :  { %2733 = vpow2.f32 %v510_v61  ;;  %v476_v59 = vmax.f32 %v348_v11, %v389_v9 }
 0x2af   :  { %2735 = vpow2.f32 %v525_v62 }
 0x2b0   :  { %2737 = vpow2.f32 %v540_v63 }
 0x2b1   :  { %v3285_v1 = vpop.permute.xlu2 %577  ;;  %v396_v2 = vpop.permute.xlu1 %395 }
 0x2b2   :  { %v411_v4 = vpop.permute.xlu0 %410 }
 0x2b3   :  { %v2732_v5 = vpop.eup %2731  ;;  %v425_v8 = vsel %vm423_vm7, %v396_v2, %v411_v4 }
 0x2b4   :  { %v2734_v7 = vpop.eup %2733  ;;  %v430_v13 = vmul.f32 %v425_v8, %v323_v6 }
 0x2b5   :  { %v550_v54 = vadd.f32 %v2734_v7, %v2732_v5  ;;  %v2736_v10 = vpop.eup %2735 }
 0x2b6   :  { %v2738_v14 = vpop.eup %2737  ;;  %v481_v24 = vmax.f32 %v476_v59, %v430_v13 }
 0x2b7   :  { %v555_v12 = vadd.f32 %v2736_v10, %v550_v54 }
 0x2b9   :  { %v560_v16 = vadd.f32 %v2738_v14, %v555_v12  ;;  %v372_v17 = vpop.permute.xlu2 %371  ;;  %v452_v18 = vpop.permute.xlu1 %451 }
 0x2ba   :  { %v466_v0 = vsel %vm464_vm8, %v437_v56, %v452_v18  ;;  %v357_v21 = vpop.permute.xlu0 %356 }
 0x2bb   :  { %2739 = vrcp.f32 %v560_v16  ;;  %v471_v20 = vmul.f32 %v466_v0, %v323_v6  ;;  %v385_v46 = vsel %vm382_vm6, %v357_v21, %v372_v17 }
 0x2bc   :  { %v390_v55 = vmul.f32 %v385_v46, %v324_v42 }
 0x2bd   :  { %v486_v26 = vmax.f32 %v481_v24, %v471_v20 }
 0x2bf   :  { %v491_v29 = vsub.f32 %v348_v11, %v486_v26  ;;  %v506_v30 = vsub.f32 %v389_v9, %v486_v26  ;;  %v521_v32 = vsub.f32 %v430_v13, %v486_v26  ;;  %v536_v33 = vsub.f32 %v471_v20, %v486_v26 }
 0x2c1   :  { %v2740_v35 = vpop.eup %2739  ;;  %v497_v36 = vmul.f32 1.442695, %v491_v29  ;;  %v512_v37 = vmul.f32 1.442695, %v506_v30  ;;  %v413_v38 = vpop.permute.xlu2 %412  ;;  %v527_v41 = vmul.f32 1.442695, %v521_v32 }
 0x2c2   :  { %v337_v40 = vpop.permute.xlu1 %336  ;;  %v398_v43 = vpop.permute.xlu0 %397  ;;  %v650_v44 = vmul.f32 %v2740_v35, %v2736_v10  ;;  %v595_v45 = vmul.f32 %v2740_v35, %v2734_v7  ;;  %v3293_v47 = vmul.f32 %v2740_v35, %v2732_v5  ;;  %v542_v48 = vmul.f32 1.442695, %v536_v33 }
 0x2c3   :  { %2741 = vpow2.f32 %v497_v36  ;;  %v349_v50 = vmul.f32 %v337_v40, %v324_v42  ;;  %v426_v52 = vsel %vm423_vm7, %v398_v43, %v413_v38  ;;  %v705_v57 = vmul.f32 %v2740_v35, %v2738_v14 }
 0x2c4   :  { %2743 = vpow2.f32 %v512_v37  ;;  %v655_v51 = vmul.f32 %v650_v44, %v3279_v34  ;;  %v600_v53 = vmul.f32 %v595_v45, %v3279_v34  ;;  %v431_v56 = vmul.f32 %v426_v52, %v324_v42 }
 0x2c5   :  { %2745 = vpow2.f32 %v527_v41  ;;  %v477_v22 = vmax.f32 %v349_v50, %v390_v55  ;;  %v710_v6 = vmul.f32 %v705_v57, %v3279_v34 }
 0x2c6   :  { %665 = vrot.lane.b32.xlu2 %v655_v51, %s2916_s29  ;;  %625 = vrot.lane.b32.xlu0 %v600_v53, %s4201_s0  ;;  %2747 = vpow2.f32 %v542_v48 }
 0x2c7   :  { %610 = vrot.lane.b32.xlu1 %v600_v53, %s4203_s30  ;;  %v482_v4 = vmax.f32 %v477_v22, %v431_v56 }
 0x2c9   :  { %v2742_v49 = vpop.eup %2741  ;;  %v359_v63 = vpop.permute.xlu2 %358 }
 0x2ca   :  { %v439_v58 = vpop.permute.xlu1 %438  ;;  %v2744_v60 = vpop.eup %2743 }
 0x2cb   :  { %v454_v61 = vpop.permute.xlu0 %453  ;;  %v551_v62 = vadd.f32 %v2744_v60, %v2742_v49  ;;  %v2746_v3 = vpop.eup %2745 }
 0x2cc   :  { %v467_v2 = vsel %vm464_vm8, %v439_v58, %v454_v61  ;;  %v2748_v8 = vpop.eup %2747 }
 0x2cd   :  { %v472_v5 = vmul.f32 %v467_v2, %v324_v42  ;;  %v556_v7 = vadd.f32 %v2746_v3, %v551_v62  ;;  %v325_v42 = vmul.f32 0.35355338, %v3237_v25 }
 0x2ce   :  { %735 = vrot.lane.b32.xlu2 %v710_v6, %s2921_s22  ;;  %720 = vrot.lane.b32.xlu0 %v710_v6, %s2912_s20 }
 0x2cf   :  { %v487_v54 = vmax.f32 %v482_v4, %v472_v5  ;;  %v561_v9 = vadd.f32 %v2748_v8, %v556_v7  ;;  %680 = vrot.lane.b32.xlu1 %v655_v51, %s2922_s2 }
 0x2d1   :  { %v492_v10 = vsub.f32 %v349_v50, %v487_v54  ;;  %v507_v11 = vsub.f32 %v390_v55, %v487_v54  ;;  %v522_v12 = vsub.f32 %v431_v56, %v487_v54  ;;  %2749 = vrcp.f32 %v561_v9  ;;  %v400_v21 = vpop.permute.xlu2 %399 }
 0x2d2   :  { %v537_v13 = vsub.f32 %v472_v5, %v487_v54  ;;  %v3306_v14 = vpop.permute.xlu1 %579 }
 0x2d3   :  { %v499_v16 = vmul.f32 1.442695, %v492_v10  ;;  %v514_v59 = vmul.f32 1.442695, %v507_v11  ;;  %v339_v17 = vpop.permute.xlu0 %338  ;;  %v529_v18 = vmul.f32 1.442695, %v522_v12 }
 0x2d4   :  { %v544_v0 = vmul.f32 1.442695, %v537_v13  ;;  %v350_v51 = vmul.f32 %v339_v17, %v325_v42 }
 0x2d5   :  { %2751 = vpow2.f32 %v499_v16 }
 0x2d6   :  { %2753 = vpow2.f32 %v514_v59 }
 0x2d7   :  { %v2750_v24 = vpop.eup %2749  ;;  %2755 = vpow2.f32 %v529_v18 }
 0x2d8   :  { %v651_v20 = vmul.f32 %v2750_v24, %v2746_v3  ;;  %v596_v26 = vmul.f32 %v2750_v24, %v2744_v60  ;;  %v3308_v29 = vmul.f32 %v2750_v24, %v2742_v49  ;;  %2757 = vpow2.f32 %v544_v0 }
 0x2d9   :  { %v706_v44 = vmul.f32 %v2750_v24, %v2748_v8  ;;  %v456_v46 = vpop.permute.xlu2 %455  ;;  %v326_v24 = vmul.f32 0.35355338, %v3257_v28 }
 0x2da   :  { %v374_v30 = vpop.permute.xlu1 %373  ;;  %v656_v35 = vmul.f32 %v651_v20, %v3285_v1  ;;  %v601_v36 = vmul.f32 %v596_v26, %v3285_v1 }
 0x2db   :  { %v2752_v32 = vpop.eup %2751  ;;  %v441_v33 = vpop.permute.xlu0 %440  ;;  %v386_v40 = vsel %vm382_vm6, %v359_v63, %v374_v30  ;;  %v711_v56 = vmul.f32 %v706_v44, %v3285_v1 }
 0x2dc   :  { %v2754_v37 = vpop.eup %2753  ;;  %667 = vrot.lane.b32.xlu2 %v656_v35, %s2916_s29  ;;  %627 = vrot.lane.b32.xlu0 %v601_v36, %s4201_s0  ;;  %v391_v48 = vmul.f32 %v386_v40, %v325_v42  ;;  %v468_v53 = vsel %vm464_vm8, %v441_v33, %v456_v46 }
 0x2dd   :  { %v552_v38 = vadd.f32 %v2754_v37, %v2752_v32  ;;  %v2756_v41 = vpop.eup %2755  ;;  %612 = vrot.lane.b32.xlu1 %v601_v36, %s4203_s30  ;;  %v473_v49 = vmul.f32 %v468_v53, %v325_v42 }
 0x2de   :  { %v2758_v45 = vpop.eup %2757  ;;  %v478_v25 = vmax.f32 %v350_v51, %v391_v48 }
 0x2df   :  { %v557_v43 = vadd.f32 %v2756_v41, %v552_v38 }
 0x2e1   :  { %v562_v50 = vadd.f32 %v2758_v45, %v557_v43  ;;  %v341_v30 = vpop.permute.xlu2 %340 }
 0x2e2   :  { %v415_v52 = vpop.permute.xlu1 %414  ;;  %v351_v38 = vmul.f32 %v341_v30, %v326_v24  ;;  %v761_v30 = vld [vmem:[%s4180_s7 + $0x8] sm:$0xff] }
 0x2e3   :  { %2759 = vrcp.f32 %v562_v50  ;;  %v427_v55 = vsel %vm423_vm7, %v400_v21, %v415_v52  ;;  %v3319_v22 = vpop.permute.xlu0 %581 }
 0x2e4   :  { %v432_v57 = vmul.f32 %v427_v55, %v325_v42  ;;  %737 = vrot.lane.b32.xlu2 %v711_v56, %s2921_s22  ;;  %722 = vrot.lane.b32.xlu0 %v711_v56, %s2912_s20 }
 0x2e5   :  { %682 = vrot.lane.b32.xlu1 %v656_v35, %s2922_s2 }
 0x2e6   :  { %v483_v58 = vmax.f32 %v478_v25, %v432_v57 }
 0x2e8   :  { %v488_v60 = vmax.f32 %v483_v58, %v473_v49 }
 0x2e9   :  { %v2760_v61 = vpop.eup %2759 }
 0x2ea   :  { %v493_v62 = vsub.f32 %v350_v51, %v488_v60  ;;  %v508_v63 = vsub.f32 %v391_v48, %v488_v60  ;;  %v523_v2 = vsub.f32 %v432_v57, %v488_v60  ;;  %v361_v3 = vpop.permute.xlu1 %360  ;;  %v538_v4 = vsub.f32 %v473_v49, %v488_v60 }
 0x2eb   :  { %v376_v5 = vpop.permute.xlu0 %375  ;;  %v652_v6 = vmul.f32 %v2760_v61, %v2756_v41  ;;  %v597_v7 = vmul.f32 %v2760_v61, %v2754_v37  ;;  %v3325_v8 = vmul.f32 %v2760_v61, %v2752_v32  ;;  %v707_v16 = vmul.f32 %v2760_v61, %v2758_v45 }
 0x2ec   :  { %v501_v54 = vmul.f32 1.442695, %v493_v62  ;;  %v516_v9 = vmul.f32 1.442695, %v508_v63  ;;  %v531_v10 = vmul.f32 1.442695, %v523_v2  ;;  %v387_v0 = vsel %vm382_vm6, %v361_v3, %v376_v5 }
 0x2ed   :  { %v657_v11 = vmul.f32 %v652_v6, %v3306_v14  ;;  %v602_v12 = vmul.f32 %v597_v7, %v3306_v14  ;;  %v546_v13 = vmul.f32 1.442695, %v538_v4  ;;  %v712_v20 = vmul.f32 %v707_v16, %v3306_v14 }
 0x2ee   :  { %2761 = vpow2.f32 %v501_v54  ;;  %v392_v35 = vmul.f32 %v387_v0, %v326_v24 }
 0x2ef   :  { %2763 = vpow2.f32 %v516_v9  ;;  %669 = vrot.lane.b32.xlu2 %v657_v11, %s2916_s29  ;;  %629 = vrot.lane.b32.xlu0 %v602_v12, %s4201_s0 }
 0x2f0   :  { %614 = vrot.lane.b32.xlu1 %v602_v12, %s4203_s30  ;;  %2765 = vpow2.f32 %v531_v10  ;;  %v479_v42 = vmax.f32 %v351_v38, %v392_v35 }
 0x2f1   :  { %2767 = vpow2.f32 %v546_v13 }
 0x2f2   :  { %v402_v59 = vpop.permute.xlu1 %401 }
 0x2f3   :  { %v417_v17 = vpop.permute.xlu0 %416 }
 0x2f4   :  { %v2762_v18 = vpop.eup %2761  ;;  %v428_v32 = vsel %vm423_vm7, %v402_v59, %v417_v17  ;;  %v584_v59 = vpop.permute.xlu2 %583 }
 0x2f5   :  { %v2764_v21 = vpop.eup %2763  ;;  %v433_v40 = vmul.f32 %v428_v32, %v326_v24  ;;  %v760_v32 = vld [vmem:[%s4180_s7] sm:$0xff] }
 0x2f6   :  { %v553_v26 = vadd.f32 %v2764_v21, %v2762_v18  ;;  %v2766_v33 = vpop.eup %2765 }
 0x2f7   :  { %739 = vrot.lane.b32.xlu2 %v712_v20, %s2921_s22  ;;  %724 = vrot.lane.b32.xlu0 %v712_v20, %s2912_s20  ;;  %v2768_v37 = vpop.eup %2767  ;;  %v484_v45 = vmax.f32 %v479_v42, %v433_v40 }
 0x2f8   :  { %v558_v36 = vadd.f32 %v2766_v33, %v553_v26  ;;  %684 = vrot.lane.b32.xlu1 %v657_v11, %s2922_s2  ;;  %v762_v26 = vld [vmem:[%s4180_s7 + $0x10] sm:$0xff] }
 0x2fa   :  { %v563_v41 = vadd.f32 %v2768_v37, %v558_v36  ;;  %v443_v28 = vpop.permute.xlu1 %442 }
 0x2fb   :  { %v458_v43 = vpop.permute.xlu0 %457 }
 0x2fc   :  { %2769 = vrcp.f32 %v563_v41  ;;  %v469_v44 = vsel %vm464_vm8, %v443_v28, %v458_v43 }
 0x2fd   :  { %v474_v46 = vmul.f32 %v469_v44, %v326_v24 }
 0x2ff   :  { %v489_v48 = vmax.f32 %v484_v45, %v474_v46 }
 0x301   :  { %v494_v50 = vsub.f32 %v351_v38, %v489_v48  ;;  %v509_v51 = vsub.f32 %v392_v35, %v489_v48  ;;  %v524_v52 = vsub.f32 %v433_v40, %v489_v48  ;;  %v539_v55 = vsub.f32 %v474_v46, %v489_v48 }
 0x302   :  { %v2770_v53 = vpop.eup %2769  ;;  %v590_v38 = vmul.f32 %v3279_v34, %v3293_v47  ;;  %v591_v34 = vmul.f32 %v3285_v1, %v3308_v29  ;;  %v592_v1 = vmul.f32 %v3306_v14, %v3325_v8 }
 0x303   :  { %v503_v56 = vmul.f32 1.442695, %v494_v50  ;;  %v518_v25 = vmul.f32 1.442695, %v509_v51  ;;  %v653_v57 = vmul.f32 %v2770_v53, %v2766_v33  ;;  %v533_v49 = vmul.f32 1.442695, %v524_v52 }
 0x304   :  { %v598_v58 = vmul.f32 %v2770_v53, %v2764_v21  ;;  %v3340_v60 = vmul.f32 %v2770_v53, %v2762_v18  ;;  %v548_v62 = vmul.f32 1.442695, %v539_v55  ;;  %v708_v2 = vmul.f32 %v2770_v53, %v2768_v37  ;;  %v763_v21 = vld [vmem:[%s4180_s7 + $0x18] sm:$0xff] }
 0x305   :  { %2771 = vpow2.f32 %v503_v56  ;;  %v658_v61 = vmul.f32 %v653_v57, %v3319_v22  ;;  %795 = vmatpush.msra.mxu2 %v763_v21 }
 0x306   :  { %2773 = vpow2.f32 %v518_v25  ;;  %v603_v63 = vmul.f32 %v598_v58, %v3319_v22  ;;  %v713_v6 = vmul.f32 %v708_v2, %v3319_v22  ;;  %v593_v14 = vmul.f32 %v3319_v22, %v3340_v60 }
 0x307   :  { %671 = vrot.lane.b32.xlu2 %v658_v61, %s2916_s29  ;;  %2775 = vpow2.f32 %v533_v49  ;;  %796 = vmatpush.msra.mxu2 %v762_v26 }
 0x308   :  { %631 = vrot.lane.b32.xlu0 %v603_v63, %s4201_s0  ;;  %616 = vrot.lane.b32.xlu1 %v603_v63, %s4203_s30  ;;  %2777 = vpow2.f32 %v548_v62 }
 0x309   :  { %797 = vmatpush.msra.mxu2 %v761_v30 }
 0x30b   :  { %v2772_v3 = vpop.eup %2771  ;;  %798 = vmatpush.msra.mxu2 %v760_v32 }
 0x30c   :  { %v2774_v4 = vpop.eup %2773 }
 0x30d   :  { %v554_v5 = vadd.f32 %v2774_v4, %v2772_v3  ;;  %v2776_v7 = vpop.eup %2775 }
 0x30e   :  { %v2778_v9 = vpop.eup %2777 }
 0x30f   :  { %v559_v54 = vadd.f32 %v2776_v7, %v554_v5  ;;  %741 = vrot.lane.b32.xlu2 %v713_v6, %s2921_s22 }
 0x310   :  { %726 = vrot.lane.b32.xlu0 %v713_v6, %s2912_s20  ;;  %686 = vrot.lane.b32.xlu1 %v658_v61, %s2922_s2 }
 0x311   :  { %v564_v10 = vadd.f32 %v2778_v9, %v559_v54 }
 0x313   :  { %2779 = vrcp.f32 %v564_v10 }
 0x319   :  { %v2780_v11 = vpop.eup %2779 }
 0x31a   :  { %v654_v12 = vmul.f32 %v2780_v11, %v2776_v7  ;;  %v599_v13 = vmul.f32 %v2780_v11, %v2774_v4  ;;  %v574_v16 = vmul.f32 %v2780_v11, %v2772_v3  ;;  %v709_v24 = vmul.f32 %v2780_v11, %v2778_v9 }
 0x31c   :  { %v659_v17 = vmul.f32 %v654_v12, %v584_v59  ;;  %v604_v18 = vmul.f32 %v599_v13, %v584_v59  ;;  %v3351_v0 = vmul.f32 %v584_v59, %v574_v16  ;;  %v714_v20 = vmul.f32 %v709_v24, %v584_v59 }
 0x31e   :  { %673 = vrot.lane.b32.xlu2 %v659_v17, %s2916_s29  ;;  %633 = vrot.lane.b32.xlu0 %v604_v18, %s4201_s0 }
 0x31f   :  { %618 = vrot.lane.b32.xlu1 %v604_v18, %s4203_s30 }
 0x320   :  { %v666_v33 = vpop.permute.xlu2 %665 }
 0x326   :  { %743 = vrot.lane.b32.xlu2 %v714_v20, %s2921_s22  ;;  %728 = vrot.lane.b32.xlu0 %v714_v20, %s2912_s20 }
 0x327   :  { %688 = vrot.lane.b32.xlu1 %v659_v17, %s2922_s2 }
 0x328   :  { %v736_v43 = vpop.permute.xlu2 %735 }
 0x336   :  { %v668_v48 = vpop.permute.xlu2 %667 }
 0x338   :  { %v626_v36 = vpop.permute.xlu0 %625 }
 0x339   :  { %v611_v35 = vpop.permute.xlu1 %610 }
 0x33a   :  { %v640_v37 = vsel %vm464_vm8, %v611_v35, %v626_v36 }
 0x33b   :  { %v645_v40 = vadd.f32 %v640_v37, %v590_v38 }
 0x33e   :  { %v738_v53 = vpop.permute.xlu2 %737 }
 0x340   :  { %v721_v28 = vpop.permute.xlu0 %720 }
 0x341   :  { %v681_v41 = vpop.permute.xlu1 %680  ;;  %v750_v45 = vsel %vm382_vm6, %v721_v28, %v736_v43  ;;  %v2703_v28 = vld [vmem:[%s4181_s8] ss:$0 sm:$0xff] }
 0x342   :  { %v695_v42 = vsel %vm423_vm7, %v666_v33, %v681_v41 }
 0x343   :  { %v700_v44 = vadd.f32 %v695_v42, %v645_v40 }
 0x345   :  { %v755_v46 = vadd.f32 %v750_v45, %v700_v44 }
 0x347   :  { %2616 = vmatmul.msk.f32.vlgmr.msra.gmra.mxu2 %vm132_vm1, %v755_v46 }
 0x349   :  { %v670_v62 = vpop.permute.xlu2 %669 }
 0x34e   :  { %v628_v50 = vpop.permute.xlu0 %627 }
 0x34f   :  { %v613_v51 = vpop.permute.xlu1 %612 }
 0x350   :  { %v641_v52 = vsel %vm464_vm8, %v613_v51, %v628_v50 }
 0x351   :  { %v646_v55 = vadd.f32 %v641_v52, %v591_v34  ;;  %v740_v6 = vpop.permute.xlu2 %739 }
 0x356   :  { %v723_v47 = vpop.permute.xlu0 %722 }
 0x357   :  { %v683_v56 = vpop.permute.xlu1 %682  ;;  %v751_v49 = vsel %vm382_vm6, %v723_v47, %v738_v53 }
 0x358   :  { %v696_v25 = vsel %vm423_vm7, %v668_v48, %v683_v56 }
 0x359   :  { %v701_v57 = vadd.f32 %v696_v25, %v646_v55 }
 0x35b   :  { %v756_v58 = vadd.f32 %v751_v49, %v701_v57 }
 0x35d   :  { %2617 = vmatmul.msk.f32.gmra.mxu2 %vm132_vm1, %v756_v58 }
 0x361   :  { %v630_v61 = vpop.permute.xlu0 %629  ;;  %v672_v10 = vpop.permute.xlu2 %671 }
 0x362   :  { %v615_v63 = vpop.permute.xlu1 %614 }
 0x363   :  { %v642_v2 = vsel %vm464_vm8, %v615_v63, %v630_v61 }
 0x364   :  { %v647_v29 = vadd.f32 %v642_v2, %v592_v1 }
 0x369   :  { %v725_v4 = vpop.permute.xlu0 %724  ;;  %v742_v18 = vpop.permute.xlu2 %741 }
 0x36a   :  { %v685_v3 = vpop.permute.xlu1 %684  ;;  %v752_v54 = vsel %vm382_vm6, %v725_v4, %v740_v6 }
 0x36b   :  { %v697_v5 = vsel %vm423_vm7, %v670_v62, %v685_v3 }
 0x36c   :  { %v702_v7 = vadd.f32 %v697_v5, %v647_v29 }
 0x36e   :  { %v757_v9 = vadd.f32 %v752_v54, %v702_v7 }
 0x370   :  { %2618 = vmatmul.msk.f32.gmra.mxu2 %vm132_vm1, %v757_v9 }
 0x378   :  { %v674_v30 = vpop.permute.xlu2 %673 }
 0x37a   :  { %v617_v11 = vpop.permute.xlu1 %616  ;;  %v632_v12 = vpop.permute.xlu0 %631 }
 0x37b   :  { %v643_v13 = vsel %vm464_vm8, %v617_v11, %v632_v12 }
 0x37c   :  { %v648_v8 = vadd.f32 %v643_v13, %v593_v14 }
 0x380   :  { %v744_v37 = vpop.permute.xlu2 %743 }
 0x382   :  { %v687_v16 = vpop.permute.xlu1 %686  ;;  %v727_v59 = vpop.permute.xlu0 %726 }
 0x383   :  { %v698_v17 = vsel %vm423_vm7, %v672_v10, %v687_v16  ;;  %v753_v24 = vsel %vm382_vm6, %v727_v59, %v742_v18  ;;  %v950_v18 = vld [vmem:[%s4184_s11 + $0x10] sm:$0xff] }
 0x384   :  { %v703_v21 = vadd.f32 %v698_v17, %v648_v8  ;;  %v951_v17 = vld [vmem:[%s4184_s11 + $0x18] sm:$0xff] }
 0x385   :  { %983 = vmatpush.msrb.mxu3 %v951_v17 }
 0x386   :  { %v758_v20 = vadd.f32 %v753_v24, %v703_v21  ;;  %v949_v21 = vld [vmem:[%s4184_s11 + $0x8] sm:$0xff]  ;;  %v948_v24 = vld [vmem:[%s4184_s11] sm:$0xff] }
 0x387   :  { %984 = vmatpush.msrb.mxu3 %v950_v18 }
 0x388   :  { %2619 = vmatmul.msk.f32.gmra.mxu2 %vm132_vm1, %v758_v20 }
 0x389   :  { %985 = vmatpush.msrb.mxu3 %v949_v21 }
 0x38b   :  { %986 = vmatpush.msrb.mxu3 %v948_v24 }
 0x390   :  { %v634_v26 = vpop.permute.xlu0 %633 }
 0x391   :  { %v619_v32 = vpop.permute.xlu1 %618 }
 0x392   :  { %v644_v33 = vsel %vm464_vm8, %v619_v32, %v634_v26 }
 0x393   :  { %v649_v35 = vadd.f32 %v644_v33, %v3351_v0 }
 0x398   :  { %v729_v60 = vpop.permute.xlu0 %728 }
 0x399   :  { %v689_v22 = vpop.permute.xlu1 %688  ;;  %v754_v40 = vsel %vm382_vm6, %v729_v60, %v744_v37  ;;  %v3475_v37 = vld [vmem:[%s4182_s9] ss:$0 sm:$0xff] }
 0x39a   :  { %v699_v36 = vsel %vm423_vm7, %v674_v30, %v689_v22 }
 0x39b   :  { %v704_v38 = vadd.f32 %v699_v36, %v649_v35 }
 0x39d   :  { %v759_v41 = vadd.f32 %v754_v40, %v704_v38 }
 0x39f   :  { %2620 = vmatmul.msk.f32.gmra.mxu2 %vm132_vm1, %v759_v41 }
 0x3ca   :  { %v800_v42 = vpop.f32.mrf.mxu2 }
 0x3cb   :  { %v801_v43 = vadd.f32 %v2703_v28, %v800_v42  ;;  %v3481_v42 = vld [vmem:[%s4183_s10] ss:$0 sm:$0xff] }
 0x3cd   :  { %v3404_v44 = vadd.f32 %v801_v43, %v3070_v15 }
 0x3cf   :  { %v822_v0 = vsel %vm132_vm1, %v3404_v44, 0.0 }
 0x3d0   :  { %823 = vadd.xlane.f32.xlu1 %v822_v0 }
 0x3e0   :  { %v803_v45 = vpop.f32.mrf.mxu2 }
 0x3e1   :  { %v804_v46 = vadd.f32 %v2703_v28, %v803_v45 }
 0x3e3   :  { %v3409_v48 = vadd.f32 %v804_v46, %v3077_v19 }
 0x3e5   :  { %v825_v50 = vsel %vm132_vm1, %v3409_v48, 0.0 }
 0x3e6   :  { %826 = vadd.xlane.f32.xlu0 %v825_v50 }
 0x3f3   :  { %v806_v51 = vpop.f32.mrf.mxu2 }
 0x3f4   :  { %v807_v52 = vadd.f32 %v2703_v28, %v806_v51 }
 0x3f6   :  { %v3414_v34 = vadd.f32 %v807_v52, %v3084_v23 }
 0x3f8   :  { %v828_v15 = vsel %vm132_vm1, %v3414_v34, 0.0 }
 0x3f9   :  { %829 = vadd.xlane.f32.xlu2 %v828_v15 }
 0x40b   :  { %v809_v47 = vpop.f32.mrf.mxu2 }
 0x40c   :  { %v810_v53 = vadd.f32 %v2703_v28, %v809_v47 }
 0x40e   :  { %v3419_v55 = vadd.f32 %v810_v53, %v3091_v27 }
 0x410   :  { %v831_v19 = vsel %vm132_vm1, %v3419_v55, 0.0 }
 0x411   :  { %832 = vadd.xlane.f32.xlu1 %v831_v19 }
 0x422   :  { %v812_v56 = vpop.f32.mrf.mxu2 }
 0x423   :  { %v813_v25 = vadd.f32 %v2703_v28, %v812_v56 }
 0x425   :  { %v3424_v57 = vadd.f32 %v813_v25, %v3098_v31 }
 0x427   :  { %v834_v23 = vsel %vm145_vm2, %v3424_v57, 0.0 }
 0x428   :  { %835 = vadd.xlane.f32.xlu0 %v834_v23 }
 0x443   :  { %v824_v49 = vpop.xlane.xlu1 %823 }
 0x444   :  { %v837_v58 = vmul.f32 %v824_v49, %v3102_v39 }
 0x446   :  { %v842_v61 = vsub.f32 %v3404_v44, %v837_v58 }
 0x448   :  { %v847_v27 = vmul.f32 %v842_v61, %v842_v61 }
 0x44a   :  { %v852_v62 = vsel %vm132_vm1, %v847_v27, 0.0 }
 0x44b   :  { %853 = vadd.xlane.f32.xlu2 %v852_v62 }
 0x459   :  { %v827_v63 = vpop.xlane.xlu0 %826 }
 0x45a   :  { %v838_v2 = vmul.f32 %v827_v63, %v3102_v39 }
 0x45c   :  { %v3433_v1 = vsub.f32 %v3409_v48, %v838_v2 }
 0x45e   :  { %v848_v31 = vmul.f32 %v3433_v1, %v3433_v1 }
 0x460   :  { %v855_v29 = vsel %vm132_vm1, %v848_v31, 0.0 }
 0x461   :  { %856 = vadd.xlane.f32.xlu1 %v855_v29 }
 0x46c   :  { %v830_v3 = vpop.xlane.xlu2 %829 }
 0x46d   :  { %v839_v4 = vmul.f32 %v830_v3, %v3102_v39 }
 0x46f   :  { %v3440_v5 = vsub.f32 %v3414_v34, %v839_v4 }
 0x471   :  { %v849_v6 = vmul.f32 %v3440_v5, %v3440_v5 }
 0x473   :  { %v858_v7 = vsel %vm132_vm1, %v849_v6, 0.0 }
 0x474   :  { %859 = vadd.xlane.f32.xlu0 %v858_v7 }
 0x484   :  { %v833_v54 = vpop.xlane.xlu1 %832 }
 0x485   :  { %v840_v9 = vmul.f32 %v833_v54, %v3102_v39 }
 0x487   :  { %v3447_v10 = vsub.f32 %v3419_v55, %v840_v9 }
 0x489   :  { %v850_v11 = vmul.f32 %v3447_v10, %v3447_v10 }
 0x48b   :  { %v861_v12 = vsel %vm132_vm1, %v850_v11, 0.0 }
 0x48c   :  { %862 = vadd.xlane.f32.xlu2 %v861_v12 }
 0x49b   :  { %v836_v13 = vpop.xlane.xlu0 %835 }
 0x49c   :  { %v841_v14 = vmul.f32 %v836_v13, %v3102_v39 }
 0x49e   :  { %v3454_v8 = vsub.f32 %v3424_v57, %v841_v14 }
 0x4a0   :  { %v851_v16 = vmul.f32 %v3454_v8, %v3454_v8 }
 0x4a2   :  { %v864_v59 = vsel %vm145_vm2, %v851_v16, 0.0 }
 0x4a3   :  { %865 = vadd.xlane.f32.xlu1 %v864_v59 }
 0x4be   :  { %v854_v20 = vpop.xlane.xlu2 %853 }
 0x4bf   :  { %v867_v26 = vmul.f32 %v854_v20, %v3102_v39 }
 0x4c1   :  { %v872_v30 = vadd.f32 1e-06, %v867_v26 }
 0x4c3   :  { %2781 = vrsqrt.f32 %v872_v30  ;;  %vm883_vm10 = vweird.f32 %v872_v30 }
 0x4c9   :  { %v2782_v32 = vpop.eup %2781 }
 0x4ca   :  { %v878_v33 = vmul.f32 %v2782_v32, %v872_v30  ;;  %vm884_vm9 = vweird.f32 %v2782_v32 }
 0x4cb   :  { %vm885_vm11 = vmor %vm883_vm10, %vm884_vm9 }
 0x4cc   :  { %v879_v35 = vmul.f32 %v2782_v32, %v878_v33 }
 0x4ce   :  { %v880_v22 = vmul.f32 0.5, %v879_v35 }
 0x4d0   :  { %v881_v60 = vsub.f32 1.5, %v880_v22 }
 0x4d2   :  { %v882_v36 = vmul.f32 %v2782_v32, %v881_v60 }
 0x4d4   :  { %v886_v38 = vsel %vm885_vm11, %v2782_v32, %v882_v36  ;;  %v857_v40 = vpop.xlane.xlu1 %856 }
 0x4d5   :  { %v927_v41 = vmul.f32 %v886_v38, %v842_v61  ;;  %v868_v28 = vmul.f32 %v857_v40, %v3102_v39  ;;  %v3508_v40 = vld [vmem:[%s4185_s12] ss:$0 sm:$0xff] }
 0x4d7   :  { %v873_v43 = vadd.f32 1e-06, %v868_v28  ;;  %v935_v0 = vmul.f32 %v3475_v37, %v927_v41 }
 0x4d9   :  { %2783 = vrsqrt.f32 %v873_v43  ;;  %v943_v45 = vadd.f32 %v3481_v42, %v935_v0  ;;  %vm893_vm13 = vweird.f32 %v873_v43 }
 0x4db   :  { %2621 = vmatmul.msk.f32.vlgmr.msrb.gmra.mxu3 %vm132_vm1, %v943_v45  ;;  %v1209_v45 = vld [vmem:[%s4186_s13 + $0x30] sm:$0xff] }
 0x4df   :  { %v2784_v46 = vpop.eup %2783 }
 0x4e0   :  { %v888_v50 = vmul.f32 %v2784_v46, %v873_v43  ;;  %vm894_vm12 = vweird.f32 %v2784_v46 }
 0x4e1   :  { %vm895_vm14 = vmor %vm893_vm13, %vm894_vm12 }
 0x4e2   :  { %v889_v51 = vmul.f32 %v2784_v46, %v888_v50 }
 0x4e4   :  { %v890_v52 = vmul.f32 0.5, %v889_v51 }
 0x4e6   :  { %v891_v15 = vsub.f32 1.5, %v890_v52  ;;  %v1207_v52 = vld [vmem:[%s4186_s13 + $0x20] sm:$0xff] }
 0x4e7   :  { %v860_v47 = vpop.xlane.xlu0 %859 }
 0x4e8   :  { %v869_v53 = vmul.f32 %v860_v47, %v3102_v39  ;;  %v892_v19 = vmul.f32 %v2784_v46, %v891_v15  ;;  %v1206_v47 = vld [vmem:[%s4186_s13 + $0x18] sm:$0xff] }
 0x4ea   :  { %v874_v56 = vadd.f32 1e-06, %v869_v53  ;;  %v896_v25 = vsel %vm895_vm14, %v2784_v46, %v892_v19  ;;  %v1208_v46 = vld [vmem:[%s4186_s13 + $0x28] sm:$0xff] }
 0x4eb   :  { %v928_v23 = vmul.f32 %v896_v25, %v3433_v1 }
 0x4ec   :  { %2785 = vrsqrt.f32 %v874_v56  ;;  %vm903_vm3 = vweird.f32 %v874_v56 }
 0x4ed   :  { %v936_v49 = vmul.f32 %v3475_v37, %v928_v23  ;;  %v1205_v23 = vld [vmem:[%s4186_s13 + $0x10] sm:$0xff] }
 0x4ef   :  { %v944_v58 = vadd.f32 %v3481_v42, %v936_v49 }
 0x4f1   :  { %2622 = vmatmul.msk.f32.gmra.mxu3 %vm132_vm1, %v944_v58 }
 0x4f2   :  { %v2786_v61 = vpop.eup %2785 }
 0x4f3   :  { %v898_v27 = vmul.f32 %v2786_v61, %v874_v56  ;;  %vm904_vm15 = vweird.f32 %v2786_v61 }
 0x4f4   :  { %vm905_vm4 = vmor %vm903_vm3, %vm904_vm15 }
 0x4f5   :  { %v899_v62 = vmul.f32 %v2786_v61, %v898_v27 }
 0x4f7   :  { %v900_v63 = vmul.f32 0.5, %v899_v62 }
 0x4f9   :  { %v901_v2 = vsub.f32 1.5, %v900_v63 }
 0x4fb   :  { %v902_v31 = vmul.f32 %v2786_v61, %v901_v2  ;;  %v1203_v2 = vld [vmem:[%s4186_s13] sm:$0xff] }
 0x4fd   :  { %v906_v29 = vsel %vm905_vm4, %v2786_v61, %v902_v31  ;;  %v1204_v61 = vld [vmem:[%s4186_s13 + $0x8] sm:$0xff] }
 0x4fe   :  { %v929_v3 = vmul.f32 %v906_v29, %v3440_v5 }
 0x4ff   :  { %v863_v4 = vpop.xlane.xlu2 %862 }
 0x500   :  { %v870_v1 = vmul.f32 %v863_v4, %v3102_v39  ;;  %v937_v6 = vmul.f32 %v3475_v37, %v929_v3 }
 0x502   :  { %v875_v7 = vadd.f32 1e-06, %v870_v1  ;;  %v945_v54 = vadd.f32 %v3481_v42, %v937_v6 }
 0x504   :  { %2787 = vrsqrt.f32 %v875_v7  ;;  %2623 = vmatmul.msk.f32.gmra.mxu3 %vm132_vm1, %v945_v54  ;;  %vm913_vm9 = vweird.f32 %v875_v7 }
 0x50a   :  { %v2788_v9 = vpop.eup %2787 }
 0x50b   :  { %v908_v11 = vmul.f32 %v2788_v9, %v875_v7  ;;  %vm914_vm5 = vweird.f32 %v2788_v9 }
 0x50c   :  { %vm915_vm10 = vmor %vm913_vm9, %vm914_vm5 }
 0x50d   :  { %v909_v12 = vmul.f32 %v2788_v9, %v908_v11 }
 0x50f   :  { %v910_v13 = vmul.f32 0.5, %v909_v12 }
 0x511   :  { %v911_v14 = vsub.f32 1.5, %v910_v13 }
 0x513   :  { %v912_v16 = vmul.f32 %v2788_v9, %v911_v14 }
 0x515   :  { %v916_v5 = vsel %vm915_vm10, %v2788_v9, %v912_v16 }
 0x516   :  { %v866_v59 = vpop.xlane.xlu1 %865  ;;  %v930_v17 = vmul.f32 %v916_v5, %v3447_v10 }
 0x517   :  { %v871_v18 = vmul.f32 %v866_v59, %v3102_v39 }
 0x518   :  { %v938_v21 = vmul.f32 %v3475_v37, %v930_v17 }
 0x519   :  { %v876_v24 = vadd.f32 1e-06, %v871_v18 }
 0x51a   :  { %v946_v20 = vadd.f32 %v3481_v42, %v938_v21 }
 0x51b   :  { %2789 = vrsqrt.f32 %v876_v24  ;;  %vm923_vm12 = vweird.f32 %v876_v24 }
 0x51c   :  { %2624 = vmatmul.msk.f32.gmra.mxu3 %vm132_vm1, %v946_v20 }
 0x521   :  { %v2790_v26 = vpop.eup %2789 }
 0x522   :  { %v918_v30 = vmul.f32 %v2790_v26, %v876_v24  ;;  %vm924_vm11 = vweird.f32 %v2790_v26 }
 0x523   :  { %vm925_vm13 = vmor %vm923_vm12, %vm924_vm11 }
 0x524   :  { %v919_v32 = vmul.f32 %v2790_v26, %v918_v30 }
 0x526   :  { %v920_v33 = vmul.f32 0.5, %v919_v32 }
 0x528   :  { %v921_v35 = vsub.f32 1.5, %v920_v33 }
 0x52a   :  { %v922_v22 = vmul.f32 %v2790_v26, %v921_v35 }
 0x52c   :  { %v926_v10 = vsel %vm925_vm13, %v2790_v26, %v922_v22 }
 0x52d   :  { %v931_v60 = vmul.f32 %v926_v10, %v3454_v8 }
 0x52f   :  { %v939_v36 = vmul.f32 %v3475_v37, %v931_v60 }
 0x531   :  { %v947_v38 = vadd.f32 %v3481_v42, %v939_v36  ;;  %v1210_v42 = vld [vmem:[%s4186_s13 + $0x38] sm:$0xff] }
 0x532   :  { %1238 = vmatpush.msrb.mxu1 %v1210_v42 }
 0x533   :  { %2625 = vmatmul.msk.f32.gmra.mxu3 %vm132_vm1, %v947_v38 }
 0x534   :  { %1239 = vmatpush.msrb.mxu1 %v1209_v45 }
 0x536   :  { %1240 = vmatpush.msrb.mxu1 %v1208_v46 }
 0x538   :  { %1241 = vmatpush.msrb.mxu1 %v1207_v52 }
 0x53a   :  { %1242 = vmatpush.msrb.mxu1 %v1206_v47 }
 0x53c   :  { %1243 = vmatpush.msrb.mxu1 %v1205_v23 }
 0x53e   :  { %1244 = vmatpush.msrb.mxu1 %v1204_v61 }
 0x540   :  { %1245 = vmatpush.msrb.mxu1 %v1203_v2 }
 0x55e   :  { %v988_v41 = vpop.f32.mrf.mxu3 }
 0x55f   :  { %v3511_v28 = vadd.f32 %v3508_v40, %v988_v41 }
 0x561   :  { %v3514_v43 = vmul.f32 0.70710677, %v3511_v28  ;;  %v1003_v52 = vmul.f32 0.5, %v3511_v28 }
 0x563   :  { %v1013_v8 = vand.u32 2147483647, %v3514_v43  ;;  %vm1178_vm12 = vcmp.ge.f32.partialorder %v3514_v43, 0.0 }
 0x565   :  { %v1018_v0 = vmul.f32 0.3275911, %v1013_v8  ;;  %v1148_v29 = vsub.f32 0.0, %v1013_v8 }
 0x567   :  { %v1023_v37 = vadd.f32 1.0, %v1018_v0  ;;  %v1153_v7 = vmul.f32 %v1148_v29, %v1013_v8 }
 0x569   :  { %2791 = vrcp.f32 %v1023_v37  ;;  %v1039_v53 = vand.u32 2147483648, %v1023_v37  ;;  %v1037_v56 = vand.u32 2147483647, %v1023_v37  ;;  %vm1033_vm15 = vweird.f32 %v1023_v37 }
 0x56a   :  { %v1158_v12 = vmul.f32 1.442695, %v1153_v7 }
 0x56b   :  { %v1040_v27 = vor.u32 1.1754944e-38, %v1039_v53  ;;  %vm1038_vm4 = vcmp.eq.f32.partialorder %v1037_v56, 8.507059e+37 }
 0x56f   :  { %v2792_v50 = vpop.eup %2791 }
 0x570   :  { %v1029_v51 = vmul.f32 %v2792_v50, %v1023_v37  ;;  %vm1034_vm14 = vweird.f32 %v2792_v50 }
 0x571   :  { %vm1035_vm3 = vmor %vm1033_vm15, %vm1034_vm14 }
 0x572   :  { %v1030_v15 = vsub.f32 1.0, %v1029_v51 }
 0x574   :  { %v1031_v19 = vmul.f32 %v2792_v50, %v1030_v15  ;;  %v991_v25 = vpop.f32.mrf.mxu3 }
 0x575   :  { %v3536_v49 = vadd.f32 %v3508_v40, %v991_v25 }
 0x576   :  { %v1032_v58 = vadd.f32 %v2792_v50, %v1031_v19 }
 0x577   :  { %v3542_v62 = vmul.f32 0.70710677, %v3536_v49 }
 0x578   :  { %v1036_v63 = vsel %vm1035_vm3, %v2792_v50, %v1032_v58 }
 0x579   :  { %v1041_v31 = vsel %vm1038_vm4, %v1040_v27, %v1036_v63  ;;  %v1014_v3 = vand.u32 2147483647, %v3542_v62  ;;  %vm1179_vm4 = vcmp.ge.f32.partialorder %v3542_v62, 0.0 }
 0x57a   :  { %v1103_v4 = vmul.f32 1.0614054, %v1041_v31 }
 0x57b   :  { %v1019_v1 = vmul.f32 0.3275911, %v1014_v3  ;;  %v1149_v0 = vsub.f32 0.0, %v1014_v3 }
 0x57c   :  { %v1108_v6 = vadd.f32 -1.4531521, %v1103_v4 }
 0x57d   :  { %v1024_v54 = vadd.f32 1.0, %v1019_v1  ;;  %v1154_v47 = vmul.f32 %v1149_v0, %v1014_v3 }
 0x57e   :  { %v1113_v9 = vmul.f32 %v1108_v6, %v1041_v31 }
 0x57f   :  { %2793 = vrcp.f32 %v1024_v54  ;;  %v1054_v20 = vand.u32 2147483648, %v1024_v54  ;;  %v1052_v33 = vand.u32 2147483647, %v1024_v54  ;;  %vm1048_vm9 = vweird.f32 %v1024_v54 }
 0x580   :  { %v1118_v11 = vadd.f32 1.4214138, %v1113_v9  ;;  %2795 = vpow2.f32 %v1158_v12  ;;  %v1160_v23 = vmul.f32 1.442695, %v1154_v47 }
 0x581   :  { %v1055_v36 = vor.u32 1.1754944e-38, %v1054_v20  ;;  %vm1053_vm11 = vcmp.eq.f32.partialorder %v1052_v33, 8.507059e+37 }
 0x582   :  { %v1123_v13 = vmul.f32 %v1118_v11, %v1041_v31 }
 0x584   :  { %v1128_v14 = vadd.f32 -0.28449672, %v1123_v13 }
 0x585   :  { %v2794_v16 = vpop.eup %2793 }
 0x586   :  { %v1133_v5 = vmul.f32 %v1128_v14, %v1041_v31  ;;  %v1044_v59 = vmul.f32 %v2794_v16, %v1024_v54  ;;  %vm1049_vm5 = vweird.f32 %v2794_v16  ;;  %v2796_v35 = vpop.eup %2795 }
 0x587   :  { %v994_v17 = vpop.f32.mrf.mxu3  ;;  %vm1050_vm10 = vmor %vm1048_vm9, %vm1049_vm5 }
 0x588   :  { %v3549_v18 = vadd.f32 %v3508_v40, %v994_v17  ;;  %v1138_v21 = vadd.f32 0.2548296, %v1133_v5  ;;  %v1045_v24 = vsub.f32 1.0, %v1044_v59 }
 0x58a   :  { %v3552_v26 = vmul.f32 0.70710677, %v3549_v18  ;;  %v1143_v30 = vmul.f32 %v1138_v21, %v1041_v31  ;;  %v1046_v32 = vmul.f32 %v2794_v16, %v1045_v24 }
 0x58c   :  { %v1015_v22 = vand.u32 2147483647, %v3552_v26  ;;  %v1168_v10 = vmul.f32 %v2796_v35, %v1143_v30  ;;  %v1047_v60 = vadd.f32 %v2794_v16, %v1046_v32 }
 0x58e   :  { %v1020_v38 = vmul.f32 0.3275911, %v1015_v22  ;;  %v1173_v41 = vsub.f32 1.0, %v1168_v10  ;;  %v1051_v8 = vsel %vm1050_vm10, %v2794_v16, %v1047_v60  ;;  %v1150_v11 = vsub.f32 0.0, %v1015_v22 }
 0x58f   :  { %v1056_v42 = vsel %vm1053_vm11, %v1055_v36, %v1051_v8  ;;  %v1004_v60 = vmul.f32 0.5, %v3536_v49 }
 0x590   :  { %v1025_v37 = vadd.f32 1.0, %v1020_v38  ;;  %v1183_v45 = vsub.f32 0.0, %v1173_v41  ;;  %v1104_v46 = vmul.f32 1.0614054, %v1056_v42  ;;  %v1155_v21 = vmul.f32 %v1150_v11, %v1015_v22 }
 0x592   :  { %2797 = vrcp.f32 %v1025_v37  ;;  %v1188_v50 = vsel %vm1178_vm12, %v1173_v41, %v1183_v45  ;;  %v1109_v51 = vadd.f32 -1.4531521, %v1104_v46  ;;  %v1069_v43 = vand.u32 2147483648, %v1025_v37 }
 0x593   :  { %v1193_v15 = vadd.f32 1.0, %v1188_v50  ;;  %2799 = vpow2.f32 %v1160_v23  ;;  %v1067_v31 = vand.u32 2147483647, %v1025_v37  ;;  %vm1063_vm14 = vweird.f32 %v1025_v37 }
 0x594   :  { %v1114_v53 = vmul.f32 %v1109_v51, %v1056_v42  ;;  %v1070_v1 = vor.u32 1.1754944e-38, %v1069_v43  ;;  %v1162_v10 = vmul.f32 1.442695, %v1155_v21  ;;  %vm1180_vm12 = vcmp.ge.f32.partialorder %v3552_v26, 0.0 }
 0x595   :  { %v1198_v19 = vmul.f32 %v1193_v15, %v1003_v52  ;;  %vm1068_vm3 = vcmp.eq.f32.partialorder %v1067_v31, 8.507059e+37 }
 0x596   :  { %v1119_v56 = vadd.f32 1.4214138, %v1114_v53 }
 0x597   :  { %2626 = vmatmul.msk.f32.vlgmr.msrb.gmra.mxu1 %vm82_vm0, %v1198_v19 }
 0x598   :  { %v2798_v25 = vpop.eup %2797  ;;  %v1124_v61 = vmul.f32 %v1119_v56, %v1056_v42 }
 0x599   :  { %v1059_v58 = vmul.f32 %v2798_v25, %v1025_v37  ;;  %vm1064_vm13 = vweird.f32 %v2798_v25  ;;  %v2800_v9 = vpop.eup %2799 }
 0x59a   :  { %v1129_v63 = vadd.f32 -0.28449672, %v1124_v61  ;;  %vm1065_vm15 = vmor %vm1063_vm14, %vm1064_vm13 }
 0x59b   :  { %v1060_v27 = vsub.f32 1.0, %v1059_v58 }
 0x59c   :  { %v1134_v29 = vmul.f32 %v1129_v63, %v1056_v42 }
 0x59d   :  { %v1061_v2 = vmul.f32 %v2798_v25, %v1060_v27 }
 0x59e   :  { %v1139_v3 = vadd.f32 0.2548296, %v1134_v29 }
 0x59f   :  { %v997_v28 = vpop.f32.mrf.mxu3  ;;  %v1062_v4 = vadd.f32 %v2798_v25, %v1061_v2 }
 0x5a0   :  { %v3559_v6 = vadd.f32 %v3508_v40, %v997_v28  ;;  %v1144_v7 = vmul.f32 %v1139_v3, %v1056_v42 }
 0x5a1   :  { %v1066_v54 = vsel %vm1065_vm15, %v2798_v25, %v1062_v4 }
 0x5a2   :  { %v3562_v12 = vmul.f32 0.70710677, %v3559_v6  ;;  %v1071_v13 = vsel %vm1068_vm3, %v1070_v1, %v1066_v54  ;;  %v1169_v14 = vmul.f32 %v2800_v9, %v1144_v7 }
 0x5a3   :  { %v1105_v16 = vmul.f32 1.0614054, %v1071_v13 }
 0x5a4   :  { %v1016_v5 = vand.u32 2147483647, %v3562_v12  ;;  %v1174_v59 = vsub.f32 1.0, %v1169_v14 }
 0x5a5   :  { %v1110_v17 = vadd.f32 -1.4531521, %v1105_v16 }
 0x5a6   :  { %v1021_v24 = vmul.f32 0.3275911, %v1016_v5  ;;  %v1184_v20 = vsub.f32 0.0, %v1174_v59  ;;  %v1151_v27 = vsub.f32 0.0, %v1016_v5 }
 0x5a7   :  { %v1115_v30 = vmul.f32 %v1110_v17, %v1071_v13 }
 0x5a8   :  { %v1026_v32 = vadd.f32 1.0, %v1021_v24  ;;  %v1189_v33 = vsel %vm1179_vm4, %v1174_v59, %v1184_v20  ;;  %v1156_v4 = vmul.f32 %v1151_v27, %v1016_v5  ;;  %vm1181_vm4 = vcmp.ge.f32.partialorder %v3562_v12, 0.0 }
 0x5a9   :  { %v1120_v35 = vadd.f32 1.4214138, %v1115_v30  ;;  %v1194_v36 = vadd.f32 1.0, %v1189_v33 }
 0x5aa   :  { %2801 = vrcp.f32 %v1026_v32  ;;  %v1084_v50 = vand.u32 2147483648, %v1026_v32  ;;  %v1082_v52 = vand.u32 2147483647, %v1026_v32  ;;  %vm1078_vm9 = vweird.f32 %v1026_v32 }
 0x5ab   :  { %v1125_v38 = vmul.f32 %v1120_v35, %v1071_v13  ;;  %v1199_v41 = vmul.f32 %v1194_v36, %v1004_v60  ;;  %2803 = vpow2.f32 %v1162_v10  ;;  %v1164_v26 = vmul.f32 1.442695, %v1156_v4 }
 0x5ac   :  { %v1085_v56 = vor.u32 1.1754944e-38, %v1084_v50  ;;  %vm1083_vm11 = vcmp.eq.f32.partialorder %v1082_v52, 8.507059e+37 }
 0x5ad   :  { %v1130_v8 = vadd.f32 -0.28449672, %v1125_v38  ;;  %2627 = vmatmul.msk.f32.gmra.mxu1 %vm82_vm0, %v1199_v41 }
 0x5af   :  { %v1135_v22 = vmul.f32 %v1130_v8, %v1071_v13 }
 0x5b0   :  { %v2802_v0 = vpop.eup %2801 }
 0x5b1   :  { %v1074_v37 = vmul.f32 %v2802_v0, %v1026_v32  ;;  %v1140_v42 = vadd.f32 0.2548296, %v1135_v22  ;;  %v2804_v46 = vpop.eup %2803  ;;  %vm1079_vm5 = vweird.f32 %v2802_v0 }
 0x5b2   :  { %vm1080_vm10 = vmor %vm1078_vm9, %vm1079_vm5 }
 0x5b3   :  { %v1075_v45 = vsub.f32 1.0, %v1074_v37  ;;  %v1145_v62 = vmul.f32 %v1140_v42, %v1071_v13 }
 0x5b5   :  { %v1076_v51 = vmul.f32 %v2802_v0, %v1075_v45  ;;  %v1170_v15 = vmul.f32 %v2804_v46, %v1145_v62 }
 0x5b6   :  { %v1000_v49 = vpop.f32.mrf.mxu3 }
 0x5b7   :  { %v3569_v47 = vadd.f32 %v3508_v40, %v1000_v49  ;;  %v1175_v53 = vsub.f32 1.0, %v1170_v15  ;;  %v1077_v19 = vadd.f32 %v2802_v0, %v1076_v51  ;;  %v1005_v40 = vmul.f32 0.5, %v3549_v18 }
 0x5b9   :  { %v3572_v25 = vmul.f32 0.70710677, %v3569_v47  ;;  %v1185_v23 = vsub.f32 0.0, %v1175_v53  ;;  %v1081_v58 = vsel %vm1080_vm10, %v2802_v0, %v1077_v19  ;;  %v1006_v0 = vmul.f32 0.5, %v3559_v6 }
 0x5ba   :  { %v1086_v61 = vsel %vm1083_vm11, %v1085_v56, %v1081_v58  ;;  %v1007_v58 = vmul.f32 0.5, %v3569_v47 }
 0x5bb   :  { %v1017_v63 = vand.u32 2147483647, %v3572_v25  ;;  %v1190_v43 = vsel %vm1180_vm12, %v1175_v53, %v1185_v23  ;;  %v1106_v2 = vmul.f32 1.0614054, %v1086_v61  ;;  %vm1182_vm5 = vcmp.ge.f32.partialorder %v3572_v25, 0.0 }
 0x5bc   :  { %v1195_v31 = vadd.f32 1.0, %v1190_v43 }
 0x5bd   :  { %v1022_v29 = vmul.f32 0.3275911, %v1017_v63  ;;  %v1111_v28 = vadd.f32 -1.4531521, %v1106_v2  ;;  %v1152_v60 = vsub.f32 0.0, %v1017_v63 }
 0x5be   :  { %v1200_v3 = vmul.f32 %v1195_v31, %v1005_v40 }
 0x5bf   :  { %v1027_v1 = vadd.f32 1.0, %v1022_v29  ;;  %v1116_v7 = vmul.f32 %v1111_v28, %v1086_v61  ;;  %v1157_v37 = vmul.f32 %v1152_v60, %v1017_v63  ;;  %v2708_v63 = vld [vmem:[%s4187_s14] ss:$0 sm:$0xff] }
 0x5c0   :  { %2628 = vmatmul.msk.f32.gmra.mxu1 %vm82_vm0, %v1200_v3 }
 0x5c1   :  { %2805 = vrcp.f32 %v1027_v1  ;;  %v1121_v54 = vadd.f32 1.4214138, %v1116_v7  ;;  %v1099_v17 = vand.u32 2147483648, %v1027_v1  ;;  %v1097_v24 = vand.u32 2147483647, %v1027_v1 }
 0x5c2   :  { %2807 = vpow2.f32 %v1164_v26  ;;  %vm1093_vm14 = vweird.f32 %v1027_v1  ;;  %v1166_v50 = vmul.f32 1.442695, %v1157_v37 }
 0x5c3   :  { %v1126_v9 = vmul.f32 %v1121_v54, %v1086_v61  ;;  %v1100_v33 = vor.u32 1.1754944e-38, %v1099_v17  ;;  %vm1098_vm3 = vcmp.eq.f32.partialorder %v1097_v24, 8.507059e+37 }
 0x5c4   :  { %2809 = vpow2.f32 %v1166_v50  ;;  %v2633_v50 = vld [vmem:[%s4214_s26 + $0x20] sm:$0xff] }
 0x5c5   :  { %v1131_v11 = vadd.f32 -0.28449672, %v1126_v9 }
 0x5c7   :  { %v2806_v13 = vpop.eup %2805  ;;  %v1136_v16 = vmul.f32 %v1131_v11, %v1086_v61 }
 0x5c8   :  { %v1089_v14 = vmul.f32 %v2806_v13, %v1027_v1  ;;  %vm1094_vm13 = vweird.f32 %v2806_v13  ;;  %v2808_v20 = vpop.eup %2807 }
 0x5c9   :  { %v1141_v18 = vadd.f32 0.2548296, %v1136_v16  ;;  %vm1095_vm15 = vmor %vm1093_vm14, %vm1094_vm13 }
 0x5ca   :  { %v1090_v59 = vsub.f32 1.0, %v1089_v14  ;;  %v2810_v19 = vpop.eup %2809 }
 0x5cb   :  { %v1146_v5 = vmul.f32 %v1141_v18, %v1086_v61 }
 0x5cc   :  { %v1091_v21 = vmul.f32 %v2806_v13, %v1090_v59 }
 0x5cd   :  { %v1171_v30 = vmul.f32 %v2808_v20, %v1146_v5 }
 0x5ce   :  { %v1092_v32 = vadd.f32 %v2806_v13, %v1091_v21 }
 0x5cf   :  { %v1176_v35 = vsub.f32 1.0, %v1171_v30 }
 0x5d0   :  { %v1096_v10 = vsel %vm1095_vm15, %v2806_v13, %v1092_v32 }
 0x5d1   :  { %v1101_v36 = vsel %vm1098_vm3, %v1100_v33, %v1096_v10  ;;  %v1186_v38 = vsub.f32 0.0, %v1176_v35  ;;  %v2636_v10 = vld [vmem:[%s4214_s26 + $0x38] sm:$0xff] }
 0x5d2   :  { %v1107_v41 = vmul.f32 1.0614054, %v1101_v36  ;;  %1434 = vmatpush.msrb.mxu2 %v2636_v10 }
 0x5d3   :  { %v1191_v8 = vsel %vm1181_vm4, %v1176_v35, %v1186_v38 }
 0x5d4   :  { %v1112_v22 = vadd.f32 -1.4531521, %v1107_v41  ;;  %v1196_v42 = vadd.f32 1.0, %v1191_v8 }
 0x5d6   :  { %v1117_v45 = vmul.f32 %v1112_v22, %v1101_v36  ;;  %v1201_v62 = vmul.f32 %v1196_v42, %v1006_v0 }
 0x5d8   :  { %v1122_v46 = vadd.f32 1.4214138, %v1117_v45  ;;  %2629 = vmatmul.msk.f32.gmra.mxu1 %vm82_vm0, %v1201_v62  ;;  %v2635_v62 = vld [vmem:[%s4214_s26 + $0x30] sm:$0xff] }
 0x5d9   :  { %1435 = vmatpush.msrb.mxu2 %v2635_v62 }
 0x5da   :  { %v1127_v51 = vmul.f32 %v1122_v46, %v1101_v36  ;;  %v2634_v46 = vld [vmem:[%s4214_s26 + $0x28] sm:$0xff] }
 0x5db   :  { %1436 = vmatpush.msrb.mxu2 %v2634_v46 }
 0x5dc   :  { %v1132_v52 = vadd.f32 -0.28449672, %v1127_v51 }
 0x5dd   :  { %1437 = vmatpush.msrb.mxu2 %v2633_v50 }
 0x5de   :  { %v1137_v15 = vmul.f32 %v1132_v52, %v1101_v36 }
 0x5e0   :  { %v1142_v49 = vadd.f32 0.2548296, %v1137_v15 }
 0x5e2   :  { %v1147_v53 = vmul.f32 %v1142_v49, %v1101_v36 }
 0x5e4   :  { %v1172_v12 = vmul.f32 %v2810_v19, %v1147_v53 }
 0x5e6   :  { %v1177_v56 = vsub.f32 1.0, %v1172_v12 }
 0x5e8   :  { %v1187_v23 = vsub.f32 0.0, %v1177_v56 }
 0x5ea   :  { %v1192_v6 = vsel %vm1182_vm5, %v1177_v56, %v1187_v23 }
 0x5eb   :  { %v1197_v61 = vadd.f32 1.0, %v1192_v6  ;;  %v3659_v6 = vld [vmem:[%s4177_s3 + $0x1] ss:$0 sm:$0xff] }
 0x5ed   :  { %v1202_v27 = vmul.f32 %v1197_v61, %v1007_v58 }
 0x5ef   :  { %2630 = vmatmul.msk.f32.gmra.mxu1 %vm82_vm0, %v1202_v27 }
 0x614   :  { %v1247_v43 = vpop.f32.mrf.mxu1 }
 0x615   :  { %v1248_v2 = vadd.f32 %v2708_v63, %v1247_v43 }
 0x617   :  { %v3588_v40 = vadd.f32 %v1248_v2, %v3404_v44 }
 0x619   :  { %v1271_v31 = vsel %vm132_vm1, %v3588_v40, 0.0 }
 0x61a   :  { %1272 = vadd.xlane.f32.xlu0 %v1271_v31 }
 0x62a   :  { %v1250_v25 = vpop.f32.mrf.mxu1 }
 0x62b   :  { %v1251_v29 = vadd.f32 %v2708_v63, %v1250_v25 }
 0x62d   :  { %v3593_v47 = vadd.f32 %v1251_v29, %v3409_v48 }
 0x62f   :  { %v1274_v28 = vsel %vm132_vm1, %v3593_v47, 0.0 }
 0x630   :  { %1275 = vadd.xlane.f32.xlu2 %v1274_v28 }
 0x63d   :  { %v1253_v3 = vpop.f32.mrf.mxu1 }
 0x63e   :  { %v1254_v4 = vadd.f32 %v2708_v63, %v1253_v3 }
 0x640   :  { %v3598_v1 = vadd.f32 %v1254_v4, %v3414_v34 }
 0x642   :  { %v1277_v44 = vsel %vm132_vm1, %v3598_v1, 0.0 }
 0x643   :  { %1278 = vadd.xlane.f32.xlu1 %v1277_v44 }
 0x655   :  { %v1256_v7 = vpop.f32.mrf.mxu1 }
 0x656   :  { %v1257_v54 = vadd.f32 %v2708_v63, %v1256_v7 }
 0x658   :  { %v3603_v26 = vadd.f32 %v1257_v54, %v3419_v55 }
 0x65a   :  { %v1280_v48 = vsel %vm132_vm1, %v3603_v26, 0.0 }
 0x65b   :  { %1281 = vadd.xlane.f32.xlu0 %v1280_v48 }
 0x66c   :  { %v1259_v9 = vpop.f32.mrf.mxu1 }
 0x66d   :  { %v1260_v11 = vadd.f32 %v2708_v63, %v1259_v9  ;;  %v3664_v63 = vld [vmem:[%s4178_s4 + $0x1] ss:$0 sm:$0xff] }
 0x66f   :  { %v3608_v13 = vadd.f32 %v1260_v11, %v3424_v57 }
 0x671   :  { %v1283_v34 = vsel %vm145_vm2, %v3608_v13, 0.0 }
 0x672   :  { %1284 = vadd.xlane.f32.xlu2 %v1283_v34 }
 0x68d   :  { %v1273_v14 = vpop.xlane.xlu0 %1272 }
 0x68e   :  { %v1286_v16 = vmul.f32 %v1273_v14, %v3102_v39 }
 0x690   :  { %v1291_v59 = vsub.f32 %v3588_v40, %v1286_v16 }
 0x692   :  { %v1296_v55 = vmul.f32 %v1291_v59, %v1291_v59 }
 0x694   :  { %v1301_v18 = vsel %vm132_vm1, %v1296_v55, 0.0 }
 0x695   :  { %1302 = vadd.xlane.f32.xlu1 %v1301_v18 }
 0x6a3   :  { %v1276_v17 = vpop.xlane.xlu2 %1275 }
 0x6a4   :  { %v1287_v21 = vmul.f32 %v1276_v17, %v3102_v39 }
 0x6a6   :  { %v3617_v24 = vsub.f32 %v3593_v47, %v1287_v21 }
 0x6a8   :  { %v1297_v57 = vmul.f32 %v3617_v24, %v3617_v24 }
 0x6aa   :  { %v1304_v5 = vsel %vm132_vm1, %v1297_v57, 0.0 }
 0x6ab   :  { %1305 = vadd.xlane.f32.xlu0 %v1304_v5 }
 0x6b6   :  { %v1279_v20 = vpop.xlane.xlu1 %1278 }
 0x6b7   :  { %v1288_v30 = vmul.f32 %v1279_v20, %v3102_v39 }
 0x6b9   :  { %v3624_v32 = vsub.f32 %v3598_v1, %v1288_v30 }
 0x6bb   :  { %v1298_v33 = vmul.f32 %v3624_v32, %v3624_v32 }
 0x6bd   :  { %v1307_v35 = vsel %vm132_vm1, %v1298_v33, 0.0 }
 0x6be   :  { %1308 = vadd.xlane.f32.xlu2 %v1307_v35 }
 0x6ce   :  { %v1282_v60 = vpop.xlane.xlu0 %1281 }
 0x6cf   :  { %v1289_v36 = vmul.f32 %v1282_v60, %v3102_v39 }
 0x6d1   :  { %v3634_v38 = vsub.f32 %v3603_v26, %v1289_v36 }
 0x6d3   :  { %v1299_v41 = vmul.f32 %v3634_v38, %v3634_v38 }
 0x6d5   :  { %v1310_v8 = vsel %vm132_vm1, %v1299_v41, 0.0 }
 0x6d6   :  { %1311 = vadd.xlane.f32.xlu1 %v1310_v8 }
 0x6e5   :  { %v1285_v22 = vpop.xlane.xlu2 %1284 }
 0x6e6   :  { %v1290_v0 = vmul.f32 %v1285_v22, %v3102_v39 }
 0x6e8   :  { %v3641_v37 = vsub.f32 %v3608_v13, %v1290_v0 }
 0x6ea   :  { %v1300_v42 = vmul.f32 %v3641_v37, %v3641_v37 }
 0x6ec   :  { %v1313_v45 = vsel %vm145_vm2, %v1300_v42, 0.0 }
 0x6ed   :  { %1314 = vadd.xlane.f32.xlu0 %v1313_v45 }
 0x708   :  { %v1303_v51 = vpop.xlane.xlu1 %1302 }
 0x709   :  { %v1316_v52 = vmul.f32 %v1303_v51, %v3102_v39 }
 0x70b   :  { %v1321_v15 = vadd.f32 1e-06, %v1316_v52 }
 0x70d   :  { %2811 = vrsqrt.f32 %v1321_v15  ;;  %vm1332_vm10 = vweird.f32 %v1321_v15 }
 0x713   :  { %v2812_v49 = vpop.eup %2811 }
 0x714   :  { %v1327_v53 = vmul.f32 %v2812_v49, %v1321_v15  ;;  %vm1333_vm9 = vweird.f32 %v2812_v49 }
 0x715   :  { %vm1334_vm11 = vmor %vm1332_vm10, %vm1333_vm9 }
 0x716   :  { %v1328_v19 = vmul.f32 %v2812_v49, %v1327_v53 }
 0x718   :  { %v1329_v12 = vmul.f32 0.5, %v1328_v19 }
 0x71a   :  { %v1330_v56 = vsub.f32 1.5, %v1329_v12 }
 0x71c   :  { %v1331_v23 = vmul.f32 %v2812_v49, %v1330_v56 }
 0x71e   :  { %v1335_v58 = vsel %vm1334_vm11, %v2812_v49, %v1331_v23  ;;  %v1306_v27 = vpop.xlane.xlu0 %1305 }
 0x71f   :  { %v1376_v61 = vmul.f32 %v1335_v58, %v1291_v59  ;;  %v1317_v43 = vmul.f32 %v1306_v27, %v3102_v39 }
 0x721   :  { %v1384_v2 = vmul.f32 %v3659_v6, %v1376_v61  ;;  %v1322_v31 = vadd.f32 1e-06, %v1317_v43  ;;  %v2711_v61 = vld [vmem:[%s4179_s6 + $0x1] ss:$0 sm:$0xff]  ;;  %s4218_s6 = smov 64  }
 0x723   :  { %v1392_v25 = vadd.f32 %v3664_v63, %v1384_v2  ;;  %2813 = vrsqrt.f32 %v1322_v31  ;;  %vm1342_vm13 = vweird.f32 %v1322_v31 }
 0x725   :  { %2638 = vmatmul.msk.f32.vlgmr.msrb.gmra.mxu2 %vm132_vm1, %v1392_v25 }
 0x729   :  { %v2814_v29 = vpop.eup %2813 }
 0x72a   :  { %v1337_v28 = vmul.f32 %v2814_v29, %v1322_v31  ;;  %vm1343_vm12 = vweird.f32 %v2814_v29 }
 0x72b   :  { %vm1344_vm14 = vmor %vm1342_vm13, %vm1343_vm12 }
 0x72c   :  { %v1338_v3 = vmul.f32 %v2814_v29, %v1337_v28 }
 0x72e   :  { %v1339_v4 = vmul.f32 0.5, %v1338_v3 }
 0x730   :  { %v1340_v7 = vsub.f32 1.5, %v1339_v4 }
 0x731   :  { %v1309_v44 = vpop.xlane.xlu2 %1308 }
 0x732   :  { %v1318_v54 = vmul.f32 %v1309_v44, %v3102_v39  ;;  %v1341_v48 = vmul.f32 %v2814_v29, %v1340_v7 }
 0x734   :  { %v1323_v9 = vadd.f32 1e-06, %v1318_v54  ;;  %v1345_v11 = vsel %vm1344_vm14, %v2814_v29, %v1341_v48 }
 0x735   :  { %v1377_v34 = vmul.f32 %v1345_v11, %v3617_v24 }
 0x736   :  { %2815 = vrsqrt.f32 %v1323_v9  ;;  %vm1352_vm3 = vweird.f32 %v1323_v9 }
 0x737   :  { %v1385_v14 = vmul.f32 %v3659_v6, %v1377_v34 }
 0x739   :  { %v1393_v16 = vadd.f32 %v3664_v63, %v1385_v14 }
 0x73b   :  { %2639 = vmatmul.msk.f32.gmra.mxu2 %vm132_vm1, %v1393_v16 }
 0x73c   :  { %v2816_v59 = vpop.eup %2815 }
 0x73d   :  { %v1347_v55 = vmul.f32 %v2816_v59, %v1323_v9  ;;  %vm1353_vm15 = vweird.f32 %v2816_v59 }
 0x73e   :  { %vm1354_vm4 = vmor %vm1352_vm3, %vm1353_vm15 }
 0x73f   :  { %v1348_v18 = vmul.f32 %v2816_v59, %v1347_v55 }
 0x741   :  { %v1349_v17 = vmul.f32 0.5, %v1348_v18 }
 0x743   :  { %v1350_v21 = vsub.f32 1.5, %v1349_v17 }
 0x745   :  { %v1351_v57 = vmul.f32 %v2816_v59, %v1350_v21 }
 0x747   :  { %v1355_v5 = vsel %vm1354_vm4, %v2816_v59, %v1351_v57 }
 0x748   :  { %v1378_v20 = vmul.f32 %v1355_v5, %v3624_v32 }
 0x749   :  { %v1312_v30 = vpop.xlane.xlu1 %1311 }
 0x74a   :  { %v1386_v24 = vmul.f32 %v3659_v6, %v1378_v20  ;;  %v1319_v33 = vmul.f32 %v1312_v30, %v3102_v39 }
 0x74c   :  { %v1394_v35 = vadd.f32 %v3664_v63, %v1386_v24  ;;  %v1324_v10 = vadd.f32 1e-06, %v1319_v33 }
 0x74e   :  { %2640 = vmatmul.msk.f32.gmra.mxu2 %vm132_vm1, %v1394_v35  ;;  %2817 = vrsqrt.f32 %v1324_v10  ;;  %vm1362_vm9 = vweird.f32 %v1324_v10 }
 0x754   :  { %v2818_v60 = vpop.eup %2817 }
 0x755   :  { %v1357_v36 = vmul.f32 %v2818_v60, %v1324_v10  ;;  %vm1363_vm5 = vweird.f32 %v2818_v60 }
 0x756   :  { %vm1364_vm10 = vmor %vm1362_vm9, %vm1363_vm5 }
 0x757   :  { %v1358_v41 = vmul.f32 %v2818_v60, %v1357_v36 }
 0x759   :  { %v1359_v8 = vmul.f32 0.5, %v1358_v41 }
 0x75b   :  { %v1360_v22 = vsub.f32 1.5, %v1359_v8 }
 0x75d   :  { %v1361_v0 = vmul.f32 %v2818_v60, %v1360_v22 }
 0x75f   :  { %v1365_v32 = vsel %vm1364_vm10, %v2818_v60, %v1361_v0 }
 0x760   :  { %v1315_v42 = vpop.xlane.xlu0 %1314  ;;  %v1379_v62 = vmul.f32 %v1365_v32, %v3634_v38 }
 0x761   :  { %v1320_v45 = vmul.f32 %v1315_v42, %v3102_v39 }
 0x762   :  { %v1387_v50 = vmul.f32 %v3659_v6, %v1379_v62 }
 0x763   :  { %v1325_v46 = vadd.f32 1e-06, %v1320_v45 }
 0x764   :  { %v1395_v51 = vadd.f32 %v3664_v63, %v1387_v50 }
 0x765   :  { %2819 = vrsqrt.f32 %v1325_v46  ;;  %vm1372_vm12 = vweird.f32 %v1325_v46 }
 0x766   :  { %2641 = vmatmul.msk.f32.gmra.mxu2 %vm132_vm1, %v1395_v51 }
 0x76b   :  { %v2820_v52 = vpop.eup %2819 }
 0x76c   :  { %v1367_v15 = vmul.f32 %v2820_v52, %v1325_v46  ;;  %vm1373_vm11 = vweird.f32 %v2820_v52 }
 0x76d   :  { %vm1374_vm13 = vmor %vm1372_vm12, %vm1373_vm11 }
 0x76e   :  { %v1368_v49 = vmul.f32 %v2820_v52, %v1367_v15 }
 0x770   :  { %v1369_v53 = vmul.f32 0.5, %v1368_v49 }
 0x772   :  { %v1370_v19 = vsub.f32 1.5, %v1369_v53 }
 0x774   :  { %v1371_v12 = vmul.f32 %v2820_v52, %v1370_v19 }
 0x776   :  { %v1375_v56 = vsel %vm1374_vm13, %v2820_v52, %v1371_v12 }
 0x777   :  { %v1380_v38 = vmul.f32 %v1375_v56, %v3641_v37 }
 0x779   :  { %v1388_v23 = vmul.f32 %v3659_v6, %v1380_v38 }
 0x77b   :  { %v1396_v58 = vadd.f32 %v3664_v63, %v1388_v23 }
 0x77d   :  { %2642 = vmatmul.msk.f32.gmra.mxu2 %vm132_vm1, %v1396_v58 }
 0x7a8   :  { %v1439_v27 = vpop.f32.mrf.mxu2 }
 0x7a9   :  { %v1440_v43 = vadd.f32 %v2711_v61, %v1439_v27 }
 0x7ab   :  { %1464 = vrot.lane.b32.xlu0 %v1440_v43, %s2914_s27  ;;  %1484 = vrot.lane.b32.xlu2 %v1440_v43, %s2913_s5  ;;  %v1454_v11 = vmul.f32 0.35355338, %v1440_v43 }
 0x7ac   :  { %1499 = vrot.lane.b32.xlu1 %v1440_v43, %s2912_s20 }
 0x7b3   :  { %1539 = vrot.lane.b32.xlu0 %v1440_v43, %s2916_s29  ;;  %1524 = vrot.lane.b32.xlu2 %v1440_v43, %s4215_s23 }
 0x7b4   :  { %1564 = vrot.lane.b32.xlu1 %v1440_v43, %s4216_s24 }
 0x7bb   :  { %1579 = vrot.lane.b32.xlu2 %v1440_v43, %s4217_s25 }
 0x7be   :  { %v1442_v37 = vpop.f32.mrf.mxu2 }
 0x7bf   :  { %v3699_v6 = vadd.f32 %v2711_v61, %v1442_v37 }
 0x7c1   :  { %1501 = vrot.lane.b32.xlu1 %v3699_v6, %s2912_s20  ;;  %1486 = vrot.lane.b32.xlu0 %v3699_v6, %s2913_s5  ;;  %v1455_v12 = vmul.f32 0.35355338, %v3699_v6 }
 0x7c3   :  { %1704 = vrot.lane.b32.xlu2 %v1440_v43, %s4218_s6 }
 0x7c9   :  { %1541 = vrot.lane.b32.xlu1 %v3699_v6, %s2916_s29  ;;  %1526 = vrot.lane.b32.xlu0 %v3699_v6, %s4215_s23 }
 0x7cb   :  { %1466 = vrot.lane.b32.xlu2 %v3699_v6, %s2914_s27 }
 0x7d1   :  { %v1445_v63 = vpop.f32.mrf.mxu2  ;;  %1581 = vrot.lane.b32.xlu0 %v3699_v6, %s4217_s25 }
 0x7d2   :  { %v3712_v2 = vadd.f32 %v2711_v61, %v1445_v63 }
 0x7d3   :  { %1566 = vrot.lane.b32.xlu2 %v3699_v6, %s4216_s24 }
 0x7d4   :  { %1488 = vrot.lane.b32.xlu1 %v3712_v2, %s2913_s5 }
 0x7d9   :  { %1468 = vrot.lane.b32.xlu0 %v3712_v2, %s2914_s27 }
 0x7db   :  { %1706 = vrot.lane.b32.xlu2 %v3699_v6, %s4218_s6 }
 0x7dc   :  { %1528 = vrot.lane.b32.xlu1 %v3712_v2, %s4215_s23 }
 0x7e1   :  { %1568 = vrot.lane.b32.xlu0 %v3712_v2, %s4216_s24 }
 0x7e3   :  { %1503 = vrot.lane.b32.xlu2 %v3712_v2, %s2912_s20 }
 0x7e4   :  { %1583 = vrot.lane.b32.xlu1 %v3712_v2, %s4217_s25 }
 0x7e9   :  { %v1448_v31 = vpop.f32.mrf.mxu2  ;;  %1708 = vrot.lane.b32.xlu0 %v3712_v2, %s4218_s6 }
 0x7ea   :  { %v3732_v25 = vadd.f32 %v2711_v61, %v1448_v31 }
 0x7eb   :  { %1543 = vrot.lane.b32.xlu2 %v3712_v2, %s2916_s29 }
 0x7ec   :  { %1470 = vrot.lane.b32.xlu1 %v3732_v25, %s2914_s27 }
 0x7f1   :  { %1505 = vrot.lane.b32.xlu0 %v3732_v25, %s2912_s20 }
 0x7f3   :  { %1490 = vrot.lane.b32.xlu2 %v3732_v25, %s2913_s5 }
 0x7f4   :  { %1570 = vrot.lane.b32.xlu1 %v3732_v25, %s4216_s24 }
 0x7f9   :  { %1545 = vrot.lane.b32.xlu0 %v3732_v25, %s2916_s29 }
 0x7fb   :  { %1530 = vrot.lane.b32.xlu2 %v3732_v25, %s4215_s23 }
 0x7fc   :  { %1710 = vrot.lane.b32.xlu1 %v3732_v25, %s4218_s6 }
 0x800   :  { %v1451_v29 = vpop.f32.mrf.mxu2 }
 0x801   :  { %v3752_v28 = vadd.f32 %v2711_v61, %v1451_v29 }
 0x803   :  { %1492 = vrot.lane.b32.xlu0 %v3752_v28, %s2913_s5  ;;  %1585 = vrot.lane.b32.xlu2 %v3732_v25, %s4217_s25  ;;  %s4219_s5 = smov 8  }
 0x804   :  { %1507 = vrot.lane.b32.xlu1 %v3752_v28, %s2912_s20 }
 0x805   :  { %v1485_v3 = vpop.permute.xlu2 %1484 }
 0x80b   :  { %1532 = vrot.lane.b32.xlu0 %v3752_v28, %s4215_s23  ;;  %1472 = vrot.lane.b32.xlu2 %v3752_v28, %s2914_s27 }
 0x80c   :  { %1547 = vrot.lane.b32.xlu1 %v3752_v28, %s2916_s29 }
 0x80d   :  { %v1525_v4 = vpop.permute.xlu2 %1524 }
 0x813   :  { %1572 = vrot.lane.b32.xlu0 %v3752_v28, %s4216_s24  ;;  %1712 = vrot.lane.b32.xlu2 %v3752_v28, %s4218_s6 }
 0x814   :  { %1587 = vrot.lane.b32.xlu1 %v3752_v28, %s4217_s25 }
 0x815   :  { %v1580_v44 = vpop.permute.xlu2 %1579 }
 0x81d   :  { %v3772_v7 = vpop.permute.xlu2 %1704  ;;  %v1465_v54 = vpop.permute.xlu0 %1464 }
 0x81e   :  { %v1500_v48 = vpop.permute.xlu1 %1499  ;;  %v1479_v14 = vmul.f32 %v1465_v54, %v1454_v11 }
 0x81f   :  { %v1514_v9 = vsel %vm382_vm6, %v1485_v3, %v1500_v48 }
 0x820   :  { %v1519_v34 = vmul.f32 %v1514_v9, %v1454_v11 }
 0x822   :  { %v1604_v17 = vmax.f32 %v1479_v14, %v1519_v34 }
 0x825   :  { %v1540_v16 = vpop.permute.xlu0 %1539  ;;  %v1467_v55 = vpop.permute.xlu2 %1466 }
 0x826   :  { %v1565_v59 = vpop.permute.xlu1 %1564  ;;  %v1554_v18 = vsel %vm423_vm7, %v1525_v4, %v1540_v16  ;;  %v1480_v23 = vmul.f32 %v1467_v55, %v1455_v12 }
 0x827   :  { %v1594_v21 = vsel %vm464_vm8, %v1565_v59, %v1580_v44  ;;  %v1559_v57 = vmul.f32 %v1554_v18, %v1454_v11 }
 0x828   :  { %v1599_v5 = vmul.f32 %v1594_v21, %v1454_v11 }
 0x829   :  { %v1609_v20 = vmax.f32 %v1604_v17, %v1559_v57 }
 0x82b   :  { %v1614_v30 = vmax.f32 %v1609_v20, %v1599_v5 }
 0x82d   :  { %v1619_v24 = vsub.f32 %v1479_v14, %v1614_v30  ;;  %v1634_v33 = vsub.f32 %v1519_v34, %v1614_v30  ;;  %v1649_v35 = vsub.f32 %v1559_v57, %v1614_v30  ;;  %v1664_v10 = vsub.f32 %v1599_v5, %v1614_v30  ;;  %v1567_v8 = vpop.permute.xlu2 %1566 }
 0x82e   :  { %v1456_v57 = vmul.f32 0.35355338, %v3712_v2 }
 0x82f   :  { %v1624_v60 = vmul.f32 1.442695, %v1619_v24  ;;  %v1639_v36 = vmul.f32 1.442695, %v1634_v33  ;;  %v1654_v41 = vmul.f32 1.442695, %v1649_v35 }
 0x830   :  { %v1669_v22 = vmul.f32 1.442695, %v1664_v10 }
 0x831   :  { %2821 = vpow2.f32 %v1624_v60 }
 0x832   :  { %2823 = vpow2.f32 %v1639_v36 }
 0x833   :  { %2825 = vpow2.f32 %v1654_v41  ;;  %v1502_v0 = vpop.permute.xlu1 %1501  ;;  %v1487_v32 = vpop.permute.xlu0 %1486 }
 0x834   :  { %2827 = vpow2.f32 %v1669_v22  ;;  %v1515_v19 = vsel %vm382_vm6, %v1487_v32, %v1502_v0 }
 0x835   :  { %v3777_v50 = vpop.permute.xlu2 %1706  ;;  %v1520_v38 = vmul.f32 %v1515_v19, %v1455_v12 }
 0x837   :  { %v2822_v42 = vpop.eup %2821  ;;  %v1605_v61 = vmax.f32 %v1480_v23, %v1520_v38 }
 0x838   :  { %v2824_v45 = vpop.eup %2823 }
 0x839   :  { %v1679_v62 = vadd.f32 %v2824_v45, %v2822_v42  ;;  %v2826_v46 = vpop.eup %2825 }
 0x83a   :  { %v2828_v52 = vpop.eup %2827 }
 0x83b   :  { %v1684_v51 = vadd.f32 %v2826_v46, %v1679_v62  ;;  %v1542_v15 = vpop.permute.xlu1 %1541  ;;  %v1527_v49 = vpop.permute.xlu0 %1526 }
 0x83c   :  { %v1555_v56 = vsel %vm423_vm7, %v1527_v49, %v1542_v15 }
 0x83d   :  { %v1689_v53 = vadd.f32 %v2828_v52, %v1684_v51  ;;  %v1560_v58 = vmul.f32 %v1555_v56, %v1455_v12  ;;  %v1504_v27 = vpop.permute.xlu2 %1503 }
 0x83f   :  { %2829 = vrcp.f32 %v1689_v53  ;;  %v1610_v29 = vmax.f32 %v1605_v61, %v1560_v58 }
 0x843   :  { %v1582_v43 = vpop.permute.xlu0 %1581 }
 0x844   :  { %v1595_v31 = vsel %vm464_vm8, %v1567_v8, %v1582_v43 }
 0x845   :  { %v2830_v37 = vpop.eup %2829  ;;  %v1600_v3 = vmul.f32 %v1595_v31, %v1455_v12  ;;  %v1544_v24 = vpop.permute.xlu2 %1543 }
 0x846   :  { %v1489_v63 = vpop.permute.xlu1 %1488  ;;  %v1779_v4 = vmul.f32 %v2830_v37, %v2826_v46  ;;  %v1724_v44 = vmul.f32 %v2830_v37, %v2824_v45  ;;  %v1699_v54 = vmul.f32 %v2830_v37, %v2822_v42  ;;  %v1834_v21 = vmul.f32 %v2830_v37, %v2828_v52 }
 0x847   :  { %v1615_v48 = vmax.f32 %v1610_v29, %v1600_v3  ;;  %v1516_v30 = vsel %vm382_vm6, %v1489_v63, %v1504_v27 }
 0x848   :  { %v1784_v6 = vmul.f32 %v1779_v4, %v3772_v7  ;;  %v1729_v9 = vmul.f32 %v1724_v44, %v3772_v7  ;;  %v3786_v11 = vmul.f32 %v3772_v7, %v1699_v54  ;;  %v1839_v60 = vmul.f32 %v1834_v21, %v3772_v7 }
 0x849   :  { %v1620_v34 = vsub.f32 %v1480_v23, %v1615_v48  ;;  %v1635_v14 = vsub.f32 %v1520_v38, %v1615_v48  ;;  %v1650_v16 = vsub.f32 %v1560_v58, %v1615_v48  ;;  %v1665_v59 = vsub.f32 %v1600_v3, %v1615_v48 }
 0x84a   :  { %1794 = vrot.lane.b32.xlu2 %v1784_v6, %s2916_s29  ;;  %1754 = vrot.lane.b32.xlu1 %v1729_v9, %s4219_s5  ;;  %v1521_v36 = vmul.f32 %v1516_v30, %v1456_v57 }
 0x84b   :  { %1739 = vrot.lane.b32.xlu0 %v1729_v9, %s4217_s25  ;;  %v1626_v55 = vmul.f32 1.442695, %v1620_v34  ;;  %v1641_v18 = vmul.f32 1.442695, %v1635_v14  ;;  %v1469_v17 = vpop.permute.xlu0 %1468  ;;  %v1656_v5 = vmul.f32 1.442695, %v1650_v16 }
 0x84c   :  { %v1671_v33 = vmul.f32 1.442695, %v1665_v59  ;;  %v1481_v35 = vmul.f32 %v1469_v17, %v1456_v57 }
 0x84d   :  { %2831 = vpow2.f32 %v1626_v55  ;;  %v1491_v52 = vpop.permute.xlu2 %1490 }
 0x84e   :  { %v1529_v20 = vpop.permute.xlu1 %1528  ;;  %2833 = vpow2.f32 %v1641_v18  ;;  %v1606_v2 = vmax.f32 %v1481_v35, %v1521_v36  ;;  %v1457_v18 = vmul.f32 0.35355338, %v3732_v25 }
 0x84f   :  { %v1556_v10 = vsel %vm423_vm7, %v1529_v20, %v1544_v24  ;;  %2835 = vpow2.f32 %v1656_v5 }
 0x850   :  { %2837 = vpow2.f32 %v1671_v33  ;;  %v1561_v41 = vmul.f32 %v1556_v10, %v1456_v57 }
 0x852   :  { %1864 = vrot.lane.b32.xlu2 %v1839_v60, %s2921_s22  ;;  %1849 = vrot.lane.b32.xlu1 %v1839_v60, %s2912_s20  ;;  %v1611_v7 = vmax.f32 %v1606_v2, %v1561_v41 }
 0x853   :  { %1809 = vrot.lane.b32.xlu0 %v1784_v6, %s2922_s2  ;;  %v2832_v8 = vpop.eup %2831  ;;  %v1569_v22 = vpop.permute.xlu0 %1568 }
 0x854   :  { %v2834_v0 = vpop.eup %2833 }
 0x855   :  { %v1680_v42 = vadd.f32 %v2834_v0, %v2832_v8  ;;  %v2836_v62 = vpop.eup %2835  ;;  %v1531_v31 = vpop.permute.xlu2 %1530 }
 0x856   :  { %v1584_v32 = vpop.permute.xlu1 %1583  ;;  %v2838_v15 = vpop.eup %2837 }
 0x857   :  { %v1596_v45 = vsel %vm464_vm8, %v1569_v22, %v1584_v32  ;;  %v1685_v51 = vadd.f32 %v2836_v62, %v1680_v42 }
 0x858   :  { %v1601_v46 = vmul.f32 %v1596_v45, %v1456_v57 }
 0x859   :  { %v1690_v53 = vadd.f32 %v2838_v15, %v1685_v51 }
 0x85a   :  { %v1616_v49 = vmax.f32 %v1611_v7, %v1601_v46 }
 0x85b   :  { %2839 = vrcp.f32 %v1690_v53  ;;  %v3799_v23 = vpop.permute.xlu0 %1708 }
 0x85c   :  { %v1621_v19 = vsub.f32 %v1481_v35, %v1616_v49  ;;  %v1636_v12 = vsub.f32 %v1521_v36, %v1616_v49  ;;  %v1651_v56 = vsub.f32 %v1561_v41, %v1616_v49  ;;  %v1666_v38 = vsub.f32 %v1601_v46, %v1616_v49 }
 0x85d   :  { %v1586_v30 = vpop.permute.xlu2 %1585 }
 0x85e   :  { %v1628_v58 = vmul.f32 1.442695, %v1621_v19  ;;  %v1643_v61 = vmul.f32 1.442695, %v1636_v12  ;;  %v1658_v27 = vmul.f32 1.442695, %v1651_v56  ;;  %v1471_v43 = vpop.permute.xlu1 %1470 }
 0x85f   :  { %v1673_v37 = vmul.f32 1.442695, %v1666_v38  ;;  %v1482_v24 = vmul.f32 %v1471_v43, %v1457_v18 }
 0x860   :  { %2841 = vpow2.f32 %v1628_v58 }
 0x861   :  { %2843 = vpow2.f32 %v1643_v61  ;;  %v2840_v63 = vpop.eup %2839 }
 0x862   :  { %2845 = vpow2.f32 %v1658_v27  ;;  %v1780_v29 = vmul.f32 %v2840_v63, %v2836_v62  ;;  %v1725_v3 = vmul.f32 %v2840_v63, %v2834_v0  ;;  %v1700_v4 = vmul.f32 %v2840_v63, %v2832_v8 }
 0x863   :  { %2847 = vpow2.f32 %v1673_v37  ;;  %v1506_v44 = vpop.permute.xlu0 %1505  ;;  %v1835_v21 = vmul.f32 %v2840_v63, %v2838_v15 }
 0x864   :  { %v1785_v48 = vmul.f32 %v1780_v29, %v3777_v50  ;;  %v1730_v6 = vmul.f32 %v1725_v3, %v3777_v50  ;;  %v3804_v14 = vmul.f32 %v3777_v50, %v1700_v4  ;;  %v1517_v59 = vsel %vm382_vm6, %v1491_v52, %v1506_v44 }
 0x865   :  { %v1522_v5 = vmul.f32 %v1517_v59, %v1457_v18  ;;  %v1840_v60 = vmul.f32 %v1835_v21, %v3777_v50  ;;  %v1458_v29 = vmul.f32 0.35355338, %v3752_v28  ;;  %v1473_v44 = vpop.permute.xlu2 %1472 }
 0x866   :  { %v2842_v54 = vpop.eup %2841  ;;  %v1571_v34 = vpop.permute.xlu1 %1570  ;;  %1796 = vrot.lane.b32.xlu2 %v1785_v48, %s2916_s29  ;;  %1756 = vrot.lane.b32.xlu1 %v1730_v6, %s4219_s5 }
 0x867   :  { %v2844_v9 = vpop.eup %2843  ;;  %1741 = vrot.lane.b32.xlu0 %v1730_v6, %s4217_s25  ;;  %v1597_v35 = vsel %vm464_vm8, %v1571_v34, %v1586_v30  ;;  %v1607_v36 = vmax.f32 %v1482_v24, %v1522_v5 }
 0x868   :  { %v1681_v16 = vadd.f32 %v2844_v9, %v2842_v54  ;;  %v2846_v55 = vpop.eup %2845  ;;  %v1602_v2 = vmul.f32 %v1597_v35, %v1457_v18 }
 0x869   :  { %v2848_v57 = vpop.eup %2847 }
 0x86a   :  { %v1686_v17 = vadd.f32 %v2846_v55, %v1681_v16 }
 0x86b   :  { %v1546_v33 = vpop.permute.xlu0 %1545 }
 0x86c   :  { %v1691_v20 = vadd.f32 %v2848_v57, %v1686_v17  ;;  %v1557_v10 = vsel %vm423_vm7, %v1531_v31, %v1546_v33 }
 0x86d   :  { %v1562_v41 = vmul.f32 %v1557_v10, %v1457_v18 }
 0x86e   :  { %2849 = vrcp.f32 %v1691_v20  ;;  %v3814_v25 = vpop.permute.xlu1 %1710  ;;  %1866 = vrot.lane.b32.xlu2 %v1840_v60, %s2921_s22  ;;  %1851 = vrot.lane.b32.xlu1 %v1840_v60, %s2912_s20 }
 0x86f   :  { %v1612_v8 = vmax.f32 %v1607_v36, %v1562_v41  ;;  %1811 = vrot.lane.b32.xlu0 %v1785_v48, %s2922_s2 }
 0x871   :  { %v1617_v22 = vmax.f32 %v1612_v8, %v1602_v2 }
 0x873   :  { %v1622_v45 = vsub.f32 %v1482_v24, %v1617_v22  ;;  %v1637_v7 = vsub.f32 %v1522_v5, %v1617_v22  ;;  %v1652_v50 = vsub.f32 %v1562_v41, %v1617_v22  ;;  %v1667_v46 = vsub.f32 %v1602_v2, %v1617_v22 }
 0x874   :  { %v2850_v0 = vpop.eup %2849 }
 0x875   :  { %v1726_v32 = vmul.f32 %v2850_v0, %v2844_v9  ;;  %v1781_v42 = vmul.f32 %v2850_v0, %v2846_v55  ;;  %v1493_v62 = vpop.permute.xlu0 %1492  ;;  %v1701_v51 = vmul.f32 %v2850_v0, %v2842_v54  ;;  %v1630_v49 = vmul.f32 1.442695, %v1622_v45 }
 0x876   :  { %v1508_v53 = vpop.permute.xlu1 %1507  ;;  %v1645_v19 = vmul.f32 1.442695, %v1637_v7  ;;  %v1660_v12 = vmul.f32 1.442695, %v1652_v50  ;;  %v1675_v38 = vmul.f32 1.442695, %v1667_v46  ;;  %v1836_v58 = vmul.f32 %v2850_v0, %v2848_v57 }
 0x877   :  { %v1731_v52 = vmul.f32 %v1726_v32, %v3799_v23  ;;  %v1786_v15 = vmul.f32 %v1781_v42, %v3799_v23  ;;  %2851 = vpow2.f32 %v1630_v49  ;;  %v3824_v56 = vmul.f32 %v3799_v23, %v1701_v51  ;;  %v2646_v49 = vld [vmem:[%s4180_s7 + $0x38] sm:$0xff] }
 0x878   :  { %2853 = vpow2.f32 %v1645_v19  ;;  %v1841_v43 = vmul.f32 %v1836_v58, %v3799_v23  ;;  %v1518_v31 = vsel %vm382_vm6, %v1493_v62, %v1508_v53  ;;  %v1483_v9 = vmul.f32 %v1473_v44, %v1458_v29  ;;  %1926 = vmatpush.msra.mxu3 %v2646_v49 }
 0x879   :  { %1798 = vrot.lane.b32.xlu2 %v1786_v15, %s2916_s29  ;;  %1758 = vrot.lane.b32.xlu1 %v1731_v52, %s4219_s5  ;;  %2855 = vpow2.f32 %v1660_v12  ;;  %v1523_v6 = vmul.f32 %v1518_v31, %v1458_v29  ;;  %v2643_v31 = vld [vmem:[%s4180_s7 + $0x20] sm:$0xff] }
 0x87a   :  { %1743 = vrot.lane.b32.xlu0 %v1731_v52, %s4217_s25  ;;  %2857 = vpow2.f32 %v1675_v38  ;;  %v1713_v38 = vpop.permute.xlu2 %1712 }
 0x87b   :  { %v1608_v59 = vmax.f32 %v1483_v9, %v1523_v6 }
 0x87d   :  { %v1533_v61 = vpop.permute.xlu0 %1532  ;;  %v2852_v27 = vpop.eup %2851 }
 0x87e   :  { %v1548_v37 = vpop.permute.xlu1 %1547  ;;  %v2854_v63 = vpop.eup %2853 }
 0x87f   :  { %v1682_v3 = vadd.f32 %v2854_v63, %v2852_v27  ;;  %v2856_v4 = vpop.eup %2855  ;;  %v1558_v54 = vsel %vm423_vm7, %v1533_v61, %v1548_v37  ;;  %v2644_v37 = vld [vmem:[%s4180_s7 + $0x28] sm:$0xff] }
 0x880   :  { %v2858_v23 = vpop.eup %2857  ;;  %v1563_v16 = vmul.f32 %v1558_v54, %v1458_v29 }
 0x881   :  { %1868 = vrot.lane.b32.xlu2 %v1841_v43, %s2921_s22  ;;  %1853 = vrot.lane.b32.xlu1 %v1841_v43, %s2912_s20  ;;  %v1687_v48 = vadd.f32 %v2856_v4, %v1682_v3  ;;  %v2645_v43 = vld [vmem:[%s4180_s7 + $0x30] sm:$0xff] }
 0x882   :  { %1813 = vrot.lane.b32.xlu0 %v1786_v15, %s2922_s2  ;;  %v1613_v17 = vmax.f32 %v1608_v59, %v1563_v16  ;;  %1927 = vmatpush.msra.mxu3 %v2645_v43 }
 0x883   :  { %v1692_v34 = vadd.f32 %v2858_v23, %v1687_v48 }
 0x884   :  { %1928 = vmatpush.msra.mxu3 %v2644_v37 }
 0x885   :  { %2859 = vrcp.f32 %v1692_v34  ;;  %v1573_v28 = vpop.permute.xlu0 %1572 }
 0x886   :  { %v1588_v55 = vpop.permute.xlu1 %1587  ;;  %1929 = vmatpush.msra.mxu3 %v2643_v31 }
 0x887   :  { %v1598_v18 = vsel %vm464_vm8, %v1573_v28, %v1588_v55 }
 0x888   :  { %v1603_v21 = vmul.f32 %v1598_v18, %v1458_v29 }
 0x88a   :  { %v1618_v57 = vmax.f32 %v1613_v17, %v1603_v21 }
 0x88b   :  { %v2860_v5 = vpop.eup %2859 }
 0x88c   :  { %v1623_v20 = vsub.f32 %v1483_v9, %v1618_v57  ;;  %v1638_v30 = vsub.f32 %v1523_v6, %v1618_v57  ;;  %v1653_v24 = vsub.f32 %v1563_v16, %v1618_v57  ;;  %v1727_v33 = vmul.f32 %v2860_v5, %v2854_v63 }
 0x88d   :  { %v1782_v35 = vmul.f32 %v2860_v5, %v2856_v4  ;;  %v1668_v10 = vsub.f32 %v1603_v21, %v1618_v57  ;;  %v1702_v60 = vmul.f32 %v2860_v5, %v2852_v27  ;;  %v1837_v42 = vmul.f32 %v2860_v5, %v2858_v23 }
 0x88e   :  { %v1632_v36 = vmul.f32 1.442695, %v1623_v20  ;;  %v1647_v41 = vmul.f32 1.442695, %v1638_v30  ;;  %v1732_v2 = vmul.f32 %v1727_v33, %v3814_v25  ;;  %v1662_v22 = vmul.f32 1.442695, %v1653_v24 }
 0x88f   :  { %v1787_v8 = vmul.f32 %v1782_v35, %v3814_v25  ;;  %v3838_v0 = vmul.f32 %v3814_v25, %v1702_v60  ;;  %v1677_v32 = vmul.f32 1.442695, %v1668_v10  ;;  %v1842_v7 = vmul.f32 %v1837_v42, %v3814_v25 }
 0x890   :  { %2861 = vpow2.f32 %v1632_v36  ;;  %1760 = vrot.lane.b32.xlu1 %v1732_v2, %s4219_s5  ;;  %1745 = vrot.lane.b32.xlu0 %v1732_v2, %s4217_s25 }
 0x891   :  { %2863 = vpow2.f32 %v1647_v41  ;;  %1800 = vrot.lane.b32.xlu2 %v1787_v8, %s2916_s29 }
 0x892   :  { %2865 = vpow2.f32 %v1662_v22 }
 0x893   :  { %2867 = vpow2.f32 %v1677_v32 }
 0x896   :  { %v2862_v45 = vpop.eup %2861 }
 0x897   :  { %v2864_v62 = vpop.eup %2863 }
 0x898   :  { %v1683_v50 = vadd.f32 %v2864_v62, %v2862_v45  ;;  %v2866_v46 = vpop.eup %2865  ;;  %1855 = vrot.lane.b32.xlu1 %v1842_v7, %s2912_s20  ;;  %1815 = vrot.lane.b32.xlu0 %v1787_v8, %s2922_s2 }
 0x899   :  { %1870 = vrot.lane.b32.xlu2 %v1842_v7, %s2921_s22  ;;  %v2868_v52 = vpop.eup %2867 }
 0x89a   :  { %v1688_v51 = vadd.f32 %v2866_v46, %v1683_v50 }
 0x89c   :  { %v1693_v15 = vadd.f32 %v2868_v52, %v1688_v51 }
 0x89e   :  { %2869 = vrcp.f32 %v1693_v15 }
 0x8a4   :  { %v2870_v53 = vpop.eup %2869  ;;  %v1795_v3 = vpop.permute.xlu2 %1794 }
 0x8a5   :  { %v1783_v19 = vmul.f32 %v2870_v53, %v2866_v46  ;;  %v1728_v25 = vmul.f32 %v2870_v53, %v2864_v62  ;;  %v1703_v12 = vmul.f32 %v2870_v53, %v2862_v45  ;;  %v1838_v63 = vmul.f32 %v2870_v53, %v2868_v52 }
 0x8a7   :  { %v1788_v58 = vmul.f32 %v1783_v19, %v1713_v38  ;;  %v1733_v61 = vmul.f32 %v1728_v25, %v1713_v38  ;;  %v3850_v27 = vmul.f32 %v1713_v38, %v1703_v12  ;;  %v1843_v29 = vmul.f32 %v1838_v63, %v1713_v38 }
 0x8a9   :  { %1802 = vrot.lane.b32.xlu2 %v1788_v58, %s2916_s29  ;;  %1762 = vrot.lane.b32.xlu1 %v1733_v61, %s4219_s5 }
 0x8aa   :  { %1747 = vrot.lane.b32.xlu0 %v1733_v61, %s4217_s25 }
 0x8ac   :  { %v1865_v34 = vpop.permute.xlu2 %1864 }
 0x8b1   :  { %1872 = vrot.lane.b32.xlu2 %v1843_v29, %s2921_s22  ;;  %1857 = vrot.lane.b32.xlu1 %v1843_v29, %s2912_s20 }
 0x8b2   :  { %1817 = vrot.lane.b32.xlu0 %v1788_v58, %s2922_s2 }
 0x8bc   :  { %v1755_v4 = vpop.permute.xlu1 %1754 }
 0x8bd   :  { %v1740_v44 = vpop.permute.xlu0 %1739 }
 0x8be   :  { %v1769_v54 = vsel %vm464_vm8, %v1740_v44, %v1755_v4 }
 0x8bf   :  { %v1774_v48 = vadd.f32 %v1769_v54, %v3786_v11  ;;  %v2712_v54 = vld [vmem:[%s4181_s8 + $0x1] ss:$0 sm:$0xff] }
 0x8c0   :  { %v1797_v55 = vpop.permute.xlu2 %1796 }
 0x8c4   :  { %v1850_v6 = vpop.permute.xlu1 %1849 }
 0x8c5   :  { %v1810_v23 = vpop.permute.xlu0 %1809  ;;  %v1879_v59 = vsel %vm382_vm6, %v1850_v6, %v1865_v34 }
 0x8c6   :  { %v1824_v9 = vsel %vm423_vm7, %v1795_v3, %v1810_v23 }
 0x8c7   :  { %v1829_v16 = vadd.f32 %v1824_v9, %v1774_v48 }
 0x8c8   :  { %v1867_v57 = vpop.permute.xlu2 %1866 }
 0x8c9   :  { %v1884_v28 = vadd.f32 %v1879_v59, %v1829_v16 }
 0x8cb   :  { %2648 = vmatmul.msk.f32.vlgmr.msra.gmra.mxu3 %vm132_vm1, %v1884_v28 }
 0x8d3   :  { %v1799_v60 = vpop.permute.xlu2 %1798 }
 0x8d8   :  { %v1757_v18 = vpop.permute.xlu1 %1756 }
 0x8d9   :  { %v1742_v17 = vpop.permute.xlu0 %1741 }
 0x8da   :  { %v1770_v21 = vsel %vm464_vm8, %v1742_v17, %v1757_v18 }
 0x8db   :  { %v1775_v11 = vadd.f32 %v1770_v21, %v3804_v14  ;;  %v1869_v32 = vpop.permute.xlu2 %1868 }
 0x8e0   :  { %v1852_v5 = vpop.permute.xlu1 %1851 }
 0x8e1   :  { %v1812_v20 = vpop.permute.xlu0 %1811  ;;  %v1880_v33 = vsel %vm382_vm6, %v1852_v5, %v1867_v57 }
 0x8e2   :  { %v1825_v30 = vsel %vm423_vm7, %v1797_v55, %v1812_v20 }
 0x8e3   :  { %v1830_v24 = vadd.f32 %v1825_v30, %v1775_v11 }
 0x8e5   :  { %v1885_v35 = vadd.f32 %v1880_v33, %v1830_v24 }
 0x8e7   :  { %2649 = vmatmul.msk.f32.gmra.mxu3 %vm132_vm1, %v1885_v35 }
 0x8eb   :  { %v1759_v10 = vpop.permute.xlu1 %1758  ;;  %v1801_v50 = vpop.permute.xlu2 %1800 }
 0x8ec   :  { %v1744_v36 = vpop.permute.xlu0 %1743 }
 0x8ed   :  { %v1771_v41 = vsel %vm464_vm8, %v1744_v36, %v1759_v10 }
 0x8ee   :  { %v1776_v2 = vadd.f32 %v1771_v41, %v3824_v56 }
 0x8f3   :  { %v1854_v8 = vpop.permute.xlu1 %1853  ;;  %v1871_v53 = vpop.permute.xlu2 %1870 }
 0x8f4   :  { %v1814_v22 = vpop.permute.xlu0 %1813  ;;  %v1881_v45 = vsel %vm382_vm6, %v1854_v8, %v1869_v32 }
 0x8f5   :  { %v1826_v14 = vsel %vm423_vm7, %v1799_v60, %v1814_v22 }
 0x8f6   :  { %v1831_v42 = vadd.f32 %v1826_v14, %v1776_v2 }
 0x8f8   :  { %v1886_v62 = vadd.f32 %v1881_v45, %v1831_v42 }
 0x8fa   :  { %2650 = vmatmul.msk.f32.gmra.mxu3 %vm132_vm1, %v1886_v62 }
 0x902   :  { %v1761_v7 = vpop.permute.xlu1 %1760  ;;  %v1746_v46 = vpop.permute.xlu0 %1745 }
 0x903   :  { %v1772_v51 = vsel %vm464_vm8, %v1746_v46, %v1761_v7  ;;  %v1803_v58 = vpop.permute.xlu2 %1802 }
 0x904   :  { %v1777_v52 = vadd.f32 %v1772_v51, %v3838_v0 }
 0x90a   :  { %v1856_v15 = vpop.permute.xlu1 %1855  ;;  %v1816_v56 = vpop.permute.xlu0 %1815 }
 0x90b   :  { %v1827_v49 = vsel %vm423_vm7, %v1801_v50, %v1816_v56  ;;  %v1882_v25 = vsel %vm382_vm6, %v1856_v15, %v1871_v53  ;;  %v1873_v29 = vpop.permute.xlu2 %1872  ;;  %v2657_v53 = vld [vmem:[%s4184_s11 + $0x30] sm:$0xff] }
 0x90c   :  { %v1832_v19 = vadd.f32 %v1827_v49, %v1777_v52  ;;  %v2658_v49 = vld [vmem:[%s4184_s11 + $0x38] sm:$0xff] }
 0x90d   :  { %2118 = vmatpush.msra.mxu0 %v2658_v49 }
 0x90e   :  { %v1887_v12 = vadd.f32 %v1882_v25, %v1832_v19  ;;  %v2656_v19 = vld [vmem:[%s4184_s11 + $0x28] sm:$0xff]  ;;  %v2655_v25 = vld [vmem:[%s4184_s11 + $0x20] sm:$0xff] }
 0x90f   :  { %2119 = vmatpush.msra.mxu0 %v2657_v53 }
 0x910   :  { %2651 = vmatmul.msk.f32.gmra.mxu3 %vm132_vm1, %v1887_v12 }
 0x911   :  { %2120 = vmatpush.msra.mxu0 %v2656_v19 }
 0x913   :  { %2121 = vmatpush.msra.mxu0 %v2655_v25 }
 0x91b   :  { %v1763_v38 = vpop.permute.xlu1 %1762 }
 0x91c   :  { %v1748_v61 = vpop.permute.xlu0 %1747 }
 0x91d   :  { %v1773_v43 = vsel %vm464_vm8, %v1748_v61, %v1763_v38 }
 0x91e   :  { %v1778_v37 = vadd.f32 %v1773_v43, %v3850_v27 }
 0x923   :  { %v1858_v63 = vpop.permute.xlu1 %1857 }
 0x924   :  { %v1818_v0 = vpop.permute.xlu0 %1817  ;;  %v1883_v4 = vsel %vm382_vm6, %v1858_v63, %v1873_v29  ;;  %v3967_v29 = vld [vmem:[%s4182_s9 + $0x1] ss:$0 sm:$0xff] }
 0x925   :  { %v1828_v31 = vsel %vm423_vm7, %v1803_v58, %v1818_v0 }
 0x926   :  { %v1833_v3 = vadd.f32 %v1828_v31, %v1778_v37 }
 0x928   :  { %v1888_v44 = vadd.f32 %v1883_v4, %v1833_v3  ;;  %v3972_v4 = vld [vmem:[%s4183_s10 + $0x1] ss:$0 sm:$0xff] }
 0x92a   :  { %2652 = vmatmul.msk.f32.gmra.mxu3 %vm132_vm1, %v1888_v44 }
 0x94e   :  { %v1931_v48 = vpop.f32.mrf.mxu3 }
 0x94f   :  { %v1932_v6 = vadd.f32 %v2712_v54, %v1931_v48 }
 0x951   :  { %v3896_v23 = vadd.f32 %v1932_v6, %v3588_v40 }
 0x953   :  { %v1955_v27 = vsel %vm132_vm1, %v3896_v23, 0.0 }
 0x954   :  { %1956 = vadd.xlane.f32.xlu0 %v1955_v27 }
 0x96a   :  { %v1934_v9 = vpop.f32.mrf.mxu3 }
 0x96b   :  { %v1935_v34 = vadd.f32 %v2712_v54, %v1934_v9 }
 0x96d   :  { %v3901_v16 = vadd.f32 %v1935_v34, %v3593_v47 }
 0x96f   :  { %v1958_v59 = vsel %vm132_vm1, %v3901_v16, 0.0 }
 0x970   :  { %1959 = vadd.xlane.f32.xlu1 %v1958_v59 }
 0x97d   :  { %v1937_v28 = vpop.f32.mrf.mxu3 }
 0x97e   :  { %v1938_v55 = vadd.f32 %v2712_v54, %v1937_v28 }
 0x980   :  { %v3906_v18 = vadd.f32 %v1938_v55, %v3598_v1 }
 0x982   :  { %v1961_v40 = vsel %vm132_vm1, %v3906_v18, 0.0 }
 0x983   :  { %1962 = vadd.xlane.f32.xlu2 %v1961_v40 }
 0x993   :  { %v1940_v17 = vpop.f32.mrf.mxu3 }
 0x994   :  { %v1941_v21 = vadd.f32 %v2712_v54, %v1940_v17 }
 0x996   :  { %v3911_v57 = vadd.f32 %v1941_v21, %v3603_v26 }
 0x998   :  { %v1964_v47 = vsel %vm132_vm1, %v3911_v57, 0.0 }
 0x999   :  { %1965 = vadd.xlane.f32.xlu0 %v1964_v47 }
 0x9ad   :  { %v1943_v5 = vpop.f32.mrf.mxu3 }
 0x9ae   :  { %v1944_v11 = vadd.f32 %v2712_v54, %v1943_v5 }
 0x9b0   :  { %v3916_v20 = vadd.f32 %v1944_v11, %v3608_v13 }
 0x9b2   :  { %v1967_v1 = vsel %vm145_vm2, %v3916_v20, 0.0 }
 0x9b3   :  { %1968 = vadd.xlane.f32.xlu1 %v1967_v1 }
 0x9c7   :  { %v1957_v30 = vpop.xlane.xlu0 %1956 }
 0x9c8   :  { %v1970_v24 = vmul.f32 %v1957_v30, %v3102_v39 }
 0x9ca   :  { %v1975_v33 = vsub.f32 %v3896_v23, %v1970_v24 }
 0x9cc   :  { %v1980_v26 = vmul.f32 %v1975_v33, %v1975_v33 }
 0x9ce   :  { %v1985_v35 = vsel %vm132_vm1, %v1980_v26, 0.0 }
 0x9cf   :  { %1986 = vadd.xlane.f32.xlu2 %v1985_v35 }
 0x9e3   :  { %v1960_v10 = vpop.xlane.xlu1 %1959 }
 0x9e4   :  { %v1971_v60 = vmul.f32 %v1960_v10, %v3102_v39 }
 0x9e6   :  { %v3925_v36 = vsub.f32 %v3901_v16, %v1971_v60 }
 0x9e8   :  { %v1981_v13 = vmul.f32 %v3925_v36, %v3925_v36 }
 0x9ea   :  { %v1988_v41 = vsel %vm132_vm1, %v1981_v13, 0.0 }
 0x9eb   :  { %1989 = vadd.xlane.f32.xlu0 %v1988_v41 }
 0x9f6   :  { %v1963_v2 = vpop.xlane.xlu2 %1962 }
 0x9f7   :  { %v1972_v8 = vmul.f32 %v1963_v2, %v3102_v39 }
 0x9f9   :  { %v3932_v22 = vsub.f32 %v3906_v18, %v1972_v8 }
 0x9fb   :  { %v1982_v14 = vmul.f32 %v3932_v22, %v3932_v22 }
 0x9fd   :  { %v1991_v32 = vsel %vm132_vm1, %v1982_v14, 0.0 }
 0x9fe   :  { %1992 = vadd.xlane.f32.xlu1 %v1991_v32 }
 0xa0c   :  { %v1966_v42 = vpop.xlane.xlu0 %1965 }
 0xa0d   :  { %v1973_v45 = vmul.f32 %v1966_v42, %v3102_v39 }
 0xa0f   :  { %v3939_v62 = vsub.f32 %v3911_v57, %v1973_v45 }
 0xa11   :  { %v1983_v7 = vmul.f32 %v3939_v62, %v3939_v62 }
 0xa13   :  { %v1994_v50 = vsel %vm132_vm1, %v1983_v7, 0.0 }
 0xa14   :  { %1995 = vadd.xlane.f32.xlu2 %v1994_v50 }
 0xa26   :  { %v1969_v46 = vpop.xlane.xlu1 %1968 }
 0xa27   :  { %v1974_v51 = vmul.f32 %v1969_v46, %v3102_v39 }
 0xa29   :  { %v3946_v52 = vsub.f32 %v3916_v20, %v1974_v51 }
 0xa2b   :  { %v1984_v15 = vmul.f32 %v3946_v52, %v3946_v52 }
 0xa2d   :  { %v1997_v56 = vsel %vm145_vm2, %v1984_v15, 0.0 }
 0xa2e   :  { %1998 = vadd.xlane.f32.xlu0 %v1997_v56 }
 0xa42   :  { %v1987_v12 = vpop.xlane.xlu2 %1986 }
 0xa43   :  { %v2000_v38 = vmul.f32 %v1987_v12, %v3102_v39 }
 0xa45   :  { %v2005_v58 = vadd.f32 1e-06, %v2000_v38 }
 0xa47   :  { %2871 = vrsqrt.f32 %v2005_v58  ;;  %vm2016_vm7 = vweird.f32 %v2005_v58 }
 0xa4d   :  { %v2872_v61 = vpop.eup %2871 }
 0xa4e   :  { %v2011_v43 = vmul.f32 %v2872_v61, %v2005_v58  ;;  %vm2017_vm6 = vweird.f32 %v2872_v61 }
 0xa4f   :  { %vm2018_vm8 = vmor %vm2016_vm7, %vm2017_vm6 }
 0xa50   :  { %v2012_v37 = vmul.f32 %v2872_v61, %v2011_v43 }
 0xa52   :  { %v2013_v63 = vmul.f32 0.5, %v2012_v37 }
 0xa54   :  { %v2014_v0 = vsub.f32 1.5, %v2013_v63 }
 0xa56   :  { %v2015_v31 = vmul.f32 %v2872_v61, %v2014_v0 }
 0xa58   :  { %v2019_v3 = vsel %vm2018_vm8, %v2872_v61, %v2015_v31 }
 0xa59   :  { %v2060_v44 = vmul.f32 %v2019_v3, %v1975_v33 }
 0xa5b   :  { %v2068_v54 = vmul.f32 %v3967_v29, %v2060_v44  ;;  %v4000_v44 = vld [vmem:[%s4185_s12 + $0x1] ss:$0 sm:$0xff] }
 0xa5d   :  { %v2076_v48 = vadd.f32 %v3972_v4, %v2068_v54 }
 0xa5e   :  { %v1990_v6 = vpop.xlane.xlu0 %1989 }
 0xa5f   :  { %2660 = vmatmul.msk.f32.vlgmr.msra.gmra.mxu0 %vm132_vm1, %v2076_v48  ;;  %v2001_v27 = vmul.f32 %v1990_v6, %v3102_v39 }
 0xa61   :  { %v2006_v9 = vadd.f32 1e-06, %v2001_v27 }
 0xa63   :  { %2873 = vrsqrt.f32 %v2006_v9  ;;  %vm2026_vm15 = vweird.f32 %v2006_v9 }
 0xa69   :  { %v2874_v34 = vpop.eup %2873 }
 0xa6a   :  { %v2021_v59 = vmul.f32 %v2874_v34, %v2006_v9  ;;  %vm2027_vm14 = vweird.f32 %v2874_v34  ;;  %v2671_v9 = vld [vmem:[%s4186_s13 + $0x70] sm:$0xff] }
 0xa6b   :  { %vm2028_vm3 = vmor %vm2026_vm15, %vm2027_vm14 }
 0xa6c   :  { %v2022_v28 = vmul.f32 %v2874_v34, %v2021_v59 }
 0xa6e   :  { %v2023_v55 = vmul.f32 0.5, %v2022_v28 }
 0xa70   :  { %v2024_v17 = vsub.f32 1.5, %v2023_v55  ;;  %v2669_v55 = vld [vmem:[%s4186_s13 + $0x60] sm:$0xff] }
 0xa71   :  { %v1993_v40 = vpop.xlane.xlu1 %1992 }
 0xa72   :  { %v2002_v21 = vmul.f32 %v1993_v40, %v3102_v39  ;;  %v2025_v47 = vmul.f32 %v2874_v34, %v2024_v17  ;;  %v2668_v17 = vld [vmem:[%s4186_s13 + $0x58] sm:$0xff] }
 0xa74   :  { %v2007_v5 = vadd.f32 1e-06, %v2002_v21  ;;  %v2029_v11 = vsel %vm2028_vm3, %v2874_v34, %v2025_v47  ;;  %v2670_v34 = vld [vmem:[%s4186_s13 + $0x68] sm:$0xff] }
 0xa75   :  { %v2061_v1 = vmul.f32 %v2029_v11, %v3925_v36  ;;  %v2667_v11 = vld [vmem:[%s4186_s13 + $0x50] sm:$0xff] }
 0xa76   :  { %2875 = vrsqrt.f32 %v2007_v5  ;;  %vm2036_vm5 = vweird.f32 %v2007_v5 }
 0xa77   :  { %v2069_v30 = vmul.f32 %v3967_v29, %v2061_v1 }
 0xa79   :  { %v2077_v24 = vadd.f32 %v3972_v4, %v2069_v30  ;;  %v2666_v30 = vld [vmem:[%s4186_s13 + $0x48] sm:$0xff] }
 0xa7b   :  { %2661 = vmatmul.msk.f32.gmra.mxu0 %vm132_vm1, %v2077_v24 }
 0xa7c   :  { %v2876_v33 = vpop.eup %2875 }
 0xa7d   :  { %v2031_v26 = vmul.f32 %v2876_v33, %v2007_v5  ;;  %vm2037_vm4 = vweird.f32 %v2876_v33 }
 0xa7e   :  { %vm2038_vm9 = vmor %vm2036_vm5, %vm2037_vm4 }
 0xa7f   :  { %v2032_v35 = vmul.f32 %v2876_v33, %v2031_v26  ;;  %v2665_v26 = vld [vmem:[%s4186_s13 + $0x40] sm:$0xff] }
 0xa81   :  { %v2033_v10 = vmul.f32 0.5, %v2032_v35 }
 0xa83   :  { %v2034_v60 = vsub.f32 1.5, %v2033_v10 }
 0xa85   :  { %v2035_v13 = vmul.f32 %v2876_v33, %v2034_v60 }
 0xa87   :  { %v2039_v41 = vsel %vm2038_vm9, %v2876_v33, %v2035_v13  ;;  %v1996_v8 = vpop.xlane.xlu2 %1995 }
 0xa88   :  { %v2062_v2 = vmul.f32 %v2039_v41, %v3932_v22  ;;  %v2003_v14 = vmul.f32 %v1996_v8, %v3102_v39 }
 0xa8a   :  { %v2070_v36 = vmul.f32 %v3967_v29, %v2062_v2  ;;  %v2008_v42 = vadd.f32 1e-06, %v2003_v14 }
 0xa8c   :  { %v2078_v32 = vadd.f32 %v3972_v4, %v2070_v36  ;;  %2877 = vrsqrt.f32 %v2008_v42  ;;  %vm2046_vm11 = vweird.f32 %v2008_v42 }
 0xa8e   :  { %2662 = vmatmul.msk.f32.gmra.mxu0 %vm132_vm1, %v2078_v32 }
 0xa92   :  { %v2878_v45 = vpop.eup %2877 }
 0xa93   :  { %v2041_v7 = vmul.f32 %v2878_v45, %v2008_v42  ;;  %vm2047_vm10 = vweird.f32 %v2878_v45 }
 0xa94   :  { %vm2048_vm12 = vmor %vm2046_vm11, %vm2047_vm10 }
 0xa95   :  { %v2042_v50 = vmul.f32 %v2878_v45, %v2041_v7 }
 0xa97   :  { %v2043_v46 = vmul.f32 0.5, %v2042_v50 }
 0xa99   :  { %v2044_v51 = vsub.f32 1.5, %v2043_v46 }
 0xa9b   :  { %v2045_v15 = vmul.f32 %v2878_v45, %v2044_v51 }
 0xa9d   :  { %v2049_v22 = vsel %vm2048_vm12, %v2878_v45, %v2045_v15 }
 0xa9e   :  { %v2063_v56 = vmul.f32 %v2049_v22, %v3939_v62 }
 0xaa0   :  { %v2071_v19 = vmul.f32 %v3967_v29, %v2063_v56 }
 0xaa1   :  { %v1999_v49 = vpop.xlane.xlu0 %1998 }
 0xaa2   :  { %v2004_v53 = vmul.f32 %v1999_v49, %v3102_v39  ;;  %v2079_v12 = vadd.f32 %v3972_v4, %v2071_v19 }
 0xaa4   :  { %v2009_v25 = vadd.f32 1e-06, %v2004_v53  ;;  %2663 = vmatmul.msk.f32.gmra.mxu0 %vm132_vm1, %v2079_v12 }
 0xaa6   :  { %2879 = vrsqrt.f32 %v2009_v25  ;;  %vm2056_vm6 = vweird.f32 %v2009_v25 }
 0xaac   :  { %v2880_v38 = vpop.eup %2879 }
 0xaad   :  { %v2051_v58 = vmul.f32 %v2880_v38, %v2009_v25  ;;  %vm2057_vm13 = vweird.f32 %v2880_v38 }
 0xaae   :  { %vm2058_vm7 = vmor %vm2056_vm6, %vm2057_vm13 }
 0xaaf   :  { %v2052_v61 = vmul.f32 %v2880_v38, %v2051_v58 }
 0xab1   :  { %v2053_v43 = vmul.f32 0.5, %v2052_v61 }
 0xab3   :  { %v2054_v37 = vsub.f32 1.5, %v2053_v43 }
 0xab5   :  { %v2055_v63 = vmul.f32 %v2880_v38, %v2054_v37 }
 0xab7   :  { %v2059_v62 = vsel %vm2058_vm7, %v2880_v38, %v2055_v63 }
 0xab8   :  { %v2064_v0 = vmul.f32 %v2059_v62, %v3946_v52 }
 0xaba   :  { %v2072_v31 = vmul.f32 %v3967_v29, %v2064_v0 }
 0xabc   :  { %v2080_v3 = vadd.f32 %v3972_v4, %v2072_v31  ;;  %v2672_v4 = vld [vmem:[%s4186_s13 + $0x78] sm:$0xff] }
 0xabd   :  { %2375 = vmatpush.msra.mxu1 %v2672_v4 }
 0xabe   :  { %2664 = vmatmul.msk.f32.gmra.mxu0 %vm132_vm1, %v2080_v3 }
 0xabf   :  { %2376 = vmatpush.msra.mxu1 %v2671_v9 }
 0xac1   :  { %2377 = vmatpush.msra.mxu1 %v2670_v34 }
 0xac3   :  { %2378 = vmatpush.msra.mxu1 %v2669_v55 }
 0xac5   :  { %2379 = vmatpush.msra.mxu1 %v2668_v17 }
 0xac7   :  { %2380 = vmatpush.msra.mxu1 %v2667_v11 }
 0xac9   :  { %2381 = vmatpush.msra.mxu1 %v2666_v30 }
 0xacb   :  { %2382 = vmatpush.msra.mxu1 %v2665_v26 }
 0xadc   :  { %v2123_v54 = vpop.f32.mrf.mxu0 }
 0xadd   :  { %v4003_v48 = vadd.f32 %v4000_v44, %v2123_v54 }
 0xadf   :  { %v4006_v6 = vmul.f32 0.70710677, %v4003_v48  ;;  %v2138_v3 = vmul.f32 0.5, %v4003_v48 }
 0xae1   :  { %v2148_v52 = vand.u32 2147483647, %v4006_v6  ;;  %vm2313_vm4 = vcmp.ge.f32.partialorder %v4006_v6, 0.0 }
 0xae3   :  { %v2153_v27 = vmul.f32 0.3275911, %v2148_v52  ;;  %v2283_v10 = vsub.f32 0.0, %v2148_v52 }
 0xae5   :  { %v2158_v29 = vadd.f32 1.0, %v2153_v27  ;;  %v2288_v8 = vmul.f32 %v2283_v10, %v2148_v52 }
 0xae7   :  { %2881 = vrcp.f32 %v2158_v29  ;;  %v2174_v21 = vand.u32 2147483648, %v2158_v29  ;;  %v2172_v5 = vand.u32 2147483647, %v2158_v29  ;;  %vm2168_vm14 = vweird.f32 %v2158_v29 }
 0xae8   :  { %v2293_v45 = vmul.f32 1.442695, %v2288_v8 }
 0xae9   :  { %v2175_v24 = vor.u32 1.1754944e-38, %v2174_v21  ;;  %vm2173_vm3 = vcmp.eq.f32.partialorder %v2172_v5, 8.507059e+37 }
 0xaea   :  { %2883 = vpow2.f32 %v2293_v45 }
 0xaed   :  { %v2882_v59 = vpop.eup %2881 }
 0xaee   :  { %v2164_v28 = vmul.f32 %v2882_v59, %v2158_v29  ;;  %vm2169_vm8 = vweird.f32 %v2882_v59 }
 0xaef   :  { %vm2170_vm15 = vmor %vm2168_vm14, %vm2169_vm8 }
 0xaf0   :  { %v2165_v40 = vsub.f32 1.0, %v2164_v28  ;;  %v2884_v49 = vpop.eup %2883 }
 0xaf2   :  { %v2166_v47 = vmul.f32 %v2882_v59, %v2165_v40 }
 0xaf4   :  { %v2167_v1 = vadd.f32 %v2882_v59, %v2166_v47 }
 0xaf6   :  { %v2171_v33 = vsel %vm2170_vm15, %v2882_v59, %v2167_v1 }
 0xaf7   :  { %v2176_v35 = vsel %vm2173_vm3, %v2175_v24, %v2171_v33 }
 0xaf8   :  { %v2238_v60 = vmul.f32 1.0614054, %v2176_v35  ;;  %v2126_v13 = vpop.f32.mrf.mxu0 }
 0xaf9   :  { %v4034_v2 = vadd.f32 %v4000_v44, %v2126_v13 }
 0xafa   :  { %v2243_v41 = vadd.f32 -1.4531521, %v2238_v60 }
 0xafb   :  { %v4037_v14 = vmul.f32 0.70710677, %v4034_v2 }
 0xafc   :  { %v2248_v36 = vmul.f32 %v2243_v41, %v2176_v35 }
 0xafd   :  { %v2149_v42 = vand.u32 2147483647, %v4037_v14  ;;  %vm2314_vm8 = vcmp.ge.f32.partialorder %v4037_v14, 0.0 }
 0xafe   :  { %v2253_v32 = vadd.f32 1.4214138, %v2248_v36 }
 0xaff   :  { %v2154_v50 = vmul.f32 0.3275911, %v2149_v42  ;;  %v2284_v28 = vsub.f32 0.0, %v2149_v42 }
 0xb00   :  { %v2258_v7 = vmul.f32 %v2253_v32, %v2176_v35 }
 0xb01   :  { %v2159_v51 = vadd.f32 1.0, %v2154_v50  ;;  %v2289_v17 = vmul.f32 %v2284_v28, %v2149_v42 }
 0xb02   :  { %v2263_v46 = vadd.f32 -0.28449672, %v2258_v7 }
 0xb03   :  { %2885 = vrcp.f32 %v2159_v51  ;;  %v2189_v63 = vand.u32 2147483648, %v2159_v51  ;;  %v2187_v0 = vand.u32 2147483647, %v2159_v51  ;;  %vm2183_vm9 = vweird.f32 %v2159_v51 }
 0xb04   :  { %v2268_v15 = vmul.f32 %v2263_v46, %v2176_v35  ;;  %v2295_v11 = vmul.f32 1.442695, %v2289_v17 }
 0xb05   :  { %v2190_v4 = vor.u32 1.1754944e-38, %v2189_v63  ;;  %vm2188_vm11 = vcmp.eq.f32.partialorder %v2187_v0, 8.507059e+37  ;;  %v2139_v0 = vmul.f32 0.5, %v4034_v2 }
 0xb06   :  { %v2273_v22 = vadd.f32 0.2548296, %v2268_v15 }
 0xb08   :  { %v2278_v56 = vmul.f32 %v2273_v22, %v2176_v35 }
 0xb09   :  { %v2886_v53 = vpop.eup %2885 }
 0xb0a   :  { %v2303_v19 = vmul.f32 %v2884_v49, %v2278_v56  ;;  %v2179_v12 = vmul.f32 %v2886_v53, %v2159_v51  ;;  %vm2184_vm5 = vweird.f32 %v2886_v53 }
 0xb0b   :  { %v2129_v25 = vpop.f32.mrf.mxu0  ;;  %vm2185_vm10 = vmor %vm2183_vm9, %vm2184_vm5 }
 0xb0c   :  { %v4041_v38 = vadd.f32 %v4000_v44, %v2129_v25  ;;  %v2308_v58 = vsub.f32 1.0, %v2303_v19  ;;  %v2180_v61 = vsub.f32 1.0, %v2179_v12 }
 0xb0e   :  { %v4044_v43 = vmul.f32 0.70710677, %v4041_v38  ;;  %v2318_v37 = vsub.f32 0.0, %v2308_v58  ;;  %v2181_v62 = vmul.f32 %v2886_v53, %v2180_v61 }
 0xb10   :  { %v2150_v31 = vand.u32 2147483647, %v4044_v43  ;;  %v2323_v54 = vsel %vm2313_vm4, %v2308_v58, %v2318_v37  ;;  %v2182_v29 = vadd.f32 %v2886_v53, %v2181_v62  ;;  %vm2315_vm5 = vcmp.ge.f32.partialorder %v4044_v43, 0.0 }
 0xb11   :  { %v2328_v52 = vadd.f32 1.0, %v2323_v54 }
 0xb12   :  { %v2155_v27 = vmul.f32 0.3275911, %v2150_v31  ;;  %v2186_v59 = vsel %vm2185_vm10, %v2886_v53, %v2182_v29  ;;  %v2285_v45 = vsub.f32 0.0, %v2150_v31 }
 0xb13   :  { %v2333_v9 = vmul.f32 %v2328_v52, %v2138_v3  ;;  %v2191_v6 = vsel %vm2188_vm11, %v2190_v4, %v2186_v59 }
 0xb14   :  { %v2160_v34 = vadd.f32 1.0, %v2155_v27  ;;  %v2239_v55 = vmul.f32 1.0614054, %v2191_v6  ;;  %v2290_v49 = vmul.f32 %v2285_v45, %v2150_v31 }
 0xb15   :  { %2674 = vmatmul.msk.f32.vlgmr.msra.gmra.mxu1 %vm82_vm0, %v2333_v9 }
 0xb16   :  { %2887 = vrcp.f32 %v2160_v34  ;;  %v2244_v40 = vadd.f32 -1.4531521, %v2239_v55  ;;  %v2204_v24 = vand.u32 2147483648, %v2160_v34  ;;  %v2202_v26 = vand.u32 2147483647, %v2160_v34 }
 0xb17   :  { %2889 = vpow2.f32 %v2295_v11  ;;  %vm2198_vm13 = vweird.f32 %v2160_v34  ;;  %v2297_v37 = vmul.f32 1.442695, %v2290_v49 }
 0xb18   :  { %v2249_v48 = vmul.f32 %v2244_v40, %v2191_v6  ;;  %v2205_v13 = vor.u32 1.1754944e-38, %v2204_v24  ;;  %vm2203_vm7 = vcmp.eq.f32.partialorder %v2202_v26, 8.507059e+37  ;;  %v2140_v26 = vmul.f32 0.5, %v4041_v38 }
 0xb1a   :  { %v2254_v5 = vadd.f32 1.4214138, %v2249_v48 }
 0xb1c   :  { %v2888_v21 = vpop.eup %2887  ;;  %v2259_v30 = vmul.f32 %v2254_v5, %v2191_v6 }
 0xb1d   :  { %v2194_v47 = vmul.f32 %v2888_v21, %v2160_v34  ;;  %vm2199_vm12 = vweird.f32 %v2888_v21  ;;  %v2890_v51 = vpop.eup %2889 }
 0xb1e   :  { %v2264_v35 = vadd.f32 -0.28449672, %v2259_v30  ;;  %vm2200_vm6 = vmor %vm2198_vm13, %vm2199_vm12 }
 0xb1f   :  { %v2195_v1 = vsub.f32 1.0, %v2194_v47 }
 0xb20   :  { %v2269_v10 = vmul.f32 %v2264_v35, %v2191_v6 }
 0xb21   :  { %v2196_v33 = vmul.f32 %v2888_v21, %v2195_v1  ;;  %v2132_v41 = vpop.f32.mrf.mxu0 }
 0xb22   :  { %v4051_v8 = vadd.f32 %v4000_v44, %v2132_v41  ;;  %v2274_v36 = vadd.f32 0.2548296, %v2269_v10 }
 0xb23   :  { %v2197_v60 = vadd.f32 %v2888_v21, %v2196_v33 }
 0xb24   :  { %v4054_v7 = vmul.f32 0.70710677, %v4051_v8  ;;  %v2279_v50 = vmul.f32 %v2274_v36, %v2191_v6 }
 0xb25   :  { %v2201_v32 = vsel %vm2200_vm6, %v2888_v21, %v2197_v60 }
 0xb26   :  { %v2206_v42 = vsel %vm2203_vm7, %v2205_v13, %v2201_v32  ;;  %v2151_v15 = vand.u32 2147483647, %v4054_v7  ;;  %v2304_v22 = vmul.f32 %v2890_v51, %v2279_v50  ;;  %vm2316_vm13 = vcmp.ge.f32.partialorder %v4054_v7, 0.0 }
 0xb27   :  { %v2240_v46 = vmul.f32 1.0614054, %v2206_v42 }
 0xb28   :  { %v2156_v53 = vmul.f32 0.3275911, %v2151_v15  ;;  %v2309_v19 = vsub.f32 1.0, %v2304_v22  ;;  %v2286_v11 = vsub.f32 0.0, %v2151_v15 }
 0xb29   :  { %v2245_v56 = vadd.f32 -1.4531521, %v2240_v46 }
 0xb2a   :  { %v2161_v12 = vadd.f32 1.0, %v2156_v53  ;;  %v2319_v58 = vsub.f32 0.0, %v2309_v19 }
 0xb2b   :  { %v2250_v25 = vmul.f32 %v2245_v56, %v2206_v42 }
 0xb2c   :  { %2891 = vrcp.f32 %v2161_v12  ;;  %v2324_v63 = vsel %vm2314_vm8, %v2309_v19, %v2319_v58  ;;  %v2219_v14 = vand.u32 2147483648, %v2161_v12  ;;  %v2217_v28 = vand.u32 2147483647, %v2161_v12 }
 0xb2d   :  { %v2255_v61 = vadd.f32 1.4214138, %v2250_v25  ;;  %v2329_v3 = vadd.f32 1.0, %v2324_v63  ;;  %2893 = vpow2.f32 %v2297_v37  ;;  %vm2213_vm15 = vweird.f32 %v2161_v12 }
 0xb2e   :  { %v2220_v48 = vor.u32 1.1754944e-38, %v2219_v14  ;;  %vm2218_vm4 = vcmp.eq.f32.partialorder %v2217_v28, 8.507059e+37 }
 0xb2f   :  { %v2260_v62 = vmul.f32 %v2255_v61, %v2206_v42  ;;  %v2334_v52 = vmul.f32 %v2329_v3, %v2139_v0 }
 0xb31   :  { %v2265_v54 = vadd.f32 -0.28449672, %v2260_v62  ;;  %2675 = vmatmul.msk.f32.gmra.mxu1 %vm82_vm0, %v2334_v52 }
 0xb32   :  { %v2892_v31 = vpop.eup %2891 }
 0xb33   :  { %v2270_v27 = vmul.f32 %v2265_v54, %v2206_v42  ;;  %v2209_v29 = vmul.f32 %v2892_v31, %v2161_v12  ;;  %v2894_v59 = vpop.eup %2893  ;;  %vm2214_vm14 = vweird.f32 %v2892_v31 }
 0xb34   :  { %vm2215_vm3 = vmor %vm2213_vm15, %vm2214_vm14 }
 0xb35   :  { %v2275_v4 = vadd.f32 0.2548296, %v2270_v27  ;;  %v2210_v9 = vsub.f32 1.0, %v2209_v29  ;;  %v2141_v27 = vmul.f32 0.5, %v4051_v8 }
 0xb37   :  { %v2280_v34 = vmul.f32 %v2275_v4, %v2206_v42  ;;  %v2211_v6 = vmul.f32 %v2892_v31, %v2210_v9 }
 0xb39   :  { %v2305_v55 = vmul.f32 %v2894_v59, %v2280_v34  ;;  %v2212_v17 = vadd.f32 %v2892_v31, %v2211_v6 }
 0xb3b   :  { %v2135_v2 = vpop.f32.mrf.mxu0  ;;  %v2310_v40 = vsub.f32 1.0, %v2305_v55  ;;  %v2216_v5 = vsel %vm2215_vm3, %v2892_v31, %v2212_v17 }
 0xb3c   :  { %v4061_v21 = vadd.f32 %v4000_v44, %v2135_v2  ;;  %v2221_v30 = vsel %vm2218_vm4, %v2220_v48, %v2216_v5  ;;  %v2291_v44 = vmul.f32 %v2286_v11, %v2151_v15 }
 0xb3d   :  { %v2320_v47 = vsub.f32 0.0, %v2310_v40  ;;  %v2241_v33 = vmul.f32 1.0614054, %v2221_v30 }
 0xb3e   :  { %v4065_v1 = vmul.f32 0.70710677, %v4061_v21  ;;  %v2299_v42 = vmul.f32 1.442695, %v2291_v44  ;;  %v2142_v5 = vmul.f32 0.5, %v4061_v21 }
 0xb3f   :  { %v2325_v24 = vsel %vm2315_vm5, %v2310_v40, %v2320_v47  ;;  %v2246_v60 = vadd.f32 -1.4531521, %v2241_v33 }
 0xb40   :  { %v2152_v35 = vand.u32 2147483647, %v4065_v1  ;;  %v2330_v10 = vadd.f32 1.0, %v2325_v24  ;;  %vm2317_vm6 = vcmp.ge.f32.partialorder %v4065_v1, 0.0 }
 0xb41   :  { %v2251_v36 = vmul.f32 %v2246_v60, %v2221_v30 }
 0xb42   :  { %v2157_v13 = vmul.f32 0.3275911, %v2152_v35  ;;  %v2335_v41 = vmul.f32 %v2330_v10, %v2140_v26  ;;  %v2287_v0 = vsub.f32 0.0, %v2152_v35  ;;  %v2715_v26 = vld [vmem:[%s4187_s14 + $0x1] ss:$0 sm:$0xff] }
 0xb43   :  { %v2256_v43 = vadd.f32 1.4214138, %v2251_v36 }
 0xb44   :  { %v2162_v32 = vadd.f32 1.0, %v2157_v13  ;;  %2676 = vmatmul.msk.f32.gmra.mxu1 %vm82_vm0, %v2335_v41  ;;  %v2292_v4 = vmul.f32 %v2287_v0, %v2152_v35 }
 0xb45   :  { %v2261_v45 = vmul.f32 %v2256_v43, %v2221_v30 }
 0xb46   :  { %2895 = vrcp.f32 %v2162_v32  ;;  %v2234_v15 = vand.u32 2147483648, %v2162_v32  ;;  %v2232_v25 = vand.u32 2147483647, %v2162_v32  ;;  %vm2228_vm10 = vweird.f32 %v2162_v32 }
 0xb47   :  { %v2266_v50 = vadd.f32 -0.28449672, %v2261_v45  ;;  %2897 = vpow2.f32 %v2299_v42  ;;  %v2301_v14 = vmul.f32 1.442695, %v2292_v4 }
 0xb48   :  { %v2235_v37 = vor.u32 1.1754944e-38, %v2234_v15  ;;  %vm2233_vm12 = vcmp.eq.f32.partialorder %v2232_v25, 8.507059e+37 }
 0xb49   :  { %v2271_v46 = vmul.f32 %v2266_v50, %v2221_v30  ;;  %2899 = vpow2.f32 %v2301_v14 }
 0xb4b   :  { %v2276_v22 = vadd.f32 0.2548296, %v2271_v46 }
 0xb4c   :  { %v2896_v51 = vpop.eup %2895 }
 0xb4d   :  { %v2224_v38 = vmul.f32 %v2896_v51, %v2162_v32  ;;  %v2281_v49 = vmul.f32 %v2276_v22, %v2221_v30  ;;  %v2898_v53 = vpop.eup %2897  ;;  %vm2229_vm9 = vweird.f32 %v2896_v51 }
 0xb4e   :  { %vm2230_vm11 = vmor %vm2228_vm10, %vm2229_vm9 }
 0xb4f   :  { %v2225_v56 = vsub.f32 1.0, %v2224_v38  ;;  %v2306_v12 = vmul.f32 %v2898_v53, %v2281_v49  ;;  %v2900_v40 = vpop.eup %2899 }
 0xb51   :  { %v2226_v19 = vmul.f32 %v2896_v51, %v2225_v56  ;;  %v2311_v58 = vsub.f32 1.0, %v2306_v12 }
 0xb53   :  { %v2227_v61 = vadd.f32 %v2896_v51, %v2226_v19  ;;  %v2321_v63 = vsub.f32 0.0, %v2311_v58 }
 0xb55   :  { %v2231_v62 = vsel %vm2230_vm11, %v2896_v51, %v2227_v61  ;;  %v2326_v54 = vsel %vm2316_vm13, %v2311_v58, %v2321_v63  ;;  %vm2535_vm13 = vcmask 253952  }
 0xb56   :  { %v2236_v3 = vsel %vm2233_vm12, %v2235_v37, %v2231_v62  ;;  %v2331_v31 = vadd.f32 1.0, %v2326_v54 }
 0xb57   :  { %v2242_v52 = vmul.f32 1.0614054, %v2236_v3 }
 0xb58   :  { %v2336_v9 = vmul.f32 %v2331_v31, %v2141_v27 }
 0xb59   :  { %v2247_v29 = vadd.f32 -1.4531521, %v2242_v52 }
 0xb5a   :  { %2677 = vmatmul.msk.f32.gmra.mxu1 %vm82_vm0, %v2336_v9 }
 0xb5b   :  { %v2252_v34 = vmul.f32 %v2247_v29, %v2236_v3 }
 0xb5d   :  { %v2257_v59 = vadd.f32 1.4214138, %v2252_v34 }
 0xb5f   :  { %v2262_v6 = vmul.f32 %v2257_v59, %v2236_v3 }
 0xb61   :  { %v2267_v28 = vadd.f32 -0.28449672, %v2262_v6 }
 0xb63   :  { %v2272_v55 = vmul.f32 %v2267_v28, %v2236_v3 }
 0xb65   :  { %v2277_v7 = vadd.f32 0.2548296, %v2272_v55 }
 0xb67   :  { %v2282_v2 = vmul.f32 %v2277_v7, %v2236_v3 }
 0xb69   :  { %v2307_v17 = vmul.f32 %v2900_v40, %v2282_v2 }
 0xb6b   :  { %v2312_v48 = vsub.f32 1.0, %v2307_v17 }
 0xb6d   :  { %v2322_v47 = vsub.f32 0.0, %v2312_v48 }
 0xb6f   :  { %v2327_v8 = vsel %vm2317_vm6, %v2312_v48, %v2322_v47 }
 0xb70   :  { %v2332_v11 = vadd.f32 1.0, %v2327_v8 }
 0xb72   :  { %v2337_v30 = vmul.f32 %v2332_v11, %v2142_v5 }
 0xb74   :  { %2678 = vmatmul.msk.f32.gmra.mxu1 %vm82_vm0, %v2337_v30 }
 0xb92   :  { %v2384_v24 = vpop.f32.mrf.mxu1 }
 0xb93   :  { %v2385_v44 = vadd.f32 %v2715_v26, %v2384_v24 }
 0xb95   :  { %v2399_v21 = vadd.f32 %v2385_v44, %v3896_v23 }
 0xb97   :  { %v2406_v13 = vsel %vm132_vm1, %v2399_v21, 0.0 }
 0xbae   :  { %v2387_v33 = vpop.f32.mrf.mxu1 }
 0xbaf   :  { %v2388_v43 = vadd.f32 %v2715_v26, %v2387_v33 }
 0xbb1   :  { %v2400_v45 = vadd.f32 %v2388_v43, %v3901_v16  ;;  %v2572_v43 = vld [vmem:[%s4190_s17 + $0x18] sm:$0xff] }
 0xbb2   :  { %2592 = vmatpush.msra.mxu2 %v2572_v43 }
 0xbc1   :  { %v2390_v35 = vpop.f32.mrf.mxu1 }
 0xbc2   :  { %v2391_v10 = vadd.f32 %v2715_v26, %v2390_v35 }
 0xbc4   :  { %v2401_v60 = vadd.f32 %v2391_v10, %v3906_v18  ;;  %v2409_v18 = vsel %vm132_vm1, %v2400_v45, 0.0 }
 0xbc6   :  { %v2412_v1 = vsel %vm132_vm1, %v2401_v60, 0.0 }
 0xbc7   :  { %2413 = vadd.xlane.f32.xlu1 %v2412_v1 }
 0xbcf   :  { %2407 = vadd.xlane.f32.xlu1 %v2406_v13 }
 0xbd7   :  { %v2393_v41 = vpop.f32.mrf.mxu1 }
 0xbd8   :  { %v2394_v36 = vadd.f32 %v2715_v26, %v2393_v41 }
 0xbda   :  { %v2402_v32 = vadd.f32 %v2394_v36, %v3911_v57 }
 0xbdc   :  { %v2415_v42 = vsel %vm132_vm1, %v2402_v32, 0.0 }
 0xbdd   :  { %2416 = vadd.xlane.f32.xlu2 %v2415_v42  ;;  %v2571_v42 = vld [vmem:[%s4190_s17 + $0x10] sm:$0xff] }
 0xbde   :  { %2593 = vmatpush.msra.mxu2 %v2571_v42 }
 0xbe5   :  { %2410 = vadd.xlane.f32.xlu2 %v2409_v18 }
 0xbf1   :  { %v2396_v50 = vpop.f32.mrf.mxu1 }
 0xbf2   :  { %v2397_v46 = vadd.f32 %v2715_v26, %v2396_v50 }
 0xbf4   :  { %v2403_v23 = vadd.f32 %v2397_v46, %v3916_v20 }
 0xbf6   :  { %v2418_v51 = vsel %vm145_vm2, %v2403_v23, 0.0 }
 0xbf7   :  { %2419 = vadd.xlane.f32.xlu0 %v2418_v51 }
 0xc3a   :  { %v2414_v38 = vpop.xlane.xlu1 %2413 }
 0xc3b   :  { %v2423_v22 = vmul.f32 %v2414_v38, %v3102_v39 }
 0xc3d   :  { %v4090_v57 = vsub.f32 %v2401_v60, %v2423_v22 }
 0xc3f   :  { %v2433_v56 = vmul.f32 %v4090_v57, %v4090_v57 }
 0xc41   :  { %v2442_v16 = vsel %vm132_vm1, %v2433_v56, 0.0 }
 0xc42   :  { %v2408_v49 = vpop.xlane.xlu1 %2407  ;;  %2443 = vadd.xlane.f32.xlu0 %v2442_v16 }
 0xc43   :  { %v2421_v53 = vmul.f32 %v2408_v49, %v3102_v39 }
 0xc45   :  { %v4096_v15 = vsub.f32 %v2399_v21, %v2421_v53 }
 0xc47   :  { %v2431_v20 = vmul.f32 %v4096_v15, %v4096_v15 }
 0xc49   :  { %v2436_v19 = vsel %vm132_vm1, %v2431_v20, 0.0 }
 0xc4a   :  { %2437 = vadd.xlane.f32.xlu0 %v2436_v19 }
 0xc50   :  { %v2417_v25 = vpop.xlane.xlu2 %2416 }
 0xc51   :  { %v2424_v12 = vmul.f32 %v2417_v25, %v3102_v39 }
 0xc53   :  { %v4102_v58 = vsub.f32 %v2402_v32, %v2424_v12  ;;  %v2716_v12 = vld [vmem:[%s4188_s15] ss:$0 sm:$0xff] }
 0xc55   :  { %v2434_v61 = vmul.f32 %v4102_v58, %v4102_v58 }
 0xc57   :  { %v2445_v37 = vsel %vm132_vm1, %v2434_v61, 0.0 }
 0xc58   :  { %2446 = vadd.xlane.f32.xlu1 %v2445_v37  ;;  %v2411_v63 = vpop.xlane.xlu2 %2410 }
 0xc59   :  { %v2422_v62 = vmul.f32 %v2411_v63, %v3102_v39 }
 0xc5b   :  { %v4108_v0 = vsub.f32 %v2400_v45, %v2422_v62 }
 0xc5d   :  { %v2432_v3 = vmul.f32 %v4108_v0, %v4108_v0 }
 0xc5f   :  { %v2439_v54 = vsel %vm132_vm1, %v2432_v3, 0.0 }
 0xc60   :  { %2440 = vadd.xlane.f32.xlu1 %v2439_v54 }
 0xc6a   :  { %v2420_v52 = vpop.xlane.xlu0 %2419 }
 0xc6b   :  { %v2425_v27 = vmul.f32 %v2420_v52, %v3102_v39 }
 0xc6d   :  { %v4114_v31 = vsub.f32 %v2403_v23, %v2425_v27  ;;  %v2570_v23 = vld [vmem:[%s4190_s17 + $0x8] sm:$0xff] }
 0xc6e   :  { %2594 = vmatpush.msra.mxu2 %v2570_v23 }
 0xc6f   :  { %v2435_v29 = vmul.f32 %v4114_v31, %v4114_v31 }
 0xc71   :  { %v2448_v4 = vsel %vm145_vm2, %v2435_v29, 0.0 }
 0xc72   :  { %2449 = vadd.xlane.f32.xlu2 %v2448_v4 }
 0xcb5   :  { %v2444_v9 = vpop.xlane.xlu0 %2443 }
 0xcb6   :  { %v2453_v14 = vmul.f32 %v2444_v9, %v3102_v39 }
 0xcb8   :  { %v2458_v28 = vadd.f32 1e-06, %v2453_v14 }
 0xcba   :  { %vm2487_vm15 = vweird.f32 %v2458_v28 }
 0xcbd   :  { %v2438_v34 = vpop.xlane.xlu0 %2437 }
 0xcbe   :  { %v2451_v59 = vmul.f32 %v2438_v34, %v3102_v39 }
 0xcc0   :  { %v2456_v6 = vadd.f32 1e-06, %v2451_v59 }
 0xcc2   :  { %2901 = vrsqrt.f32 %v2456_v6  ;;  %vm2467_vm7 = vweird.f32 %v2456_v6 }
 0xcc3   :  { %2903 = vrsqrt.f32 %v2458_v28 }
 0xcc8   :  { %v2902_v40 = vpop.eup %2901 }
 0xcc9   :  { %v2904_v17 = vpop.eup %2903  ;;  %v2462_v48 = vmul.f32 %v2902_v40, %v2456_v6  ;;  %vm2468_vm0 = vweird.f32 %v2902_v40 }
 0xcca   :  { %v2482_v8 = vmul.f32 %v2904_v17, %v2458_v28  ;;  %vm2488_vm2 = vweird.f32 %v2904_v17  ;;  %vm4137_vm8 = vmor %vm2467_vm7, %vm2468_vm0  ;;  %vm2567_vm7 = vcmask 1040384  }
 0xccb   :  { %v2447_v55 = vpop.xlane.xlu1 %2446  ;;  %v2463_v30 = vmul.f32 %v2902_v40, %v2462_v48  ;;  %vm2489_vm3 = vmor %vm2487_vm15, %vm2488_vm2  ;;  %vm2547_vm2 = vcmask 1046528  }
 0xccc   :  { %v2454_v7 = vmul.f32 %v2447_v55, %v3102_v39  ;;  %v2483_v33 = vmul.f32 %v2904_v17, %v2482_v8  ;;  %v24_v55 = vstv %s4191_s18 }
 0xccd   :  { %v2464_v35 = vmul.f32 0.5, %v2463_v30  ;;  %25 = vst [vmem:[#allocation2] sm:$0x1] %v24_v55 }
 0xcce   :  { %v2459_v2 = vadd.f32 1e-06, %v2454_v7  ;;  %v2484_v10 = vmul.f32 0.5, %v2483_v33 }
 0xccf   :  { %v2465_v1 = vsub.f32 1.5, %v2464_v35 }
 0xcd0   :  { %2905 = vrsqrt.f32 %v2459_v2  ;;  %v2485_v13 = vsub.f32 1.5, %v2484_v10  ;;  %vm2497_vm10 = vweird.f32 %v2459_v2 }
 0xcd1   :  { %v2466_v32 = vmul.f32 %v2902_v40, %v2465_v1 }
 0xcd2   :  { %v2486_v50 = vmul.f32 %v2904_v17, %v2485_v13 }
 0xcd3   :  { %v2441_v47 = vpop.xlane.xlu1 %2440  ;;  %v2470_v56 = vsel %vm4137_vm8, %v2902_v40, %v2466_v32  ;;  %vm2600_vm8 = vcmask 1024  }
 0xcd4   :  { %v2452_v5 = vmul.f32 %v2441_v47, %v3102_v39  ;;  %v2490_v53 = vsel %vm2489_vm3, %v2904_v17, %v2486_v50  ;;  %v2511_v20 = vmul.f32 %v2470_v56, %v4096_v15  ;;  %v2717_v15 = vld [vmem:[%s4189_s16] ss:$0 sm:$0xff] }
 0xcd5   :  { %v2513_v37 = vmul.f32 %v2490_v53, %v4090_v57  ;;  %v2718_v51 = vld [vmem:[#allocation2] ss:$0 sm:$0xff] }
 0xcd6   :  { %v4123_v11 = vpop.eup %2905  ;;  %v2457_v24 = vadd.f32 1e-06, %v2452_v5  ;;  %v2519_v62 = vmul.f32 %v2716_v12, %v2511_v20 }
 0xcd7   :  { %v2492_v26 = vmul.f32 %v4123_v11, %v2459_v2  ;;  %vm2498_vm9 = vweird.f32 %v4123_v11  ;;  %v2521_v29 = vmul.f32 %v2716_v12, %v2513_v37 }
 0xcd8   :  { %2907 = vrsqrt.f32 %v2457_v24  ;;  %vm2477_vm4 = vweird.f32 %v2457_v24  ;;  %vm2499_vm11 = vmor %vm2497_vm10, %vm2498_vm9  ;;  %v2527_v9 = vadd.f32 %v2717_v15, %v2519_v62 }
 0xcd9   :  { %v2493_v60 = vmul.f32 %v4123_v11, %v2492_v26  ;;  %v2529_v59 = vadd.f32 %v2717_v15, %v2521_v29 }
 0xcda   :  { %v2532_v6 = vsel %vm132_vm1, %v2527_v9, 0.0 }
 0xcdb   :  { %v2494_v41 = vmul.f32 0.5, %v2493_v60  ;;  %v2536_v40 = vsel %vm2535_vm13, %v2529_v59, 0.0 }
 0xcdd   :  { %v2495_v38 = vsub.f32 1.5, %v2494_v41 }
 0xcde   :  { %v2908_v44 = vpop.eup %2907 }
 0xcdf   :  { %v2472_v21 = vmul.f32 %v2908_v44, %v2457_v24  ;;  %vm2478_vm14 = vweird.f32 %v2908_v44  ;;  %v2496_v19 = vmul.f32 %v4123_v11, %v2495_v38 }
 0xce0   :  { %vm2479_vm5 = vmor %vm2477_vm4, %vm2478_vm14 }
 0xce1   :  { %v2473_v36 = vmul.f32 %v2908_v44, %v2472_v21  ;;  %v2500_v3 = vsel %vm2499_vm11, %v4123_v11, %v2496_v19  ;;  %v2548_v11 = vrot.slane %v2529_v59, 1 }
 0xce2   :  { %v2514_v4 = vmul.f32 %v2500_v3, %v4102_v58 }
 0xce3   :  { %v2474_v45 = vmul.f32 0.5, %v2473_v36 }
 0xce4   :  { %v2522_v14 = vmul.f32 %v2716_v12, %v2514_v4 }
 0xce5   :  { %v2450_v18 = vpop.xlane.xlu2 %2449  ;;  %v2475_v22 = vsub.f32 1.5, %v2474_v45 }
 0xce6   :  { %v2455_v46 = vmul.f32 %v2450_v18, %v3102_v39  ;;  %v2569_v39 = vld [vmem:[%s4190_s17] sm:$0xff]  ;;  %v2530_v58 = vadd.f32 %v2717_v15, %v2522_v14 }
 0xce7   :  { %v2476_v49 = vmul.f32 %v2908_v44, %v2475_v22  ;;  %2595 = vmatpush.msra.mxu2 %v2569_v39 }
 0xce8   :  { %v2460_v16 = vadd.f32 1e-06, %v2455_v46  ;;  %v2549_v8 = vrot.slane %v2530_v58, 1 }
 0xce9   :  { %v2480_v25 = vsel %vm2479_vm5, %v2908_v44, %v2476_v49 }
 0xcea   :  { %2909 = vrsqrt.f32 %v2460_v16  ;;  %v2512_v61 = vmul.f32 %v2480_v25, %v4108_v0  ;;  %vm2507_vm6 = vweird.f32 %v2460_v16  ;;  %v2550_v33 = vsel %vm2547_vm2, %v2548_v11, %v2549_v8 }
 0xceb   :  { %v2556_v60 = vsel %vm132_vm1, %v2550_v33, 0.0 }
 0xcec   :  { %v2520_v63 = vmul.f32 %v2716_v12, %v2512_v61 }
 0xcee   :  { %v2528_v52 = vadd.f32 %v2717_v15, %v2520_v63 }
 0xcf0   :  { %v2910_v54 = vpop.eup %2909  ;;  %v2533_v34 = vsel %vm132_vm1, %v2528_v52, 0.0 }
 0xcf1   :  { %v2502_v27 = vmul.f32 %v2910_v54, %v2460_v16  ;;  %vm2508_vm12 = vweird.f32 %v2910_v54  ;;  %v2534_v7 = vadd.f32 %v2533_v34, %v2532_v6 }
 0xcf2   :  { %vm2509_vm0 = vmor %vm2507_vm6, %vm2508_vm12 }
 0xcf3   :  { %v2503_v0 = vmul.f32 %v2910_v54, %v2502_v27  ;;  %v2537_v47 = vadd.f32 %v2536_v40, %v2534_v7 }
 0xcf5   :  { %v2504_v57 = vmul.f32 0.5, %v2503_v0  ;;  %v2538_v24 = vrot.slane %v2537_v47, 4 }
 0xcf7   :  { %v2505_v28 = vsub.f32 1.5, %v2504_v57  ;;  %v2539_v10 = vadd.f32 %v2538_v24, %v2537_v47 }
 0xcf9   :  { %v2506_v2 = vmul.f32 %v2910_v54, %v2505_v28  ;;  %v2540_v13 = vrot.slane %v2539_v10, 2 }
 0xcfb   :  { %v2510_v17 = vsel %vm2509_vm0, %v2910_v54, %v2506_v2  ;;  %v2541_v36 = vadd.f32 %v2540_v13, %v2539_v10 }
 0xcfc   :  { %v2515_v48 = vmul.f32 %v2510_v17, %v4114_v31 }
 0xcfd   :  { %v2542_v42 = vrot.slane %v2541_v36, 1 }
 0xcfe   :  { %v2523_v5 = vmul.f32 %v2716_v12, %v2515_v48 }
 0xcff   :  { %v2543_v50 = vadd.f32 %v2542_v42, %v2541_v36 }
 0xd00   :  { %v2531_v30 = vadd.f32 %v2717_v15, %v2523_v5 }
 0xd02   :  { %v2551_v26 = vrot.slane %v2531_v30, 1 }
 0xd04   :  { %v2552_v35 = vsel %vm2547_vm2, %v2549_v8, %v2551_v26  ;;  %v2559_v21 = vsel %vm2535_vm13, %v2551_v26, 0.0 }
 0xd05   :  { %v2557_v44 = vsel %vm132_vm1, %v2552_v35, 0.0 }
 0xd06   :  { %v2558_v1 = vadd.f32 %v2557_v44, %v2556_v60 }
 0xd08   :  { %v2560_v31 = vadd.f32 %v2559_v21, %v2558_v1 }
 0xd0a   :  { %v2561_v41 = vrot.slane %v2560_v31, 4 }
 0xd0c   :  { %v2562_v32 = vadd.f32 %v2561_v41, %v2560_v31 }
 0xd0e   :  { %v2563_v43 = vrot.slane %v2562_v32, 2 }
 0xd10   :  { %v2564_v45 = vadd.f32 %v2563_v43, %v2562_v32 }
 0xd12   :  { %v2565_v18 = vrot.slane %v2564_v45, 1 }
 0xd14   :  { %v2566_v46 = vadd.f32 %v2565_v18, %v2564_v45 }
 0xd16   :  { %v2568_v23 = vsel %vm2567_vm7, %v2543_v50, %v2566_v46 }
 0xd17   :  { %2679 = vmatmul.msk.f32.vlgmr.msra.gmra.mxu2 %vm132_vm1, %v2568_v23 }
 0xd9a   :  { %v2597_v38 = vpop.f32.mrf.mxu2 }
 0xd9b   :  { %v2598_v22 = vadd.f32 %v2718_v51, %v2597_v38 }
 0xd9d   :  { %2601 = vst.msk [vmem:[%s4192_s19] sm:$0x3] %vm2600_vm8, %v2598_v22 }

</bundles_post_ra>
